<compile_context>
chip_gen: v7x
topology: tpu7x:2x2x1
jax: 0.10.0
libtpu: 0.0.40
codegen_flags: <defaults>
</compile_context>

<pallas_src>
import functools

import numpy as np
import jax
import jax.numpy as jnp
from jax.experimental import pallas as pl
from jax.experimental.pallas import tpu as pltpu

_K = 5  # Conv1d kernel_size for every conv in the module


def _fused_classifier_kernel(*refs, strides):
    """Whole network in one invocation; everything resident in VMEM.

    refs layout (inputs..., output):
      [0]              x     : (L0, B*C_in)             f32
      per conv layer:  w     : (K, B*C_in, B*C_out)     bf16 (block-diag, BN scale folded)
                       bias  : (1, B*C_out)             f32  (conv bias + BN folded)
                       sel   : (L_out, L_full)          bf16 (stride-2 layers only)
      [-3]             fc2_w : (B*128, B*num_classes)   bf16 (block-diag)
      [-2]             fc2_b : (1, B*num_classes)       f32
      [-1]             out   : (L_final, B*num_classes) f32
    """
    x_ref = refs[0]
    out_ref = refs[-1]
    fcw_ref, fcb_ref = refs[-3], refs[-2]

    # Single small cast of the raw input; afterwards activations stay bf16
    # between layers (one cast per layer, after the f32 bias+ReLU).
    x = x_ref[...].astype(jnp.bfloat16)                       # (L0, B*C_in)

    idx = 1
    for stride in strides:
        w_ref = refs[idx]
        b_ref = refs[idx + 1]
        idx += 2
        sel_ref = None
        if stride > 1:
            sel_ref = refs[idx]
            idx += 1

        L_in = x.shape[0]
        L_full = L_in - _K + 1                                # stride-1 output length

        # Conv1d as a sum of K shifted bf16 matmuls with f32 accumulation.
        # No im2col lane-concat -> no cross-lane relayout; the shifted views
        # are cheap sublane shifts. BN scale is already folded into w.
        acc = jnp.dot(x[0:L_full, :], w_ref[0],
                      preferred_element_type=jnp.float32)
        for k in range(1, _K):
            acc = acc + jnp.dot(x[k:k + L_full, :], w_ref[k],
                                preferred_element_type=jnp.float32)

        # Folded conv-bias + BN bias, ReLU, single cast back to bf16.
        y = jnp.maximum(acc + b_ref[...], 0.0).astype(jnp.bfloat16)

        if sel_ref is not None:
            # Stride-2 row subsample: host-precomputed 0/1 bf16 selection
            # matrix applied to the already-bf16 activation (exact: each
            # output row is 1.0 * one bf16 row, accumulated in f32).
            y = jnp.dot(sel_ref[...], y,
                        preferred_element_type=jnp.float32).astype(jnp.bfloat16)
        x = y

    # Final fc2 + ReLU (block-diagonal over the lane-stacked batch).
    logits = jnp.dot(x, fcw_ref[...],
                     preferred_element_type=jnp.float32) + fcb_ref[...]
    out_ref[...] = jnp.maximum(logits, 0.0).astype(out_ref.dtype)


def _make_sel(L_full, stride):
    """0/1 row-selection matrix picking rows 0, stride, 2*stride, ... (bf16)."""
    L_out = (L_full - 1) // stride + 1
    sel = np.zeros((L_out, L_full), np.float32)
    sel[np.arange(L_out), stride * np.arange(L_out)] = 1.0
    return jnp.asarray(sel, dtype=jnp.bfloat16)


def pack_params(conv_params, fc2_w, fc2_b, *, batch, length):
    """Host-side prep (call once, outside the hot path): fold the batch into
    the lane dim with block-diagonal bf16 weights, tile the f32 biases, and
    precompute the stride-2 selection matrices."""
    eye = jnp.eye(batch, dtype=jnp.float32)
    layers = []
    L = length
    for p in conv_params:
        w = p["w"]                                            # (K, C_in, C_out) f32, BN folded
        K, cin, cout = w.shape
        w_blk = jnp.einsum("ij,krc->kirjc", eye, w).reshape(K, batch * cin, batch * cout)
        stride = int(p["stride"])
        L_full = L - K + 1
        sel = _make_sel(L_full, stride) if stride > 1 else None
        L = (L - K) // stride + 1
        layers.append(dict(
            w=w_blk.astype(jnp.bfloat16),
            b=jnp.tile(p["b"], batch).reshape(1, batch * cout).astype(jnp.float32),
            sel=sel,
            stride=stride))
    d_in, ncls = fc2_w.shape
    fcw_blk = jnp.einsum("ij,co->icjo", eye, fc2_w).reshape(batch * d_in, batch * ncls)
    return dict(
        layers=layers,
        fc2_w=fcw_blk.astype(jnp.bfloat16),
        fc2_b=jnp.tile(fc2_b, batch).reshape(1, batch * ncls).astype(jnp.float32),
        batch=batch,
        length=length,
        l_final=L,
        num_classes=ncls,
        strides=tuple(int(p["stride"]) for p in conv_params))


def classifier_forward(x_ncl, packed):
    """x_ncl: (B, C_in, L) PyTorch layout. Returns (L_final, B, num_classes)."""
    B, C_in, L0 = x_ncl.shape
    assert B == packed["batch"] and L0 == packed["length"]
    ncls = packed["num_classes"]
    L_final = packed["l_final"]

    # Lane-stack the batch: (B, C_in, L) -> (L, B*C_in). One tiny (12 KiB)
    # XLA transpose of the raw input, kept outside the kernel on purpose.
    x_st = jnp.transpose(x_ncl, (2, 0, 1)).reshape(L0, B * C_in)

    args = [x_st]
    for lyr in packed["layers"]:
        args += [lyr["w"], lyr["b"]]
        if lyr["sel"] is not None:
            args.append(lyr["sel"])
    args += [packed["fc2_w"], packed["fc2_b"]]

    kernel = functools.partial(_fused_classifier_kernel, strides=packed["strides"])

    out2d = pl.pallas_call(
        kernel,
        out_shape=jax.ShapeDtypeStruct((L_final, B * ncls), jnp.float32),
        in_specs=[pl.BlockSpec(memory_space=pltpu.MemorySpace.VMEM) for _ in args],
        out_specs=pl.BlockSpec(memory_space=pltpu.MemorySpace.VMEM),
    )(*args)

    # Lane-stacked output reshapes row-major to the PyTorch `x.permute(2,0,1)`
    # ordering (L, B, num_classes) — no transpose needed.
    return out2d.reshape(L_final, B, ncls)


def init_params(key, num_classes=2, in_channels=12):
    """Random parameters matching the PyTorch module; BN (eval mode, fresh
    running stats) is pre-folded: scale into the conv weights, shift into the
    per-channel bias."""
    layer_cfg = [
        (in_channels, 32, 1),          # block1
        (32, 32, 1), (32, 32, 1),      # block2
        (32, 64, 2), (64, 64, 1),      # block3
        (64, 64, 1), (64, 64, 1),      # block4
        (64, 128, 2), (128, 128, 1),   # block5
    ]
    eps = 1e-5
    conv_params = []
    for (cin, cout, stride) in layer_cfg:
        key, k1, k2, k3, k4 = jax.random.split(key, 5)
        std = (2.0 / (_K * cin)) ** 0.5                      # keep activations O(1)
        w = jax.random.normal(k1, (cout, cin, _K), jnp.float32) * std  # PyTorch (C_out, C_in, K)
        conv_b = jax.random.normal(k2, (cout,), jnp.float32) * 0.05
        gamma = 1.0 + 0.1 * jax.random.normal(k3, (cout,), jnp.float32)
        beta = 0.1 * jax.random.normal(k4, (cout,), jnp.float32)
        run_mean = jnp.zeros((cout,), jnp.float32)           # fresh-init BN running stats
        run_var = jnp.ones((cout,), jnp.float32)
        scale = gamma / jnp.sqrt(run_var + eps)
        bias = (conv_b - run_mean) * scale + beta
        w_kio = jnp.transpose(w, (2, 1, 0)) * scale[None, None, :]     # (K, C_in, C_out)
        conv_params.append(dict(w=w_kio, b=bias, stride=stride))
    key, kw, kb = jax.random.split(key, 3)
    fc2_w = jax.random.normal(kw, (num_classes, 128), jnp.float32) * (1.0 / 128.0) ** 0.5
    fc2_b = jax.random.normal(kb, (num_classes,), jnp.float32) * 0.05
    return conv_params, jnp.transpose(fc2_w), fc2_b          # fc2_w -> (128, num_classes)


def _reference_forward(x_ncl, conv_params, fc2_w, fc2_b):
    """Pure-JAX f32 reference with identical (folded-BN, eval-mode) semantics."""
    x = jnp.transpose(x_ncl, (0, 2, 1)).astype(jnp.float32)  # (B, L, C)
    for p in conv_params:
        w = p["w"]                                           # (K, C_in, C_out)
        s = int(p["stride"])
        K = w.shape[0]
        L_in = x.shape[1]
        L_out = (L_in - K) // s + 1
        y = p["b"][None, None, :]
        for k in range(K):
            xk = x[:, k: k + (L_out - 1) * s + 1: s, :]      # (B, L_out, C_in)
            y = y + jnp.einsum("blc,co->blo", xk, w[k])
        x = jnp.maximum(y, 0.0)
    xp = jnp.transpose(x, (1, 0, 2))                         # (L, B, 128)
    y = jnp.einsum("lbc,co->lbo", xp, fc2_w) + fc2_b
    return jnp.maximum(y, 0.0)


if __name__ == "__main__":
    key = jax.random.PRNGKey(0)
    pkey, xkey = jax.random.split(key)
    conv_params, fc2_w, fc2_b = init_params(pkey, num_classes=2, in_channels=12)

    # Small input consistent with the module: batch=2, in_channels=12, length=128.
    B, C_in, L0 = 2, 12, 128
    x = jax.random.normal(xkey, (B, C_in, L0), jnp.float32)

    packed = pack_params(conv_params, fc2_w, fc2_b, batch=B, length=L0)

    y = classifier_forward(x, packed)
    jax.block_until_ready(y)

    assert y.shape == (16, 2, 2), y.shape                    # (L_final, B, num_classes)
    assert bool(jnp.all(y >= 0.0))                           # final ReLU

    y_ref = _reference_forward(x, conv_params, fc2_w, fc2_b)
    max_abs = float(jnp.max(jnp.abs(y - y_ref)))
    rel_l2 = float(jnp.linalg.norm(y - y_ref) / (jnp.linalg.norm(y_ref) + 1e-12))
    # Tightened vs the previous rtol=1e-1 check (activations are O(1) now, so
    # the relative criterion is meaningful); slack covers bf16 weight +
    # activation rounding through 10 matmul stages.
    assert jnp.allclose(y, y_ref, rtol=5e-2, atol=5e-2), (max_abs, rel_l2)
    assert rel_l2 < 3e-2, (max_abs, rel_l2)

    print("KERNEL_OK")
</pallas_src>

<mosaic_0001>
module attributes {stable_mosaic.version = 11 : i64} {
  func.func @_fused_classifier_kernel(%arg0: memref<128x24xf32, #tpu.memory_space<vmem>>, %arg1: memref<5x24x64xbf16, #tpu.memory_space<vmem>>, %arg2: memref<1x64xf32, #tpu.memory_space<vmem>>, %arg3: memref<5x64x64xbf16, #tpu.memory_space<vmem>>, %arg4: memref<1x64xf32, #tpu.memory_space<vmem>>, %arg5: memref<5x64x64xbf16, #tpu.memory_space<vmem>>, %arg6: memref<1x64xf32, #tpu.memory_space<vmem>>, %arg7: memref<5x64x128xbf16, #tpu.memory_space<vmem>>, %arg8: memref<1x128xf32, #tpu.memory_space<vmem>>, %arg9: memref<56x112xbf16, #tpu.memory_space<vmem>>, %arg10: memref<5x128x128xbf16, #tpu.memory_space<vmem>>, %arg11: memref<1x128xf32, #tpu.memory_space<vmem>>, %arg12: memref<5x128x128xbf16, #tpu.memory_space<vmem>>, %arg13: memref<1x128xf32, #tpu.memory_space<vmem>>, %arg14: memref<5x128x128xbf16, #tpu.memory_space<vmem>>, %arg15: memref<1x128xf32, #tpu.memory_space<vmem>>, %arg16: memref<5x128x256xbf16, #tpu.memory_space<vmem>>, %arg17: memref<1x256xf32, #tpu.memory_space<vmem>>, %arg18: memref<20x40xbf16, #tpu.memory_space<vmem>>, %arg19: memref<5x256x256xbf16, #tpu.memory_space<vmem>>, %arg20: memref<1x256xf32, #tpu.memory_space<vmem>>, %arg21: memref<256x4xbf16, #tpu.memory_space<vmem>>, %arg22: memref<1x4xf32, #tpu.memory_space<vmem>>, %arg23: memref<16x4xf32, #tpu.memory_space<vmem>>) attributes {dimension_semantics = [], scalar_prefetch = 0 : i64, scratch_operands = 0 : i64, tpu.core_type = #tpu.core_type<tc>} {
    %c0 = arith.constant 0 : index
    %c0_0 = arith.constant 0 : index
    %0 = vector.load %arg0[%c0, %c0_0] : memref<128x24xf32, #tpu.memory_space<vmem>>, vector<128x24xf32>
    %1 = arith.truncf %0 : vector<128x24xf32> to vector<128x24xbf16>
    %2 = vector.extract_strided_slice %1 {offsets = [0, 0], sizes = [124, 24], strides = [1, 1]} : vector<128x24xbf16> to vector<124x24xbf16>
    %c0_1 = arith.constant 0 : index
    %c0_2 = arith.constant 0 : index
    %c0_3 = arith.constant 0 : index
    %3 = vector.load %arg1[%c0_1, %c0_2, %c0_3] : memref<5x24x64xbf16, #tpu.memory_space<vmem>>, vector<1x24x64xbf16>
    %4 = vector.shape_cast %3 : vector<1x24x64xbf16> to vector<24x64xbf16>
    %cst = arith.constant dense<0.000000e+00> : vector<124x64xf32>
    %5 = tpu.matmul %2, %4, %cst {dimension_numbers = #tpu.dot_dimension_numbers<[1], [0], [0], [1], [0, 0, 1, 1], [], []>} : vector<124x24xbf16>, vector<24x64xbf16>, vector<124x64xf32> -> vector<124x64xf32>
    %6 = vector.extract_strided_slice %1 {offsets = [1, 0], sizes = [124, 24], strides = [1, 1]} : vector<128x24xbf16> to vector<124x24xbf16>
    %c1 = arith.constant 1 : index
    %c0_4 = arith.constant 0 : index
    %c0_5 = arith.constant 0 : index
    %7 = vector.load %arg1[%c1, %c0_4, %c0_5] : memref<5x24x64xbf16, #tpu.memory_space<vmem>>, vector<1x24x64xbf16>
    %8 = vector.shape_cast %7 : vector<1x24x64xbf16> to vector<24x64xbf16>
    %cst_6 = arith.constant dense<0.000000e+00> : vector<124x64xf32>
    %9 = tpu.matmul %6, %8, %cst_6 {dimension_numbers = #tpu.dot_dimension_numbers<[1], [0], [0], [1], [0, 0, 1, 1], [], []>} : vector<124x24xbf16>, vector<24x64xbf16>, vector<124x64xf32> -> vector<124x64xf32>
    %10 = arith.addf %5, %9 : vector<124x64xf32>
    %11 = vector.extract_strided_slice %1 {offsets = [2, 0], sizes = [124, 24], strides = [1, 1]} : vector<128x24xbf16> to vector<124x24xbf16>
    %c2 = arith.constant 2 : index
    %c0_7 = arith.constant 0 : index
    %c0_8 = arith.constant 0 : index
    %12 = vector.load %arg1[%c2, %c0_7, %c0_8] : memref<5x24x64xbf16, #tpu.memory_space<vmem>>, vector<1x24x64xbf16>
    %13 = vector.shape_cast %12 : vector<1x24x64xbf16> to vector<24x64xbf16>
    %cst_9 = arith.constant dense<0.000000e+00> : vector<124x64xf32>
    %14 = tpu.matmul %11, %13, %cst_9 {dimension_numbers = #tpu.dot_dimension_numbers<[1], [0], [0], [1], [0, 0, 1, 1], [], []>} : vector<124x24xbf16>, vector<24x64xbf16>, vector<124x64xf32> -> vector<124x64xf32>
    %15 = arith.addf %10, %14 : vector<124x64xf32>
    %16 = vector.extract_strided_slice %1 {offsets = [3, 0], sizes = [124, 24], strides = [1, 1]} : vector<128x24xbf16> to vector<124x24xbf16>
    %c3 = arith.constant 3 : index
    %c0_10 = arith.constant 0 : index
    %c0_11 = arith.constant 0 : index
    %17 = vector.load %arg1[%c3, %c0_10, %c0_11] : memref<5x24x64xbf16, #tpu.memory_space<vmem>>, vector<1x24x64xbf16>
    %18 = vector.shape_cast %17 : vector<1x24x64xbf16> to vector<24x64xbf16>
    %cst_12 = arith.constant dense<0.000000e+00> : vector<124x64xf32>
    %19 = tpu.matmul %16, %18, %cst_12 {dimension_numbers = #tpu.dot_dimension_numbers<[1], [0], [0], [1], [0, 0, 1, 1], [], []>} : vector<124x24xbf16>, vector<24x64xbf16>, vector<124x64xf32> -> vector<124x64xf32>
    %20 = arith.addf %15, %19 : vector<124x64xf32>
    %21 = vector.extract_strided_slice %1 {offsets = [4, 0], sizes = [124, 24], strides = [1, 1]} : vector<128x24xbf16> to vector<124x24xbf16>
    %c4 = arith.constant 4 : index
    %c0_13 = arith.constant 0 : index
    %c0_14 = arith.constant 0 : index
    %22 = vector.load %arg1[%c4, %c0_13, %c0_14] : memref<5x24x64xbf16, #tpu.memory_space<vmem>>, vector<1x24x64xbf16>
    %23 = vector.shape_cast %22 : vector<1x24x64xbf16> to vector<24x64xbf16>
    %cst_15 = arith.constant dense<0.000000e+00> : vector<124x64xf32>
    %24 = tpu.matmul %21, %23, %cst_15 {dimension_numbers = #tpu.dot_dimension_numbers<[1], [0], [0], [1], [0, 0, 1, 1], [], []>} : vector<124x24xbf16>, vector<24x64xbf16>, vector<124x64xf32> -> vector<124x64xf32>
    %25 = arith.addf %20, %24 : vector<124x64xf32>
    %c0_16 = arith.constant 0 : index
    %c0_17 = arith.constant 0 : index
    %26 = vector.load %arg2[%c0_16, %c0_17] : memref<1x64xf32, #tpu.memory_space<vmem>>, vector<1x64xf32>
    %27 = vector.broadcast %26 : vector<1x64xf32> to vector<124x64xf32>
    %28 = arith.addf %25, %27 : vector<124x64xf32>
    %cst_18 = arith.constant 0.000000e+00 : f32
    %29 = vector.broadcast %cst_18 : f32 to vector<124x64xf32>
    %30 = arith.maximumf %28, %29 : vector<124x64xf32>
    %31 = arith.truncf %30 : vector<124x64xf32> to vector<124x64xbf16>
    %32 = vector.extract_strided_slice %31 {offsets = [0, 0], sizes = [120, 64], strides = [1, 1]} : vector<124x64xbf16> to vector<120x64xbf16>
    %c0_19 = arith.constant 0 : index
    %c0_20 = arith.constant 0 : index
    %c0_21 = arith.constant 0 : index
    %33 = vector.load %arg3[%c0_19, %c0_20, %c0_21] : memref<5x64x64xbf16, #tpu.memory_space<vmem>>, vector<1x64x64xbf16>
    %34 = vector.shape_cast %33 : vector<1x64x64xbf16> to vector<64x64xbf16>
    %cst_22 = arith.constant dense<0.000000e+00> : vector<120x64xf32>
    %35 = tpu.matmul %32, %34, %cst_22 {dimension_numbers = #tpu.dot_dimension_numbers<[1], [0], [0], [1], [0, 0, 1, 1], [], []>} : vector<120x64xbf16>, vector<64x64xbf16>, vector<120x64xf32> -> vector<120x64xf32>
    %36 = vector.extract_strided_slice %31 {offsets = [1, 0], sizes = [120, 64], strides = [1, 1]} : vector<124x64xbf16> to vector<120x64xbf16>
    %c1_23 = arith.constant 1 : index
    %c0_24 = arith.constant 0 : index
    %c0_25 = arith.constant 0 : index
    %37 = vector.load %arg3[%c1_23, %c0_24, %c0_25] : memref<5x64x64xbf16, #tpu.memory_space<vmem>>, vector<1x64x64xbf16>
    %38 = vector.shape_cast %37 : vector<1x64x64xbf16> to vector<64x64xbf16>
    %cst_26 = arith.constant dense<0.000000e+00> : vector<120x64xf32>
    %39 = tpu.matmul %36, %38, %cst_26 {dimension_numbers = #tpu.dot_dimension_numbers<[1], [0], [0], [1], [0, 0, 1, 1], [], []>} : vector<120x64xbf16>, vector<64x64xbf16>, vector<120x64xf32> -> vector<120x64xf32>
    %40 = arith.addf %35, %39 : vector<120x64xf32>
    %41 = vector.extract_strided_slice %31 {offsets = [2, 0], sizes = [120, 64], strides = [1, 1]} : vector<124x64xbf16> to vector<120x64xbf16>
    %c2_27 = arith.constant 2 : index
    %c0_28 = arith.constant 0 : index
    %c0_29 = arith.constant 0 : index
    %42 = vector.load %arg3[%c2_27, %c0_28, %c0_29] : memref<5x64x64xbf16, #tpu.memory_space<vmem>>, vector<1x64x64xbf16>
    %43 = vector.shape_cast %42 : vector<1x64x64xbf16> to vector<64x64xbf16>
    %cst_30 = arith.constant dense<0.000000e+00> : vector<120x64xf32>
    %44 = tpu.matmul %41, %43, %cst_30 {dimension_numbers = #tpu.dot_dimension_numbers<[1], [0], [0], [1], [0, 0, 1, 1], [], []>} : vector<120x64xbf16>, vector<64x64xbf16>, vector<120x64xf32> -> vector<120x64xf32>
    %45 = arith.addf %40, %44 : vector<120x64xf32>
    %46 = vector.extract_strided_slice %31 {offsets = [3, 0], sizes = [120, 64], strides = [1, 1]} : vector<124x64xbf16> to vector<120x64xbf16>
    %c3_31 = arith.constant 3 : index
    %c0_32 = arith.constant 0 : index
    %c0_33 = arith.constant 0 : index
    %47 = vector.load %arg3[%c3_31, %c0_32, %c0_33] : memref<5x64x64xbf16, #tpu.memory_space<vmem>>, vector<1x64x64xbf16>
    %48 = vector.shape_cast %47 : vector<1x64x64xbf16> to vector<64x64xbf16>
    %cst_34 = arith.constant dense<0.000000e+00> : vector<120x64xf32>
    %49 = tpu.matmul %46, %48, %cst_34 {dimension_numbers = #tpu.dot_dimension_numbers<[1], [0], [0], [1], [0, 0, 1, 1], [], []>} : vector<120x64xbf16>, vector<64x64xbf16>, vector<120x64xf32> -> vector<120x64xf32>
    %50 = arith.addf %45, %49 : vector<120x64xf32>
    %51 = vector.extract_strided_slice %31 {offsets = [4, 0], sizes = [120, 64], strides = [1, 1]} : vector<124x64xbf16> to vector<120x64xbf16>
    %c4_35 = arith.constant 4 : index
    %c0_36 = arith.constant 0 : index
    %c0_37 = arith.constant 0 : index
    %52 = vector.load %arg3[%c4_35, %c0_36, %c0_37] : memref<5x64x64xbf16, #tpu.memory_space<vmem>>, vector<1x64x64xbf16>
    %53 = vector.shape_cast %52 : vector<1x64x64xbf16> to vector<64x64xbf16>
    %cst_38 = arith.constant dense<0.000000e+00> : vector<120x64xf32>
    %54 = tpu.matmul %51, %53, %cst_38 {dimension_numbers = #tpu.dot_dimension_numbers<[1], [0], [0], [1], [0, 0, 1, 1], [], []>} : vector<120x64xbf16>, vector<64x64xbf16>, vector<120x64xf32> -> vector<120x64xf32>
    %55 = arith.addf %50, %54 : vector<120x64xf32>
    %c0_39 = arith.constant 0 : index
    %c0_40 = arith.constant 0 : index
    %56 = vector.load %arg4[%c0_39, %c0_40] : memref<1x64xf32, #tpu.memory_space<vmem>>, vector<1x64xf32>
    %57 = vector.broadcast %56 : vector<1x64xf32> to vector<120x64xf32>
    %58 = arith.addf %55, %57 : vector<120x64xf32>
    %cst_41 = arith.constant 0.000000e+00 : f32
    %59 = vector.broadcast %cst_41 : f32 to vector<120x64xf32>
    %60 = arith.maximumf %58, %59 : vector<120x64xf32>
    %61 = arith.truncf %60 : vector<120x64xf32> to vector<120x64xbf16>
    %62 = vector.extract_strided_slice %61 {offsets = [0, 0], sizes = [116, 64], strides = [1, 1]} : vector<120x64xbf16> to vector<116x64xbf16>
    %c0_42 = arith.constant 0 : index
    %c0_43 = arith.constant 0 : index
    %c0_44 = arith.constant 0 : index
    %63 = vector.load %arg5[%c0_42, %c0_43, %c0_44] : memref<5x64x64xbf16, #tpu.memory_space<vmem>>, vector<1x64x64xbf16>
    %64 = vector.shape_cast %63 : vector<1x64x64xbf16> to vector<64x64xbf16>
    %cst_45 = arith.constant dense<0.000000e+00> : vector<116x64xf32>
    %65 = tpu.matmul %62, %64, %cst_45 {dimension_numbers = #tpu.dot_dimension_numbers<[1], [0], [0], [1], [0, 0, 1, 1], [], []>} : vector<116x64xbf16>, vector<64x64xbf16>, vector<116x64xf32> -> vector<116x64xf32>
    %66 = vector.extract_strided_slice %61 {offsets = [1, 0], sizes = [116, 64], strides = [1, 1]} : vector<120x64xbf16> to vector<116x64xbf16>
    %c1_46 = arith.constant 1 : index
    %c0_47 = arith.constant 0 : index
    %c0_48 = arith.constant 0 : index
    %67 = vector.load %arg5[%c1_46, %c0_47, %c0_48] : memref<5x64x64xbf16, #tpu.memory_space<vmem>>, vector<1x64x64xbf16>
    %68 = vector.shape_cast %67 : vector<1x64x64xbf16> to vector<64x64xbf16>
    %cst_49 = arith.constant dense<0.000000e+00> : vector<116x64xf32>
    %69 = tpu.matmul %66, %68, %cst_49 {dimension_numbers = #tpu.dot_dimension_numbers<[1], [0], [0], [1], [0, 0, 1, 1], [], []>} : vector<116x64xbf16>, vector<64x64xbf16>, vector<116x64xf32> -> vector<116x64xf32>
    %70 = arith.addf %65, %69 : vector<116x64xf32>
    %71 = vector.extract_strided_slice %61 {offsets = [2, 0], sizes = [116, 64], strides = [1, 1]} : vector<120x64xbf16> to vector<116x64xbf16>
    %c2_50 = arith.constant 2 : index
    %c0_51 = arith.constant 0 : index
    %c0_52 = arith.constant 0 : index
    %72 = vector.load %arg5[%c2_50, %c0_51, %c0_52] : memref<5x64x64xbf16, #tpu.memory_space<vmem>>, vector<1x64x64xbf16>
    %73 = vector.shape_cast %72 : vector<1x64x64xbf16> to vector<64x64xbf16>
    %cst_53 = arith.constant dense<0.000000e+00> : vector<116x64xf32>
    %74 = tpu.matmul %71, %73, %cst_53 {dimension_numbers = #tpu.dot_dimension_numbers<[1], [0], [0], [1], [0, 0, 1, 1], [], []>} : vector<116x64xbf16>, vector<64x64xbf16>, vector<116x64xf32> -> vector<116x64xf32>
    %75 = arith.addf %70, %74 : vector<116x64xf32>
    %76 = vector.extract_strided_slice %61 {offsets = [3, 0], sizes = [116, 64], strides = [1, 1]} : vector<120x64xbf16> to vector<116x64xbf16>
    %c3_54 = arith.constant 3 : index
    %c0_55 = arith.constant 0 : index
    %c0_56 = arith.constant 0 : index
    %77 = vector.load %arg5[%c3_54, %c0_55, %c0_56] : memref<5x64x64xbf16, #tpu.memory_space<vmem>>, vector<1x64x64xbf16>
    %78 = vector.shape_cast %77 : vector<1x64x64xbf16> to vector<64x64xbf16>
    %cst_57 = arith.constant dense<0.000000e+00> : vector<116x64xf32>
    %79 = tpu.matmul %76, %78, %cst_57 {dimension_numbers = #tpu.dot_dimension_numbers<[1], [0], [0], [1], [0, 0, 1, 1], [], []>} : vector<116x64xbf16>, vector<64x64xbf16>, vector<116x64xf32> -> vector<116x64xf32>
    %80 = arith.addf %75, %79 : vector<116x64xf32>
    %81 = vector.extract_strided_slice %61 {offsets = [4, 0], sizes = [116, 64], strides = [1, 1]} : vector<120x64xbf16> to vector<116x64xbf16>
    %c4_58 = arith.constant 4 : index
    %c0_59 = arith.constant 0 : index
    %c0_60 = arith.constant 0 : index
    %82 = vector.load %arg5[%c4_58, %c0_59, %c0_60] : memref<5x64x64xbf16, #tpu.memory_space<vmem>>, vector<1x64x64xbf16>
    %83 = vector.shape_cast %82 : vector<1x64x64xbf16> to vector<64x64xbf16>
    %cst_61 = arith.constant dense<0.000000e+00> : vector<116x64xf32>
    %84 = tpu.matmul %81, %83, %cst_61 {dimension_numbers = #tpu.dot_dimension_numbers<[1], [0], [0], [1], [0, 0, 1, 1], [], []>} : vector<116x64xbf16>, vector<64x64xbf16>, vector<116x64xf32> -> vector<116x64xf32>
    %85 = arith.addf %80, %84 : vector<116x64xf32>
    %c0_62 = arith.constant 0 : index
    %c0_63 = arith.constant 0 : index
    %86 = vector.load %arg6[%c0_62, %c0_63] : memref<1x64xf32, #tpu.memory_space<vmem>>, vector<1x64xf32>
    %87 = vector.broadcast %86 : vector<1x64xf32> to vector<116x64xf32>
    %88 = arith.addf %85, %87 : vector<116x64xf32>
    %cst_64 = arith.constant 0.000000e+00 : f32
    %89 = vector.broadcast %cst_64 : f32 to vector<116x64xf32>
    %90 = arith.maximumf %88, %89 : vector<116x64xf32>
    %91 = arith.truncf %90 : vector<116x64xf32> to vector<116x64xbf16>
    %92 = vector.extract_strided_slice %91 {offsets = [0, 0], sizes = [112, 64], strides = [1, 1]} : vector<116x64xbf16> to vector<112x64xbf16>
    %c0_65 = arith.constant 0 : index
    %c0_66 = arith.constant 0 : index
    %c0_67 = arith.constant 0 : index
    %93 = vector.load %arg7[%c0_65, %c0_66, %c0_67] : memref<5x64x128xbf16, #tpu.memory_space<vmem>>, vector<1x64x128xbf16>
    %94 = vector.shape_cast %93 : vector<1x64x128xbf16> to vector<64x128xbf16>
    %cst_68 = arith.constant dense<0.000000e+00> : vector<112x128xf32>
    %95 = tpu.matmul %92, %94, %cst_68 {dimension_numbers = #tpu.dot_dimension_numbers<[1], [0], [0], [1], [0, 0, 1, 1], [], []>} : vector<112x64xbf16>, vector<64x128xbf16>, vector<112x128xf32> -> vector<112x128xf32>
    %96 = vector.extract_strided_slice %91 {offsets = [1, 0], sizes = [112, 64], strides = [1, 1]} : vector<116x64xbf16> to vector<112x64xbf16>
    %c1_69 = arith.constant 1 : index
    %c0_70 = arith.constant 0 : index
    %c0_71 = arith.constant 0 : index
    %97 = vector.load %arg7[%c1_69, %c0_70, %c0_71] : memref<5x64x128xbf16, #tpu.memory_space<vmem>>, vector<1x64x128xbf16>
    %98 = vector.shape_cast %97 : vector<1x64x128xbf16> to vector<64x128xbf16>
    %cst_72 = arith.constant dense<0.000000e+00> : vector<112x128xf32>
    %99 = tpu.matmul %96, %98, %cst_72 {dimension_numbers = #tpu.dot_dimension_numbers<[1], [0], [0], [1], [0, 0, 1, 1], [], []>} : vector<112x64xbf16>, vector<64x128xbf16>, vector<112x128xf32> -> vector<112x128xf32>
    %100 = arith.addf %95, %99 : vector<112x128xf32>
    %101 = vector.extract_strided_slice %91 {offsets = [2, 0], sizes = [112, 64], strides = [1, 1]} : vector<116x64xbf16> to vector<112x64xbf16>
    %c2_73 = arith.constant 2 : index
    %c0_74 = arith.constant 0 : index
    %c0_75 = arith.constant 0 : index
    %102 = vector.load %arg7[%c2_73, %c0_74, %c0_75] : memref<5x64x128xbf16, #tpu.memory_space<vmem>>, vector<1x64x128xbf16>
    %103 = vector.shape_cast %102 : vector<1x64x128xbf16> to vector<64x128xbf16>
    %cst_76 = arith.constant dense<0.000000e+00> : vector<112x128xf32>
    %104 = tpu.matmul %101, %103, %cst_76 {dimension_numbers = #tpu.dot_dimension_numbers<[1], [0], [0], [1], [0, 0, 1, 1], [], []>} : vector<112x64xbf16>, vector<64x128xbf16>, vector<112x128xf32> -> vector<112x128xf32>
    %105 = arith.addf %100, %104 : vector<112x128xf32>
    %106 = vector.extract_strided_slice %91 {offsets = [3, 0], sizes = [112, 64], strides = [1, 1]} : vector<116x64xbf16> to vector<112x64xbf16>
    %c3_77 = arith.constant 3 : index
    %c0_78 = arith.constant 0 : index
    %c0_79 = arith.constant 0 : index
    %107 = vector.load %arg7[%c3_77, %c0_78, %c0_79] : memref<5x64x128xbf16, #tpu.memory_space<vmem>>, vector<1x64x128xbf16>
    %108 = vector.shape_cast %107 : vector<1x64x128xbf16> to vector<64x128xbf16>
    %cst_80 = arith.constant dense<0.000000e+00> : vector<112x128xf32>
    %109 = tpu.matmul %106, %108, %cst_80 {dimension_numbers = #tpu.dot_dimension_numbers<[1], [0], [0], [1], [0, 0, 1, 1], [], []>} : vector<112x64xbf16>, vector<64x128xbf16>, vector<112x128xf32> -> vector<112x128xf32>
    %110 = arith.addf %105, %109 : vector<112x128xf32>
    %111 = vector.extract_strided_slice %91 {offsets = [4, 0], sizes = [112, 64], strides = [1, 1]} : vector<116x64xbf16> to vector<112x64xbf16>
    %c4_81 = arith.constant 4 : index
    %c0_82 = arith.constant 0 : index
    %c0_83 = arith.constant 0 : index
    %112 = vector.load %arg7[%c4_81, %c0_82, %c0_83] : memref<5x64x128xbf16, #tpu.memory_space<vmem>>, vector<1x64x128xbf16>
    %113 = vector.shape_cast %112 : vector<1x64x128xbf16> to vector<64x128xbf16>
    %cst_84 = arith.constant dense<0.000000e+00> : vector<112x128xf32>
    %114 = tpu.matmul %111, %113, %cst_84 {dimension_numbers = #tpu.dot_dimension_numbers<[1], [0], [0], [1], [0, 0, 1, 1], [], []>} : vector<112x64xbf16>, vector<64x128xbf16>, vector<112x128xf32> -> vector<112x128xf32>
    %115 = arith.addf %110, %114 : vector<112x128xf32>
    %c0_85 = arith.constant 0 : index
    %c0_86 = arith.constant 0 : index
    %116 = vector.load %arg8[%c0_85, %c0_86] : memref<1x128xf32, #tpu.memory_space<vmem>>, vector<1x128xf32>
    %117 = vector.broadcast %116 : vector<1x128xf32> to vector<112x128xf32>
    %118 = arith.addf %115, %117 : vector<112x128xf32>
    %cst_87 = arith.constant 0.000000e+00 : f32
    %119 = vector.broadcast %cst_87 : f32 to vector<112x128xf32>
    %120 = arith.maximumf %118, %119 : vector<112x128xf32>
    %121 = arith.truncf %120 : vector<112x128xf32> to vector<112x128xbf16>
    %c0_88 = arith.constant 0 : index
    %c0_89 = arith.constant 0 : index
    %122 = vector.load %arg9[%c0_88, %c0_89] : memref<56x112xbf16, #tpu.memory_space<vmem>>, vector<56x112xbf16>
    %cst_90 = arith.constant dense<0.000000e+00> : vector<56x128xf32>
    %123 = tpu.matmul %122, %121, %cst_90 {dimension_numbers = #tpu.dot_dimension_numbers<[1], [0], [0], [1], [0, 0, 1, 1], [], []>} : vector<56x112xbf16>, vector<112x128xbf16>, vector<56x128xf32> -> vector<56x128xf32>
    %124 = arith.truncf %123 : vector<56x128xf32> to vector<56x128xbf16>
    %125 = vector.extract_strided_slice %124 {offsets = [0, 0], sizes = [52, 128], strides = [1, 1]} : vector<56x128xbf16> to vector<52x128xbf16>
    %c0_91 = arith.constant 0 : index
    %c0_92 = arith.constant 0 : index
    %c0_93 = arith.constant 0 : index
    %126 = vector.load %arg10[%c0_91, %c0_92, %c0_93] : memref<5x128x128xbf16, #tpu.memory_space<vmem>>, vector<1x128x128xbf16>
    %127 = vector.shape_cast %126 : vector<1x128x128xbf16> to vector<128x128xbf16>
    %cst_94 = arith.constant dense<0.000000e+00> : vector<52x128xf32>
    %128 = tpu.matmul %125, %127, %cst_94 {dimension_numbers = #tpu.dot_dimension_numbers<[1], [0], [0], [1], [0, 0, 1, 1], [], []>} : vector<52x128xbf16>, vector<128x128xbf16>, vector<52x128xf32> -> vector<52x128xf32>
    %129 = vector.extract_strided_slice %124 {offsets = [1, 0], sizes = [52, 128], strides = [1, 1]} : vector<56x128xbf16> to vector<52x128xbf16>
    %c1_95 = arith.constant 1 : index
    %c0_96 = arith.constant 0 : index
    %c0_97 = arith.constant 0 : index
    %130 = vector.load %arg10[%c1_95, %c0_96, %c0_97] : memref<5x128x128xbf16, #tpu.memory_space<vmem>>, vector<1x128x128xbf16>
    %131 = vector.shape_cast %130 : vector<1x128x128xbf16> to vector<128x128xbf16>
    %cst_98 = arith.constant dense<0.000000e+00> : vector<52x128xf32>
    %132 = tpu.matmul %129, %131, %cst_98 {dimension_numbers = #tpu.dot_dimension_numbers<[1], [0], [0], [1], [0, 0, 1, 1], [], []>} : vector<52x128xbf16>, vector<128x128xbf16>, vector<52x128xf32> -> vector<52x128xf32>
    %133 = arith.addf %128, %132 : vector<52x128xf32>
    %134 = vector.extract_strided_slice %124 {offsets = [2, 0], sizes = [52, 128], strides = [1, 1]} : vector<56x128xbf16> to vector<52x128xbf16>
    %c2_99 = arith.constant 2 : index
    %c0_100 = arith.constant 0 : index
    %c0_101 = arith.constant 0 : index
    %135 = vector.load %arg10[%c2_99, %c0_100, %c0_101] : memref<5x128x128xbf16, #tpu.memory_space<vmem>>, vector<1x128x128xbf16>
    %136 = vector.shape_cast %135 : vector<1x128x128xbf16> to vector<128x128xbf16>
    %cst_102 = arith.constant dense<0.000000e+00> : vector<52x128xf32>
    %137 = tpu.matmul %134, %136, %cst_102 {dimension_numbers = #tpu.dot_dimension_numbers<[1], [0], [0], [1], [0, 0, 1, 1], [], []>} : vector<52x128xbf16>, vector<128x128xbf16>, vector<52x128xf32> -> vector<52x128xf32>
    %138 = arith.addf %133, %137 : vector<52x128xf32>
    %139 = vector.extract_strided_slice %124 {offsets = [3, 0], sizes = [52, 128], strides = [1, 1]} : vector<56x128xbf16> to vector<52x128xbf16>
    %c3_103 = arith.constant 3 : index
    %c0_104 = arith.constant 0 : index
    %c0_105 = arith.constant 0 : index
    %140 = vector.load %arg10[%c3_103, %c0_104, %c0_105] : memref<5x128x128xbf16, #tpu.memory_space<vmem>>, vector<1x128x128xbf16>
    %141 = vector.shape_cast %140 : vector<1x128x128xbf16> to vector<128x128xbf16>
    %cst_106 = arith.constant dense<0.000000e+00> : vector<52x128xf32>
    %142 = tpu.matmul %139, %141, %cst_106 {dimension_numbers = #tpu.dot_dimension_numbers<[1], [0], [0], [1], [0, 0, 1, 1], [], []>} : vector<52x128xbf16>, vector<128x128xbf16>, vector<52x128xf32> -> vector<52x128xf32>
    %143 = arith.addf %138, %142 : vector<52x128xf32>
    %144 = vector.extract_strided_slice %124 {offsets = [4, 0], sizes = [52, 128], strides = [1, 1]} : vector<56x128xbf16> to vector<52x128xbf16>
    %c4_107 = arith.constant 4 : index
    %c0_108 = arith.constant 0 : index
    %c0_109 = arith.constant 0 : index
    %145 = vector.load %arg10[%c4_107, %c0_108, %c0_109] : memref<5x128x128xbf16, #tpu.memory_space<vmem>>, vector<1x128x128xbf16>
    %146 = vector.shape_cast %145 : vector<1x128x128xbf16> to vector<128x128xbf16>
    %cst_110 = arith.constant dense<0.000000e+00> : vector<52x128xf32>
    %147 = tpu.matmul %144, %146, %cst_110 {dimension_numbers = #tpu.dot_dimension_numbers<[1], [0], [0], [1], [0, 0, 1, 1], [], []>} : vector<52x128xbf16>, vector<128x128xbf16>, vector<52x128xf32> -> vector<52x128xf32>
    %148 = arith.addf %143, %147 : vector<52x128xf32>
    %c0_111 = arith.constant 0 : index
    %c0_112 = arith.constant 0 : index
    %149 = vector.load %arg11[%c0_111, %c0_112] : memref<1x128xf32, #tpu.memory_space<vmem>>, vector<1x128xf32>
    %150 = vector.broadcast %149 : vector<1x128xf32> to vector<52x128xf32>
    %151 = arith.addf %148, %150 : vector<52x128xf32>
    %cst_113 = arith.constant 0.000000e+00 : f32
    %152 = vector.broadcast %cst_113 : f32 to vector<52x128xf32>
    %153 = arith.maximumf %151, %152 : vector<52x128xf32>
    %154 = arith.truncf %153 : vector<52x128xf32> to vector<52x128xbf16>
    %155 = vector.extract_strided_slice %154 {offsets = [0, 0], sizes = [48, 128], strides = [1, 1]} : vector<52x128xbf16> to vector<48x128xbf16>
    %c0_114 = arith.constant 0 : index
    %c0_115 = arith.constant 0 : index
    %c0_116 = arith.constant 0 : index
    %156 = vector.load %arg12[%c0_114, %c0_115, %c0_116] : memref<5x128x128xbf16, #tpu.memory_space<vmem>>, vector<1x128x128xbf16>
    %157 = vector.shape_cast %156 : vector<1x128x128xbf16> to vector<128x128xbf16>
    %cst_117 = arith.constant dense<0.000000e+00> : vector<48x128xf32>
    %158 = tpu.matmul %155, %157, %cst_117 {dimension_numbers = #tpu.dot_dimension_numbers<[1], [0], [0], [1], [0, 0, 1, 1], [], []>} : vector<48x128xbf16>, vector<128x128xbf16>, vector<48x128xf32> -> vector<48x128xf32>
    %159 = vector.extract_strided_slice %154 {offsets = [1, 0], sizes = [48, 128], strides = [1, 1]} : vector<52x128xbf16> to vector<48x128xbf16>
    %c1_118 = arith.constant 1 : index
    %c0_119 = arith.constant 0 : index
    %c0_120 = arith.constant 0 : index
    %160 = vector.load %arg12[%c1_118, %c0_119, %c0_120] : memref<5x128x128xbf16, #tpu.memory_space<vmem>>, vector<1x128x128xbf16>
    %161 = vector.shape_cast %160 : vector<1x128x128xbf16> to vector<128x128xbf16>
    %cst_121 = arith.constant dense<0.000000e+00> : vector<48x128xf32>
    %162 = tpu.matmul %159, %161, %cst_121 {dimension_numbers = #tpu.dot_dimension_numbers<[1], [0], [0], [1], [0, 0, 1, 1], [], []>} : vector<48x128xbf16>, vector<128x128xbf16>, vector<48x128xf32> -> vector<48x128xf32>
    %163 = arith.addf %158, %162 : vector<48x128xf32>
    %164 = vector.extract_strided_slice %154 {offsets = [2, 0], sizes = [48, 128], strides = [1, 1]} : vector<52x128xbf16> to vector<48x128xbf16>
    %c2_122 = arith.constant 2 : index
    %c0_123 = arith.constant 0 : index
    %c0_124 = arith.constant 0 : index
    %165 = vector.load %arg12[%c2_122, %c0_123, %c0_124] : memref<5x128x128xbf16, #tpu.memory_space<vmem>>, vector<1x128x128xbf16>
    %166 = vector.shape_cast %165 : vector<1x128x128xbf16> to vector<128x128xbf16>
    %cst_125 = arith.constant dense<0.000000e+00> : vector<48x128xf32>
    %167 = tpu.matmul %164, %166, %cst_125 {dimension_numbers = #tpu.dot_dimension_numbers<[1], [0], [0], [1], [0, 0, 1, 1], [], []>} : vector<48x128xbf16>, vector<128x128xbf16>, vector<48x128xf32> -> vector<48x128xf32>
    %168 = arith.addf %163, %167 : vector<48x128xf32>
    %169 = vector.extract_strided_slice %154 {offsets = [3, 0], sizes = [48, 128], strides = [1, 1]} : vector<52x128xbf16> to vector<48x128xbf16>
    %c3_126 = arith.constant 3 : index
    %c0_127 = arith.constant 0 : index
    %c0_128 = arith.constant 0 : index
    %170 = vector.load %arg12[%c3_126, %c0_127, %c0_128] : memref<5x128x128xbf16, #tpu.memory_space<vmem>>, vector<1x128x128xbf16>
    %171 = vector.shape_cast %170 : vector<1x128x128xbf16> to vector<128x128xbf16>
    %cst_129 = arith.constant dense<0.000000e+00> : vector<48x128xf32>
    %172 = tpu.matmul %169, %171, %cst_129 {dimension_numbers = #tpu.dot_dimension_numbers<[1], [0], [0], [1], [0, 0, 1, 1], [], []>} : vector<48x128xbf16>, vector<128x128xbf16>, vector<48x128xf32> -> vector<48x128xf32>
    %173 = arith.addf %168, %172 : vector<48x128xf32>
    %174 = vector.extract_strided_slice %154 {offsets = [4, 0], sizes = [48, 128], strides = [1, 1]} : vector<52x128xbf16> to vector<48x128xbf16>
    %c4_130 = arith.constant 4 : index
    %c0_131 = arith.constant 0 : index
    %c0_132 = arith.constant 0 : index
    %175 = vector.load %arg12[%c4_130, %c0_131, %c0_132] : memref<5x128x128xbf16, #tpu.memory_space<vmem>>, vector<1x128x128xbf16>
    %176 = vector.shape_cast %175 : vector<1x128x128xbf16> to vector<128x128xbf16>
    %cst_133 = arith.constant dense<0.000000e+00> : vector<48x128xf32>
    %177 = tpu.matmul %174, %176, %cst_133 {dimension_numbers = #tpu.dot_dimension_numbers<[1], [0], [0], [1], [0, 0, 1, 1], [], []>} : vector<48x128xbf16>, vector<128x128xbf16>, vector<48x128xf32> -> vector<48x128xf32>
    %178 = arith.addf %173, %177 : vector<48x128xf32>
    %c0_134 = arith.constant 0 : index
    %c0_135 = arith.constant 0 : index
    %179 = vector.load %arg13[%c0_134, %c0_135] : memref<1x128xf32, #tpu.memory_space<vmem>>, vector<1x128xf32>
    %180 = vector.broadcast %179 : vector<1x128xf32> to vector<48x128xf32>
    %181 = arith.addf %178, %180 : vector<48x128xf32>
    %cst_136 = arith.constant 0.000000e+00 : f32
    %182 = vector.broadcast %cst_136 : f32 to vector<48x128xf32>
    %183 = arith.maximumf %181, %182 : vector<48x128xf32>
    %184 = arith.truncf %183 : vector<48x128xf32> to vector<48x128xbf16>
    %185 = vector.extract_strided_slice %184 {offsets = [0, 0], sizes = [44, 128], strides = [1, 1]} : vector<48x128xbf16> to vector<44x128xbf16>
    %c0_137 = arith.constant 0 : index
    %c0_138 = arith.constant 0 : index
    %c0_139 = arith.constant 0 : index
    %186 = vector.load %arg14[%c0_137, %c0_138, %c0_139] : memref<5x128x128xbf16, #tpu.memory_space<vmem>>, vector<1x128x128xbf16>
    %187 = vector.shape_cast %186 : vector<1x128x128xbf16> to vector<128x128xbf16>
    %cst_140 = arith.constant dense<0.000000e+00> : vector<44x128xf32>
    %188 = tpu.matmul %185, %187, %cst_140 {dimension_numbers = #tpu.dot_dimension_numbers<[1], [0], [0], [1], [0, 0, 1, 1], [], []>} : vector<44x128xbf16>, vector<128x128xbf16>, vector<44x128xf32> -> vector<44x128xf32>
    %189 = vector.extract_strided_slice %184 {offsets = [1, 0], sizes = [44, 128], strides = [1, 1]} : vector<48x128xbf16> to vector<44x128xbf16>
    %c1_141 = arith.constant 1 : index
    %c0_142 = arith.constant 0 : index
    %c0_143 = arith.constant 0 : index
    %190 = vector.load %arg14[%c1_141, %c0_142, %c0_143] : memref<5x128x128xbf16, #tpu.memory_space<vmem>>, vector<1x128x128xbf16>
    %191 = vector.shape_cast %190 : vector<1x128x128xbf16> to vector<128x128xbf16>
    %cst_144 = arith.constant dense<0.000000e+00> : vector<44x128xf32>
    %192 = tpu.matmul %189, %191, %cst_144 {dimension_numbers = #tpu.dot_dimension_numbers<[1], [0], [0], [1], [0, 0, 1, 1], [], []>} : vector<44x128xbf16>, vector<128x128xbf16>, vector<44x128xf32> -> vector<44x128xf32>
    %193 = arith.addf %188, %192 : vector<44x128xf32>
    %194 = vector.extract_strided_slice %184 {offsets = [2, 0], sizes = [44, 128], strides = [1, 1]} : vector<48x128xbf16> to vector<44x128xbf16>
    %c2_145 = arith.constant 2 : index
    %c0_146 = arith.constant 0 : index
    %c0_147 = arith.constant 0 : index
    %195 = vector.load %arg14[%c2_145, %c0_146, %c0_147] : memref<5x128x128xbf16, #tpu.memory_space<vmem>>, vector<1x128x128xbf16>
    %196 = vector.shape_cast %195 : vector<1x128x128xbf16> to vector<128x128xbf16>
    %cst_148 = arith.constant dense<0.000000e+00> : vector<44x128xf32>
    %197 = tpu.matmul %194, %196, %cst_148 {dimension_numbers = #tpu.dot_dimension_numbers<[1], [0], [0], [1], [0, 0, 1, 1], [], []>} : vector<44x128xbf16>, vector<128x128xbf16>, vector<44x128xf32> -> vector<44x128xf32>
    %198 = arith.addf %193, %197 : vector<44x128xf32>
    %199 = vector.extract_strided_slice %184 {offsets = [3, 0], sizes = [44, 128], strides = [1, 1]} : vector<48x128xbf16> to vector<44x128xbf16>
    %c3_149 = arith.constant 3 : index
    %c0_150 = arith.constant 0 : index
    %c0_151 = arith.constant 0 : index
    %200 = vector.load %arg14[%c3_149, %c0_150, %c0_151] : memref<5x128x128xbf16, #tpu.memory_space<vmem>>, vector<1x128x128xbf16>
    %201 = vector.shape_cast %200 : vector<1x128x128xbf16> to vector<128x128xbf16>
    %cst_152 = arith.constant dense<0.000000e+00> : vector<44x128xf32>
    %202 = tpu.matmul %199, %201, %cst_152 {dimension_numbers = #tpu.dot_dimension_numbers<[1], [0], [0], [1], [0, 0, 1, 1], [], []>} : vector<44x128xbf16>, vector<128x128xbf16>, vector<44x128xf32> -> vector<44x128xf32>
    %203 = arith.addf %198, %202 : vector<44x128xf32>
    %204 = vector.extract_strided_slice %184 {offsets = [4, 0], sizes = [44, 128], strides = [1, 1]} : vector<48x128xbf16> to vector<44x128xbf16>
    %c4_153 = arith.constant 4 : index
    %c0_154 = arith.constant 0 : index
    %c0_155 = arith.constant 0 : index
    %205 = vector.load %arg14[%c4_153, %c0_154, %c0_155] : memref<5x128x128xbf16, #tpu.memory_space<vmem>>, vector<1x128x128xbf16>
    %206 = vector.shape_cast %205 : vector<1x128x128xbf16> to vector<128x128xbf16>
    %cst_156 = arith.constant dense<0.000000e+00> : vector<44x128xf32>
    %207 = tpu.matmul %204, %206, %cst_156 {dimension_numbers = #tpu.dot_dimension_numbers<[1], [0], [0], [1], [0, 0, 1, 1], [], []>} : vector<44x128xbf16>, vector<128x128xbf16>, vector<44x128xf32> -> vector<44x128xf32>
    %208 = arith.addf %203, %207 : vector<44x128xf32>
    %c0_157 = arith.constant 0 : index
    %c0_158 = arith.constant 0 : index
    %209 = vector.load %arg15[%c0_157, %c0_158] : memref<1x128xf32, #tpu.memory_space<vmem>>, vector<1x128xf32>
    %210 = vector.broadcast %209 : vector<1x128xf32> to vector<44x128xf32>
    %211 = arith.addf %208, %210 : vector<44x128xf32>
    %cst_159 = arith.constant 0.000000e+00 : f32
    %212 = vector.broadcast %cst_159 : f32 to vector<44x128xf32>
    %213 = arith.maximumf %211, %212 : vector<44x128xf32>
    %214 = arith.truncf %213 : vector<44x128xf32> to vector<44x128xbf16>
    %215 = vector.extract_strided_slice %214 {offsets = [0, 0], sizes = [40, 128], strides = [1, 1]} : vector<44x128xbf16> to vector<40x128xbf16>
    %c0_160 = arith.constant 0 : index
    %c0_161 = arith.constant 0 : index
    %c0_162 = arith.constant 0 : index
    %216 = vector.load %arg16[%c0_160, %c0_161, %c0_162] : memref<5x128x256xbf16, #tpu.memory_space<vmem>>, vector<1x128x256xbf16>
    %217 = vector.shape_cast %216 : vector<1x128x256xbf16> to vector<128x256xbf16>
    %cst_163 = arith.constant dense<0.000000e+00> : vector<40x256xf32>
    %218 = tpu.matmul %215, %217, %cst_163 {dimension_numbers = #tpu.dot_dimension_numbers<[1], [0], [0], [1], [0, 0, 1, 1], [], []>} : vector<40x128xbf16>, vector<128x256xbf16>, vector<40x256xf32> -> vector<40x256xf32>
    %219 = vector.extract_strided_slice %214 {offsets = [1, 0], sizes = [40, 128], strides = [1, 1]} : vector<44x128xbf16> to vector<40x128xbf16>
    %c1_164 = arith.constant 1 : index
    %c0_165 = arith.constant 0 : index
    %c0_166 = arith.constant 0 : index
    %220 = vector.load %arg16[%c1_164, %c0_165, %c0_166] : memref<5x128x256xbf16, #tpu.memory_space<vmem>>, vector<1x128x256xbf16>
    %221 = vector.shape_cast %220 : vector<1x128x256xbf16> to vector<128x256xbf16>
    %cst_167 = arith.constant dense<0.000000e+00> : vector<40x256xf32>
    %222 = tpu.matmul %219, %221, %cst_167 {dimension_numbers = #tpu.dot_dimension_numbers<[1], [0], [0], [1], [0, 0, 1, 1], [], []>} : vector<40x128xbf16>, vector<128x256xbf16>, vector<40x256xf32> -> vector<40x256xf32>
    %223 = arith.addf %218, %222 : vector<40x256xf32>
    %224 = vector.extract_strided_slice %214 {offsets = [2, 0], sizes = [40, 128], strides = [1, 1]} : vector<44x128xbf16> to vector<40x128xbf16>
    %c2_168 = arith.constant 2 : index
    %c0_169 = arith.constant 0 : index
    %c0_170 = arith.constant 0 : index
    %225 = vector.load %arg16[%c2_168, %c0_169, %c0_170] : memref<5x128x256xbf16, #tpu.memory_space<vmem>>, vector<1x128x256xbf16>
    %226 = vector.shape_cast %225 : vector<1x128x256xbf16> to vector<128x256xbf16>
    %cst_171 = arith.constant dense<0.000000e+00> : vector<40x256xf32>
    %227 = tpu.matmul %224, %226, %cst_171 {dimension_numbers = #tpu.dot_dimension_numbers<[1], [0], [0], [1], [0, 0, 1, 1], [], []>} : vector<40x128xbf16>, vector<128x256xbf16>, vector<40x256xf32> -> vector<40x256xf32>
    %228 = arith.addf %223, %227 : vector<40x256xf32>
    %229 = vector.extract_strided_slice %214 {offsets = [3, 0], sizes = [40, 128], strides = [1, 1]} : vector<44x128xbf16> to vector<40x128xbf16>
    %c3_172 = arith.constant 3 : index
    %c0_173 = arith.constant 0 : index
    %c0_174 = arith.constant 0 : index
    %230 = vector.load %arg16[%c3_172, %c0_173, %c0_174] : memref<5x128x256xbf16, #tpu.memory_space<vmem>>, vector<1x128x256xbf16>
    %231 = vector.shape_cast %230 : vector<1x128x256xbf16> to vector<128x256xbf16>
    %cst_175 = arith.constant dense<0.000000e+00> : vector<40x256xf32>
    %232 = tpu.matmul %229, %231, %cst_175 {dimension_numbers = #tpu.dot_dimension_numbers<[1], [0], [0], [1], [0, 0, 1, 1], [], []>} : vector<40x128xbf16>, vector<128x256xbf16>, vector<40x256xf32> -> vector<40x256xf32>
    %233 = arith.addf %228, %232 : vector<40x256xf32>
    %234 = vector.extract_strided_slice %214 {offsets = [4, 0], sizes = [40, 128], strides = [1, 1]} : vector<44x128xbf16> to vector<40x128xbf16>
    %c4_176 = arith.constant 4 : index
    %c0_177 = arith.constant 0 : index
    %c0_178 = arith.constant 0 : index
    %235 = vector.load %arg16[%c4_176, %c0_177, %c0_178] : memref<5x128x256xbf16, #tpu.memory_space<vmem>>, vector<1x128x256xbf16>
    %236 = vector.shape_cast %235 : vector<1x128x256xbf16> to vector<128x256xbf16>
    %cst_179 = arith.constant dense<0.000000e+00> : vector<40x256xf32>
    %237 = tpu.matmul %234, %236, %cst_179 {dimension_numbers = #tpu.dot_dimension_numbers<[1], [0], [0], [1], [0, 0, 1, 1], [], []>} : vector<40x128xbf16>, vector<128x256xbf16>, vector<40x256xf32> -> vector<40x256xf32>
    %238 = arith.addf %233, %237 : vector<40x256xf32>
    %c0_180 = arith.constant 0 : index
    %c0_181 = arith.constant 0 : index
    %239 = vector.load %arg17[%c0_180, %c0_181] : memref<1x256xf32, #tpu.memory_space<vmem>>, vector<1x256xf32>
    %240 = vector.broadcast %239 : vector<1x256xf32> to vector<40x256xf32>
    %241 = arith.addf %238, %240 : vector<40x256xf32>
    %cst_182 = arith.constant 0.000000e+00 : f32
    %242 = vector.broadcast %cst_182 : f32 to vector<40x256xf32>
    %243 = arith.maximumf %241, %242 : vector<40x256xf32>
    %244 = arith.truncf %243 : vector<40x256xf32> to vector<40x256xbf16>
    %c0_183 = arith.constant 0 : index
    %c0_184 = arith.constant 0 : index
    %245 = vector.load %arg18[%c0_183, %c0_184] : memref<20x40xbf16, #tpu.memory_space<vmem>>, vector<20x40xbf16>
    %cst_185 = arith.constant dense<0.000000e+00> : vector<20x256xf32>
    %246 = tpu.matmul %245, %244, %cst_185 {dimension_numbers = #tpu.dot_dimension_numbers<[1], [0], [0], [1], [0, 0, 1, 1], [], []>} : vector<20x40xbf16>, vector<40x256xbf16>, vector<20x256xf32> -> vector<20x256xf32>
    %247 = arith.truncf %246 : vector<20x256xf32> to vector<20x256xbf16>
    %248 = vector.extract_strided_slice %247 {offsets = [0, 0], sizes = [16, 256], strides = [1, 1]} : vector<20x256xbf16> to vector<16x256xbf16>
    %c0_186 = arith.constant 0 : index
    %c0_187 = arith.constant 0 : index
    %c0_188 = arith.constant 0 : index
    %249 = vector.load %arg19[%c0_186, %c0_187, %c0_188] : memref<5x256x256xbf16, #tpu.memory_space<vmem>>, vector<1x256x256xbf16>
    %250 = vector.shape_cast %249 : vector<1x256x256xbf16> to vector<256x256xbf16>
    %cst_189 = arith.constant dense<0.000000e+00> : vector<16x256xf32>
    %251 = tpu.matmul %248, %250, %cst_189 {dimension_numbers = #tpu.dot_dimension_numbers<[1], [0], [0], [1], [0, 0, 1, 1], [], []>} : vector<16x256xbf16>, vector<256x256xbf16>, vector<16x256xf32> -> vector<16x256xf32>
    %252 = vector.extract_strided_slice %247 {offsets = [1, 0], sizes = [16, 256], strides = [1, 1]} : vector<20x256xbf16> to vector<16x256xbf16>
    %c1_190 = arith.constant 1 : index
    %c0_191 = arith.constant 0 : index
    %c0_192 = arith.constant 0 : index
    %253 = vector.load %arg19[%c1_190, %c0_191, %c0_192] : memref<5x256x256xbf16, #tpu.memory_space<vmem>>, vector<1x256x256xbf16>
    %254 = vector.shape_cast %253 : vector<1x256x256xbf16> to vector<256x256xbf16>
    %cst_193 = arith.constant dense<0.000000e+00> : vector<16x256xf32>
    %255 = tpu.matmul %252, %254, %cst_193 {dimension_numbers = #tpu.dot_dimension_numbers<[1], [0], [0], [1], [0, 0, 1, 1], [], []>} : vector<16x256xbf16>, vector<256x256xbf16>, vector<16x256xf32> -> vector<16x256xf32>
    %256 = arith.addf %251, %255 : vector<16x256xf32>
    %257 = vector.extract_strided_slice %247 {offsets = [2, 0], sizes = [16, 256], strides = [1, 1]} : vector<20x256xbf16> to vector<16x256xbf16>
    %c2_194 = arith.constant 2 : index
    %c0_195 = arith.constant 0 : index
    %c0_196 = arith.constant 0 : index
    %258 = vector.load %arg19[%c2_194, %c0_195, %c0_196] : memref<5x256x256xbf16, #tpu.memory_space<vmem>>, vector<1x256x256xbf16>
    %259 = vector.shape_cast %258 : vector<1x256x256xbf16> to vector<256x256xbf16>
    %cst_197 = arith.constant dense<0.000000e+00> : vector<16x256xf32>
    %260 = tpu.matmul %257, %259, %cst_197 {dimension_numbers = #tpu.dot_dimension_numbers<[1], [0], [0], [1], [0, 0, 1, 1], [], []>} : vector<16x256xbf16>, vector<256x256xbf16>, vector<16x256xf32> -> vector<16x256xf32>
    %261 = arith.addf %256, %260 : vector<16x256xf32>
    %262 = vector.extract_strided_slice %247 {offsets = [3, 0], sizes = [16, 256], strides = [1, 1]} : vector<20x256xbf16> to vector<16x256xbf16>
    %c3_198 = arith.constant 3 : index
    %c0_199 = arith.constant 0 : index
    %c0_200 = arith.constant 0 : index
    %263 = vector.load %arg19[%c3_198, %c0_199, %c0_200] : memref<5x256x256xbf16, #tpu.memory_space<vmem>>, vector<1x256x256xbf16>
    %264 = vector.shape_cast %263 : vector<1x256x256xbf16> to vector<256x256xbf16>
    %cst_201 = arith.constant dense<0.000000e+00> : vector<16x256xf32>
    %265 = tpu.matmul %262, %264, %cst_201 {dimension_numbers = #tpu.dot_dimension_numbers<[1], [0], [0], [1], [0, 0, 1, 1], [], []>} : vector<16x256xbf16>, vector<256x256xbf16>, vector<16x256xf32> -> vector<16x256xf32>
    %266 = arith.addf %261, %265 : vector<16x256xf32>
    %267 = vector.extract_strided_slice %247 {offsets = [4, 0], sizes = [16, 256], strides = [1, 1]} : vector<20x256xbf16> to vector<16x256xbf16>
    %c4_202 = arith.constant 4 : index
    %c0_203 = arith.constant 0 : index
    %c0_204 = arith.constant 0 : index
    %268 = vector.load %arg19[%c4_202, %c0_203, %c0_204] : memref<5x256x256xbf16, #tpu.memory_space<vmem>>, vector<1x256x256xbf16>
    %269 = vector.shape_cast %268 : vector<1x256x256xbf16> to vector<256x256xbf16>
    %cst_205 = arith.constant dense<0.000000e+00> : vector<16x256xf32>
    %270 = tpu.matmul %267, %269, %cst_205 {dimension_numbers = #tpu.dot_dimension_numbers<[1], [0], [0], [1], [0, 0, 1, 1], [], []>} : vector<16x256xbf16>, vector<256x256xbf16>, vector<16x256xf32> -> vector<16x256xf32>
    %271 = arith.addf %266, %270 : vector<16x256xf32>
    %c0_206 = arith.constant 0 : index
    %c0_207 = arith.constant 0 : index
    %272 = vector.load %arg20[%c0_206, %c0_207] : memref<1x256xf32, #tpu.memory_space<vmem>>, vector<1x256xf32>
    %273 = vector.broadcast %272 : vector<1x256xf32> to vector<16x256xf32>
    %274 = arith.addf %271, %273 : vector<16x256xf32>
    %cst_208 = arith.constant 0.000000e+00 : f32
    %275 = vector.broadcast %cst_208 : f32 to vector<16x256xf32>
    %276 = arith.maximumf %274, %275 : vector<16x256xf32>
    %277 = arith.truncf %276 : vector<16x256xf32> to vector<16x256xbf16>
    %c0_209 = arith.constant 0 : index
    %c0_210 = arith.constant 0 : index
    %278 = vector.load %arg21[%c0_209, %c0_210] : memref<256x4xbf16, #tpu.memory_space<vmem>>, vector<256x4xbf16>
    %cst_211 = arith.constant dense<0.000000e+00> : vector<16x4xf32>
    %279 = tpu.matmul %277, %278, %cst_211 {dimension_numbers = #tpu.dot_dimension_numbers<[1], [0], [0], [1], [0, 0, 1, 1], [], []>} : vector<16x256xbf16>, vector<256x4xbf16>, vector<16x4xf32> -> vector<16x4xf32>
    %c0_212 = arith.constant 0 : index
    %c0_213 = arith.constant 0 : index
    %280 = vector.load %arg22[%c0_212, %c0_213] : memref<1x4xf32, #tpu.memory_space<vmem>>, vector<1x4xf32>
    %281 = vector.broadcast %280 : vector<1x4xf32> to vector<16x4xf32>
    %282 = arith.addf %279, %281 : vector<16x4xf32>
    %cst_214 = arith.constant 0.000000e+00 : f32
    %283 = vector.broadcast %cst_214 : f32 to vector<16x4xf32>
    %284 = arith.maximumf %282, %283 : vector<16x4xf32>
    %c0_215 = arith.constant 0 : index
    %c0_216 = arith.constant 0 : index
    %285 = vector.load %arg23[%c0_215, %c0_216] : memref<16x4xf32, #tpu.memory_space<vmem>>, vector<16x4xf32>
    tpu.vector_store %arg23[%c0_215, %c0_216], %284 {strides = array<i32>} : memref<16x4xf32, #tpu.memory_space<vmem>>, vector<16x4xf32>,
    return
  }
}

</mosaic_0001>

<bundles_post_ra>
// kernel: tpu_custom_call.1
= control target key start
LH: loop header
LB: loop body
LE: loop exit
PB: predicated region body
PF: predicated region fallthrough
CT: control target
= control target key end

     0   :  { %s14220_s0 = inlined_call_operand.vmem [shape: f32[128,24], index: 0, kind: input, shape index: {}]   ;;  %s14221_s1 = inlined_call_operand.hbm [shape: bf16[5,24,64], index: 1, kind: input, shape index: {}]   ;;  %s14222_s2 = inlined_call_operand.hbm [shape: f32[1,64], index: 2, kind: input, shape index: {}]   ;;  %s14223_s3 = inlined_call_operand.hbm [shape: bf16[5,64,64], index: 3, kind: input, shape index: {}]   ;;  %s14224_s4 = inlined_call_operand.hbm [shape: f32[1,64], index: 4, kind: input, shape index: {}]   ;;  %s14225_s5 = inlined_call_operand.hbm [shape: bf16[5,64,64], index: 5, kind: input, shape index: {}]   ;;  %s14226_s6 = inlined_call_operand.hbm [shape: f32[1,64], index: 6, kind: input, shape index: {}]   ;;  %s14227_s7 = inlined_call_operand.hbm [shape: bf16[5,64,128], index: 7, kind: input, shape index: {}]   ;;  %s14228_s8 = inlined_call_operand.hbm [shape: f32[1,128], index: 8, kind: input, shape index: {}]   ;;  %s14229_s9 = inlined_call_operand.hbm [shape: bf16[56,112], index: 9, kind: input, shape index: {}]   ;;  %s14230_s10 = inlined_call_operand.vmem [shape: bf16[5,128,128], index: 10, kind: input, shape index: {}]   ;;  %s14231_s11 = inlined_call_operand.hbm [shape: f32[1,128], index: 11, kind: input, shape index: {}]   ;;  %s14232_s12 = inlined_call_operand.hbm [shape: bf16[5,128,128], index: 12, kind: input, shape index: {}]   ;;  %s14233_s13 = inlined_call_operand.hbm [shape: f32[1,128], index: 13, kind: input, shape index: {}]   ;;  %s14234_s14 = inlined_call_operand.hbm [shape: bf16[5,128,128], index: 14, kind: input, shape index: {}]   ;;  %s14235_s15 = inlined_call_operand.hbm [shape: f32[1,128], index: 15, kind: input, shape index: {}]   ;;  %s14236_s16 = inlined_call_operand.hbm [shape: bf16[5,128,256], index: 16, kind: input, shape index: {}]   ;;  %s14237_s17 = inlined_call_operand.vmem [shape: f32[1,256], index: 17, kind: input, shape index: {}]   ;;  %s14238_s18 = inlined_call_operand.vmem [shape: bf16[20,40], index: 18, kind: input, shape index: {}]   ;;  %s14239_s19 = inlined_call_operand.hbm [shape: bf16[5,256,256], index: 19, kind: input, shape index: {}]   ;;  %s14240_s20 = inlined_call_operand.vmem [shape: f32[1,256], index: 20, kind: input, shape index: {}]   ;;  %s14241_s21 = inlined_call_operand.vmem [shape: bf16[256,4], index: 21, kind: input, shape index: {}]   ;;  %s14242_s22 = inlined_call_operand.vmem [shape: f32[1,4], index: 22, kind: input, shape index: {}]   ;;  %s14243_s23 = inlined_call_operand.vmem [shape: f32[16,4], index: 23, kind: output, shape index: {}]  }
   0x1   :  { %14253 = sst [smem:[#allocation36_spill]] %s14220_s0 }
   0x2   :  { %14254 = sst [smem:[#allocation37_spill]] %s14221_s1 }
   0x3   :  { %14255 = sst [smem:[#allocation38_spill]] %s14222_s2 }
   0x4   :  { %14256 = sst [smem:[#allocation39_spill]] %s14223_s3 }
   0x5   :  { %14257 = sst [smem:[#allocation40_spill]] %s14224_s4 }
   0x6   :  { %14258 = sst [smem:[#allocation41_spill]] %s14225_s5 }
   0x7   :  { %14259 = sst [smem:[#allocation42_spill]] %s14226_s6 }
   0x8   :  { %14260 = sst [smem:[#allocation43_spill]] %s14227_s7 }
   0x9   :  { %14261 = sst [smem:[#allocation44_spill]] %s14243_s23 }
   0xa   :  { %28 = vsyncpa [#allocation3], 0 }
   0xb   :  { %29 = vsyncpa [#allocation5], 0 }
   0xc   :  { %30 = vsyncpa [#allocation8], 0 }
   0xd   :  { %31 = vsyncpa [#allocation11], 0 }
   0xe   :  { %32 = vsyncpa [#allocation14], 0 }
   0xf   :  { %33 = vsyncpa [#allocation17], 0 }
  0x10   :  { %34 = vsyncpa [#allocation20], 0 }
  0x11   :  { %35 = vsyncpa [#allocation23], 0 }
  0x12   :  { %36 = vsyncpa [#allocation26], 0  ;;  %s12124_s4 = smov [#allocation4]   ;;  %s12125_s24 = smov [#allocation7]  }
  0x13   :  { %s57_s30 = sshll.u32 %s12124_s4, 4  ;;  %s79_s25 = sshll.u32 %s12125_s24, 4  ;;  %s58_s30 = int_to_ptr.vmem [resolvable:$true] %s57_s30  ;;  %s80_s25 = int_to_ptr.vmem [resolvable:$true] %s79_s25 }
  0x14   :  { %s14262_s26 = sld [smem:[#allocation38_spill]] }
  0x1a   :  { %s11754_s2 = scalar_lea.hbm %s14262_s26, 16 }
  0x1b   :  { %p11755_p0 = scmp.ne.s32.totalorder %s14262_s26, %s11754_s2  ;;  %p11758_p1 = scmp.lt.u32.totalorder %s11754_s2, %s14262_s26 }
  0x1d   :  { %p11760_p2 = pnand %p11758_p1, %p11755_p0 }
  0x1f   :  { %11763 = shalt.err (!%p11760_p2)
}
  0x20   :  { %s11764_s29 = scalar_lea.vmem %s58_s30, 16  ;;  %s11768_s3 = scalar_lea.vmem %s58_s30, 32 }
  0x21   :  { %p11765_p3 = scmp.ne.s32.totalorder %s58_s30, %s11764_s29  ;;  %p11769_p4 = scmp.lt.s32.totalorder %s58_s30, %s58_s30 }
  0x22   :  { %p11770_p5 = scmp.lt.s32.totalorder %s11768_s3, %s11764_s29 }
  0x24   :  { %p11771_p6 = por %p11770_p5, %p11769_p4 }
  0x26   :  { %p11772_p7 = pnand %p11771_p6, %p11765_p3 }
  0x28   :  { %11775 = shalt.err (!%p11772_p7)
}
  0x29   :  { %60 = dma.hbm_to_vmem [thread:$0]  %s14262_s26, 16, %s58_s30, [#allocation5]  }
  0x2a   :  { %s14263_s1 = sld [smem:[#allocation40_spill]] }
  0x30   :  { %s11776_s6 = scalar_lea.hbm %s14263_s1, 16 }
  0x31   :  { %p11777_p8 = scmp.ne.s32.totalorder %s14263_s1, %s11776_s6  ;;  %p11780_p9 = scmp.lt.u32.totalorder %s11776_s6, %s14263_s1 }
  0x33   :  { %p11782_p10 = pnand %p11780_p9, %p11777_p8 }
  0x35   :  { %11785 = shalt.err (!%p11782_p10)
}
  0x36   :  { %s11786_s29 = scalar_lea.vmem %s80_s25, 16  ;;  %s11790_s3 = scalar_lea.vmem %s80_s25, 32 }
  0x37   :  { %p11787_p11 = scmp.ne.s32.totalorder %s80_s25, %s11786_s29  ;;  %p11791_p12 = scmp.lt.s32.totalorder %s80_s25, %s80_s25 }
  0x38   :  { %p11792_p13 = scmp.lt.s32.totalorder %s11790_s3, %s11786_s29 }
  0x3a   :  { %p11793_p0 = por %p11792_p13, %p11791_p12 }
  0x3c   :  { %p11794_p1 = pnand %p11793_p0, %p11787_p11 }
  0x3e   :  { %11797 = shalt.err (!%p11794_p1)
}
  0x3f   :  { %82 = dma.hbm_to_vmem [thread:$0]  %s14263_s1, 16, %s80_s25, [#allocation8]  }
  0x40   :  { %s12126_s0 = smov [#allocation10]   ;;  %s12127_s24 = smov [#allocation13]  }
  0x41   :  { %s101_s4 = sshll.u32 %s12126_s0, 4  ;;  %s123_s5 = sshll.u32 %s12127_s24, 4  ;;  %s102_s4 = int_to_ptr.vmem [resolvable:$true] %s101_s4  ;;  %s124_s5 = int_to_ptr.vmem [resolvable:$true] %s123_s5 }
  0x42   :  { %s14264_s2 = sld [smem:[#allocation42_spill]] }
  0x48   :  { %s11798_s7 = scalar_lea.hbm %s14264_s2, 16 }
  0x49   :  { %p11799_p2 = scmp.ne.s32.totalorder %s14264_s2, %s11798_s7  ;;  %p11802_p3 = scmp.lt.u32.totalorder %s11798_s7, %s14264_s2 }
  0x4b   :  { %p11804_p4 = pnand %p11802_p3, %p11799_p2 }
  0x4d   :  { %11807 = shalt.err (!%p11804_p4)
}
  0x4e   :  { %s11808_s25 = scalar_lea.vmem %s102_s4, 16  ;;  %s11812_s1 = scalar_lea.vmem %s102_s4, 32 }
  0x4f   :  { %p11809_p5 = scmp.ne.s32.totalorder %s102_s4, %s11808_s25  ;;  %p11813_p6 = scmp.lt.s32.totalorder %s102_s4, %s102_s4 }
  0x50   :  { %p11814_p7 = scmp.lt.s32.totalorder %s11812_s1, %s11808_s25 }
  0x52   :  { %p11815_p8 = por %p11814_p7, %p11813_p6 }
  0x54   :  { %p11816_p9 = pnand %p11815_p8, %p11809_p5 }
  0x56   :  { %11819 = shalt.err (!%p11816_p9)
}
  0x57   :  { %104 = dma.hbm_to_vmem [thread:$0]  %s14264_s2, 16, %s102_s4, [#allocation11]  }
  0x58   :  { %s11820_s24 = scalar_lea.hbm %s14228_s8, 16 }
  0x59   :  { %p11821_p10 = scmp.ne.s32.totalorder %s14228_s8, %s11820_s24  ;;  %p11824_p11 = scmp.lt.u32.totalorder %s11820_s24, %s14228_s8 }
  0x5b   :  { %p11826_p12 = pnand %p11824_p11, %p11821_p10 }
  0x5d   :  { %11829 = shalt.err (!%p11826_p12)
}
  0x5e   :  { %s11830_s29 = scalar_lea.vmem %s124_s5, 16  ;;  %s11834_s3 = scalar_lea.vmem %s124_s5, 32 }
  0x5f   :  { %p11831_p13 = scmp.ne.s32.totalorder %s124_s5, %s11830_s29  ;;  %p11835_p0 = scmp.lt.s32.totalorder %s124_s5, %s124_s5 }
  0x60   :  { %p11836_p1 = scmp.lt.s32.totalorder %s11834_s3, %s11830_s29 }
  0x62   :  { %p11837_p2 = por %p11836_p1, %p11835_p0 }
  0x64   :  { %p11838_p3 = pnand %p11837_p2, %p11831_p13 }
  0x66   :  { %11841 = shalt.err (!%p11838_p3)
}
  0x67   :  { %126 = dma.hbm_to_vmem [thread:$0]  %s14228_s8, 16, %s124_s5, [#allocation14]  }
  0x68   :  { %s12128_s25 = smov [#allocation16]   ;;  %s12129_s30 = smov [#allocation19]  }
  0x69   :  { %s147_s1 = sshll.u32 %s12128_s25, 4  ;;  %s169_s26 = sshll.u32 %s12129_s30, 4  ;;  %s148_s1 = int_to_ptr.vmem [resolvable:$true] %s147_s1  ;;  %s170_s26 = int_to_ptr.vmem [resolvable:$true] %s169_s26 }
  0x6a   :  { %s11842_s24 = scalar_lea.hbm %s14231_s11, 16 }
  0x6b   :  { %p11843_p4 = scmp.ne.s32.totalorder %s14231_s11, %s11842_s24  ;;  %p11846_p5 = scmp.lt.u32.totalorder %s11842_s24, %s14231_s11 }
  0x6d   :  { %p11848_p6 = pnand %p11846_p5, %p11843_p4 }
  0x6f   :  { %11851 = shalt.err (!%p11848_p6)
}
  0x70   :  { %s11852_s8 = scalar_lea.vmem %s148_s1, 16  ;;  %s11856_s5 = scalar_lea.vmem %s148_s1, 32 }
  0x71   :  { %p11853_p7 = scmp.ne.s32.totalorder %s148_s1, %s11852_s8  ;;  %p11857_p8 = scmp.lt.s32.totalorder %s148_s1, %s148_s1 }
  0x72   :  { %p11858_p9 = scmp.lt.s32.totalorder %s11856_s5, %s11852_s8 }
  0x74   :  { %p11859_p10 = por %p11858_p9, %p11857_p8 }
  0x76   :  { %p11860_p11 = pnand %p11859_p10, %p11853_p7 }
  0x78   :  { %11863 = shalt.err (!%p11860_p11)
}
  0x79   :  { %150 = dma.hbm_to_vmem [thread:$0]  %s14231_s11, 16, %s148_s1, [#allocation17]  }
  0x7a   :  { %s11864_s25 = scalar_lea.hbm %s14233_s13, 16 }
  0x7b   :  { %p11865_p12 = scmp.ne.s32.totalorder %s14233_s13, %s11864_s25  ;;  %p11868_p13 = scmp.lt.u32.totalorder %s11864_s25, %s14233_s13 }
  0x7d   :  { %p11870_p0 = pnand %p11868_p13, %p11865_p12 }
  0x7f   :  { %11873 = shalt.err (!%p11870_p0)
}
  0x80   :  { %s11874_s6 = scalar_lea.vmem %s170_s26, 16  ;;  %s11878_s27 = scalar_lea.vmem %s170_s26, 32 }
  0x81   :  { %p11875_p1 = scmp.ne.s32.totalorder %s170_s26, %s11874_s6  ;;  %p11879_p2 = scmp.lt.s32.totalorder %s170_s26, %s170_s26 }
  0x82   :  { %p11880_p3 = scmp.lt.s32.totalorder %s11878_s27, %s11874_s6 }
  0x84   :  { %p11881_p4 = por %p11880_p3, %p11879_p2 }
  0x86   :  { %p11882_p5 = pnand %p11881_p4, %p11875_p1 }
  0x88   :  { %11885 = shalt.err (!%p11882_p5)
}
  0x89   :  { %172 = dma.hbm_to_vmem [thread:$0]  %s14233_s13, 16, %s170_s26, [#allocation20]  }
  0x8a   :  { %s12130_s7 = smov [#allocation22]   ;;  %s12131_s8 = smov [#allocation2]  }
  0x8b   :  { %s191_s28 = sshll.u32 %s12130_s7, 4  ;;  %s44_s5 = sshll.u32 %s12131_s8, 4  ;;  %s192_s28 = int_to_ptr.vmem [resolvable:$true] %s191_s28  ;;  %s12339_s5 = int_to_ptr.vmem [resolvable:$true] %s44_s5 }
  0x8c   :  { %s11886_s4 = scalar_lea.hbm %s14235_s15, 16 }
  0x8d   :  { %p11887_p6 = scmp.ne.s32.totalorder %s14235_s15, %s11886_s4  ;;  %p11890_p7 = scmp.lt.u32.totalorder %s11886_s4, %s14235_s15 }
  0x8f   :  { %p11892_p8 = pnand %p11890_p7, %p11887_p6 }
  0x91   :  { %11895 = shalt.err (!%p11892_p8)
}
  0x92   :  { %s11896_s13 = scalar_lea.vmem %s192_s28, 16  ;;  %s11900_s26 = scalar_lea.vmem %s192_s28, 32 }
  0x93   :  { %p11897_p9 = scmp.ne.s32.totalorder %s192_s28, %s11896_s13  ;;  %p11901_p10 = scmp.lt.s32.totalorder %s192_s28, %s192_s28 }
  0x94   :  { %p11902_p11 = scmp.lt.s32.totalorder %s11900_s26, %s11896_s13 }
  0x96   :  { %p11903_p12 = por %p11902_p11, %p11901_p10 }
  0x98   :  { %p11904_p13 = pnand %p11903_p12, %p11897_p9 }
  0x9a   :  { %11907 = shalt.err (!%p11904_p13)
}
  0x9b   :  { %194 = dma.hbm_to_vmem [thread:$0]  %s14235_s15, 16, %s192_s28, [#allocation23]  }
  0x9c   :  { %s14265_s11 = sld [smem:[#allocation37_spill]] }
  0xa2   :  { %s11908_s1 = scalar_lea.hbm %s14265_s11, 960 }
  0xa3   :  { %p11909_p0 = scmp.ne.s32.totalorder %s14265_s11, %s11908_s1  ;;  %p11912_p1 = scmp.lt.u32.totalorder %s11908_s1, %s14265_s11 }
  0xa5   :  { %p11914_p2 = pnand %p11912_p1, %p11909_p0 }
  0xa7   :  { %11917 = shalt.err (!%p11914_p2)
}
  0xa8   :  { %s11918_s4 = scalar_lea.vmem %s12339_s5, 960  ;;  %p11923_p4 = scmp.lt.s32.totalorder %s12339_s5, %s12339_s5 }
  0xa9   :  { %p11919_p3 = scmp.ne.s32.totalorder %s12339_s5, %s11918_s4  ;;  %p11924_p5 = scmp.lt.s32.totalorder %s11918_s4, %s11918_s4 }
  0xab   :  { %p11925_p6 = por %p11924_p5, %p11923_p4 }
  0xad   :  { %p11926_p7 = pnand %p11925_p6, %p11919_p3 }
  0xaf   :  { %11929 = shalt.err (!%p11926_p7)
}
  0xb0   :  { %s12132_s15 = smov 64   ;;  %s12133_s28 = smov 4  }
  0xb1   :  { %50 = dma.hbm_to_vmem [thread:$0]  %s14265_s11, 960, %s12339_s5, [#allocation3], %s12132_s15, %s12132_s15, %s12133_s28  }
  0xb2   :  { %s12134_s30 = smov [#allocation6]   ;;  %s12135_s13 = smov [#allocation9]  }
  0xb3   :  { %s66_s23 = sshll.u32 %s12134_s30, 4  ;;  %s88_s26 = sshll.u32 %s12135_s13, 4  ;;  %s67_s23 = int_to_ptr.vmem [resolvable:$true] %s66_s23  ;;  %s12373_s26 = int_to_ptr.vmem [resolvable:$true] %s88_s26 }
  0xb4   :  { %s14266_s6 = sld [smem:[#allocation39_spill]] }
  0xba   :  { %s11930_s27 = scalar_lea.hbm %s14266_s6, 2560 }
  0xbb   :  { %p11931_p8 = scmp.ne.s32.totalorder %s14266_s6, %s11930_s27  ;;  %p11934_p9 = scmp.lt.u32.totalorder %s11930_s27, %s14266_s6 }
  0xbd   :  { %p11936_p10 = pnand %p11934_p9, %p11931_p8 }
  0xbf   :  { %11939 = shalt.err (!%p11936_p10)
}
  0xc0   :  { %s11940_s5 = scalar_lea.vmem %s67_s23, 2560  ;;  %p11945_p12 = scmp.lt.s32.totalorder %s67_s23, %s67_s23 }
  0xc1   :  { %p11941_p11 = scmp.ne.s32.totalorder %s67_s23, %s11940_s5  ;;  %p11946_p13 = scmp.lt.s32.totalorder %s11940_s5, %s11940_s5 }
  0xc3   :  { %p11947_p0 = por %p11946_p13, %p11945_p12 }
  0xc5   :  { %p11948_p1 = pnand %p11947_p0, %p11941_p11 }
  0xc7   :  { %11951 = shalt.err (!%p11948_p1)
}
  0xc8   :  { %72 = dma.hbm_to_vmem [thread:$0]  %s14266_s6, 2560, %s67_s23, [#allocation5], %s12132_s15, %s12132_s15, %s12133_s28  }
  0xc9   :  { %s14267_s25 = sld [smem:[#allocation41_spill]] }
  0xcf   :  { %s11952_s30 = scalar_lea.hbm %s14267_s25, 2560 }
  0xd0   :  { %p11953_p2 = scmp.ne.s32.totalorder %s14267_s25, %s11952_s30  ;;  %p11956_p3 = scmp.lt.u32.totalorder %s11952_s30, %s14267_s25 }
  0xd2   :  { %p11958_p4 = pnand %p11956_p3, %p11953_p2 }
  0xd4   :  { %11961 = shalt.err (!%p11958_p4)
}
  0xd5   :  { %s11962_s1 = scalar_lea.vmem %s12373_s26, 2560  ;;  %p11967_p6 = scmp.lt.s32.totalorder %s12373_s26, %s12373_s26 }
  0xd6   :  { %p11963_p5 = scmp.ne.s32.totalorder %s12373_s26, %s11962_s1  ;;  %p11968_p7 = scmp.lt.s32.totalorder %s11962_s1, %s11962_s1 }
  0xd8   :  { %p11969_p8 = por %p11968_p7, %p11967_p6 }
  0xda   :  { %p11970_p9 = pnand %p11969_p8, %p11963_p5 }
  0xdc   :  { %11973 = shalt.err (!%p11970_p9)
}
  0xdd   :  { %94 = dma.hbm_to_vmem [thread:$0]  %s14267_s25, 2560, %s12373_s26, [#allocation8], %s12132_s15, %s12132_s15, %s12133_s28  }
  0xde   :  { %s12136_s7 = smov [#allocation12]   ;;  %s12137_s29 = smov [#allocation15]  }
  0xdf   :  { %s110_s8 = sshll.u32 %s12136_s7, 4  ;;  %s132_s5 = sshll.u32 %s12137_s29, 4  ;;  %s111_s8 = int_to_ptr.vmem [resolvable:$true] %s110_s8  ;;  %s12410_s5 = int_to_ptr.vmem [resolvable:$true] %s132_s5 }
  0xe0   :  { %s14268_s4 = sld [smem:[#allocation43_spill]] }
  0xe6   :  { %s11974_s2 = scalar_lea.hbm %s14268_s4, 2560 }
  0xe7   :  { %p11975_p10 = scmp.ne.s32.totalorder %s14268_s4, %s11974_s2  ;;  %p11978_p11 = scmp.lt.u32.totalorder %s11974_s2, %s14268_s4 }
  0xe9   :  { %p11980_p12 = pnand %p11978_p11, %p11975_p10 }
  0xeb   :  { %11983 = shalt.err (!%p11980_p12)
}
  0xec   :  { %s11984_s26 = scalar_lea.vmem %s111_s8, 2560  ;;  %p11989_p0 = scmp.lt.s32.totalorder %s111_s8, %s111_s8 }
  0xed   :  { %p11985_p13 = scmp.ne.s32.totalorder %s111_s8, %s11984_s26  ;;  %p11990_p1 = scmp.lt.s32.totalorder %s11984_s26, %s11984_s26 }
  0xef   :  { %p11991_p2 = por %p11990_p1, %p11989_p0 }
  0xf1   :  { %p11992_p3 = pnand %p11991_p2, %p11985_p13 }
  0xf3   :  { %11995 = shalt.err (!%p11992_p3)
}
  0xf4   :  { %116 = dma.hbm_to_vmem [thread:$0]  %s14268_s4, 2560, %s111_s8, [#allocation11], %s12132_s15, %s12132_s15, %s12133_s28  }
  0xf5   :  { %s11996_s6 = scalar_lea.hbm %s14229_s9, 448 }
  0xf6   :  { %p11997_p4 = scmp.ne.s32.totalorder %s14229_s9, %s11996_s6  ;;  %p12000_p5 = scmp.lt.u32.totalorder %s11996_s6, %s14229_s9 }
  0xf8   :  { %p12002_p6 = pnand %p12000_p5, %p11997_p4 }
  0xfa   :  { %12005 = shalt.err (!%p12002_p6)
}
  0xfb   :  { %s12006_s2 = scalar_lea.vmem %s12410_s5, 448  ;;  %p12011_p8 = scmp.lt.s32.totalorder %s12410_s5, %s12410_s5 }
  0xfc   :  { %p12007_p7 = scmp.ne.s32.totalorder %s12410_s5, %s12006_s2  ;;  %p12012_p9 = scmp.lt.s32.totalorder %s12006_s2, %s12006_s2 }
  0xfe   :  { %p12013_p10 = por %p12012_p9, %p12011_p8 }
 0x100   :  { %p12014_p11 = pnand %p12013_p10, %p12007_p7 }
 0x102   :  { %12017 = shalt.err (!%p12014_p11)
}
 0x103   :  { %138 = dma.hbm_to_vmem [thread:$0]  %s14229_s9, 448, %s12410_s5, [#allocation14], %s12132_s15, %s12132_s15, %s12133_s28  }
 0x104   :  { %s12138_s30 = smov [#allocation18]   ;;  %s12139_s0 = smov [#allocation21]  }
 0x105   :  { %s156_s13 = sshll.u32 %s12138_s30, 4  ;;  %s178_s24 = sshll.u32 %s12139_s0, 4  ;;  %s157_s13 = int_to_ptr.vmem [resolvable:$true] %s156_s13  ;;  %s12447_s24 = int_to_ptr.vmem [resolvable:$true] %s178_s24 }
 0x106   :  { %s12018_s27 = scalar_lea.hbm %s14232_s12, 5120 }
 0x107   :  { %p12019_p12 = scmp.ne.s32.totalorder %s14232_s12, %s12018_s27  ;;  %p12022_p13 = scmp.lt.u32.totalorder %s12018_s27, %s14232_s12 }
 0x109   :  { %p12024_p0 = pnand %p12022_p13, %p12019_p12 }
 0x10b   :  { %12027 = shalt.err (!%p12024_p0)
}
 0x10c   :  { %s12028_s9 = scalar_lea.vmem %s157_s13, 5120  ;;  %p12033_p2 = scmp.lt.s32.totalorder %s157_s13, %s157_s13 }
 0x10d   :  { %p12029_p1 = scmp.ne.s32.totalorder %s157_s13, %s12028_s9  ;;  %p12034_p3 = scmp.lt.s32.totalorder %s12028_s9, %s12028_s9 }
 0x10f   :  { %p12035_p4 = por %p12034_p3, %p12033_p2 }
 0x111   :  { %p12036_p5 = pnand %p12035_p4, %p12029_p1 }
 0x113   :  { %12039 = shalt.err (!%p12036_p5)
}
 0x114   :  { %162 = dma.hbm_to_vmem [thread:$0]  %s14232_s12, 5120, %s157_s13, [#allocation17], %s12132_s15, %s12132_s15, %s12133_s28  }
 0x115   :  { %s12040_s2 = scalar_lea.hbm %s14234_s14, 5120 }
 0x116   :  { %p12041_p6 = scmp.ne.s32.totalorder %s14234_s14, %s12040_s2  ;;  %p12044_p7 = scmp.lt.u32.totalorder %s12040_s2, %s14234_s14 }
 0x118   :  { %p12046_p8 = pnand %p12044_p7, %p12041_p6 }
 0x11a   :  { %12049 = shalt.err (!%p12046_p8)
}
 0x11b   :  { %s12050_s26 = scalar_lea.vmem %s12447_s24, 5120  ;;  %p12055_p10 = scmp.lt.s32.totalorder %s12447_s24, %s12447_s24 }
 0x11c   :  { %p12051_p9 = scmp.ne.s32.totalorder %s12447_s24, %s12050_s26  ;;  %p12056_p11 = scmp.lt.s32.totalorder %s12050_s26, %s12050_s26 }
 0x11e   :  { %p12057_p12 = por %p12056_p11, %p12055_p10 }
 0x120   :  { %p12058_p13 = pnand %p12057_p12, %p12051_p9 }
 0x122   :  { %12061 = shalt.err (!%p12058_p13)
}
 0x123   :  { %184 = dma.hbm_to_vmem [thread:$0]  %s14234_s14, 5120, %s12447_s24, [#allocation20], %s12132_s15, %s12132_s15, %s12133_s28  }
 0x124   :  { %s12140_s25 = smov [#allocation24]   ;;  %s12062_s6 = scalar_lea.hbm %s14236_s16, 10240 }
 0x125   :  { %s200_s27 = sshll.u32 %s12140_s25, 4  ;;  %p12063_p0 = scmp.ne.s32.totalorder %s14236_s16, %s12062_s6  ;;  %s201_s27 = int_to_ptr.vmem [resolvable:$true] %s200_s27 }
 0x126   :  { %p12066_p1 = scmp.lt.u32.totalorder %s12062_s6, %s14236_s16 }
 0x128   :  { %p12068_p2 = pnand %p12066_p1, %p12063_p0 }
 0x12a   :  { %12071 = shalt.err (!%p12068_p2)
}
 0x12b   :  { %s12072_s11 = scalar_lea.vmem %s201_s27, 10240  ;;  %p12077_p4 = scmp.lt.s32.totalorder %s201_s27, %s201_s27 }
 0x12c   :  { %p12073_p3 = scmp.ne.s32.totalorder %s201_s27, %s12072_s11  ;;  %p12078_p5 = scmp.lt.s32.totalorder %s12072_s11, %s12072_s11 }
 0x12e   :  { %p12079_p6 = por %p12078_p5, %p12077_p4 }
 0x130   :  { %p12080_p7 = pnand %p12079_p6, %p12073_p3 }
 0x132   :  { %12083 = shalt.err (!%p12080_p7)
}
 0x133   :  { %s12141_s14 = smov 128   ;;  %s12142_s15 = smov 8  }
 0x134   :  { %206 = dma.hbm_to_vmem [thread:$0]  %s14236_s16, 10240, %s201_s27, [#allocation23], %s12141_s14, %s12141_s14, %s12142_s15  }
 0x135   :  { %s12143_s3 = smov [#allocation25]   ;;  %s12084_s30 = scalar_lea.hbm %s14239_s19, 20480 }
 0x136   :  { %s216_s2 = sshll.u32 %s12143_s3, 4  ;;  %p12085_p8 = scmp.ne.s32.totalorder %s14239_s19, %s12084_s30  ;;  %s217_s2 = int_to_ptr.vmem [resolvable:$true] %s216_s2 }
 0x137   :  { %p12088_p9 = scmp.lt.u32.totalorder %s12084_s30, %s14239_s19 }
 0x139   :  { %p12090_p10 = pnand %p12088_p9, %p12085_p8 }
 0x13b   :  { %12093 = shalt.err (!%p12090_p10)
}
 0x13c   :  { %s12094_s25 = scalar_lea.vmem %s217_s2, 20480  ;;  %p12099_p12 = scmp.lt.s32.totalorder %s217_s2, %s217_s2 }
 0x13d   :  { %p12095_p11 = scmp.ne.s32.totalorder %s217_s2, %s12094_s25  ;;  %p12100_p13 = scmp.lt.s32.totalorder %s12094_s25, %s12094_s25 }
 0x13f   :  { %p12101_p0 = por %p12100_p13, %p12099_p12 }
 0x141   :  { %p12102_p1 = pnand %p12101_p0, %p12095_p11 }
 0x143   :  { %12105 = shalt.err (!%p12102_p1)
}
 0x144   :  { %222 = dma.hbm_to_vmem [thread:$0]  %s14239_s19, 20480, %s217_s2, [#allocation26], %s12141_s14, %s12141_s14, %s12142_s15  }
 0x145   :  { %12106 = dma.done.wait [#allocation3], 960  }
 0x146   :  { %12107 = vsyncadd [#allocation3], 4294966336 }
 0x147   :  { %12108 = dma.done.wait [#allocation5], 2576  }
 0x148   :  { %12109 = vsyncadd [#allocation5], 4294964720 }
 0x149   :  { %12110 = dma.done.wait [#allocation8], 2576  }
 0x14a   :  { %12111 = vsyncadd [#allocation8], 4294964720 }
 0x14b   :  { %12112 = dma.done.wait [#allocation11], 2576  }
 0x14c   :  { %12113 = vsyncadd [#allocation11], 4294964720 }
 0x14d   :  { %12114 = dma.done.wait [#allocation14], 464  }
 0x14e   :  { %12115 = vsyncadd [#allocation14], 4294966832 }
 0x14f   :  { %12116 = dma.done.wait [#allocation17], 5136  }
 0x150   :  { %12117 = vsyncadd [#allocation17], 4294962160 }
 0x151   :  { %12118 = dma.done.wait [#allocation20], 5136  }
 0x152   :  { %12119 = vsyncadd [#allocation20], 4294962160 }
 0x153   :  { %12120 = dma.done.wait [#allocation23], 10256  }
 0x154   :  { %12121 = vsyncadd [#allocation23], 4294957040 }
 0x155   :  { %12122 = dma.done.wait [#allocation26], 20480  }
 0x156   :  { %12123 = vsyncadd [#allocation26], 4294946816  ;;  %v11182_v0 = vld [vmem:[#allocation2 + $0xc] sm:$0xff]   ;;  %v11183_v1 = vld [vmem:[#allocation2 + $0x14] ss:$0 sps:$4 sm:$0xff]   ;;  %vm407_vm0 = vcmask 1043456  }
 0x157   :  { %s14269_s23 = sld [smem:[#allocation36_spill]]  ;;  %9980 = vmatprep.subr.bf16.mxu0 %v11182_v0  ;;  %vm309_vm1 = vsmask.f32 7424  ;;  %v409_v10 = vsel %vm407_vm0, %v11183_v1, 0  ;;  %vm382_vm2 = vcmask 195584   ;;  %v11184_v12 = vld [vmem:[#allocation2] sm:$0xff]  }
 0x158   :  { %9981 = vmatpush3.bf16.msra.mxu0 %v11182_v0  ;;  %v11185_v41 = vld [vmem:[#allocation2 + $0x8] ss:$0 sps:$4 sm:$0xff]   ;;  %vm645_vm3 = vcmask 1046528   ;;  %v12599_v52 = vld [vmem:[#allocation2 + $0x20] ss:$0 sps:$4 sm:$0xff]   ;;  %v12614_v63 = vld [vmem:[#allocation2 + $0x18] sm:$0xff]  }
 0x159   :  { %11154 = vmatprep.subr.msk.bf16.mxu0 %vm407_vm0, %v11183_v1  ;;  %v534_v59 = vsel %vm407_vm0, %v11185_v41, 0  ;;  %v12618_v0 = vsel %vm407_vm0, %v12599_v52, 0  ;;  %vm814_vm4 = vsmask.f32 6400  ;;  %vm999_vm5 = vcmask 1045504   ;;  %s14270_s27 = sld [smem:[#allocation44_spill]] }
 0x15a   :  { %vm1315_vm6 = vcmask 523264   ;;  %vm12145_vm7 = vmmov 0   ;;  %vm4115_vm8 = vcmask 916480   ;;  %vm7325_vm9 = vcmask 326656  }
 0x15b   :  { %vm8850_vm10 = vcmask 31744  }
 0x15c   :  { %9983 = vmatpush3.bf16.msra.mxu0 %v409_v10 }
 0x15d   :  { %v278_v2 = vld [vmem:[%s14269_s23] sm:$0xff]  ;;  %v279_v3 = vld [vmem:[%s14269_s23 + $0x8] sm:$0xff]  ;;  %v280_v4 = vld [vmem:[%s14269_s23 + $0x10] sm:$0xff]  ;;  %10000 = vmatprep.subr.bf16.mxu0 %v11184_v12 }
 0x15e   :  { %v281_v5 = vld [vmem:[%s14269_s23 + $0x18] sm:$0xff]  ;;  %v12520_v6 = vpack.c.bf16 %v279_v3, %v278_v2  ;;  %v282_v8 = vld [vmem:[%s14269_s23 + $0x20] sm:$0xff]  ;;  %v283_v9 = vld [vmem:[%s14269_s23 + $0x28] sm:$0xff] }
 0x15f   :  { %v12522_v7 = vpack.c.bf16 %v281_v5, %v280_v4  ;;  %v12532_v11 = vpack.c.bf16 %v283_v9, %v282_v8  ;;  %v284_v13 = vld [vmem:[%s14269_s23 + $0x30] sm:$0xff]  ;;  %v285_v18 = vld [vmem:[%s14269_s23 + $0x38] sm:$0xff]  ;;  %v286_v19 = vld [vmem:[%s14269_s23 + $0x40] sm:$0xff] }
 0x160   :  { %v311_v14 = vshrl.u32 %v12520_v6, 16  ;;  %v313_v15 = vshll.u32 %v12520_v6, 16  ;;  %v12548_v21 = vpack.c.bf16 %v285_v18, %v284_v13  ;;  %v287_v23 = vld [vmem:[%s14269_s23 + $0x48] sm:$0xff]  ;;  %v288_v24 = vld [vmem:[%s14269_s23 + $0x50] sm:$0xff]  ;;  %v289_v25 = vld [vmem:[%s14269_s23 + $0x58] sm:$0xff]  ;;  %v646_v26 = vrot.slane %v12520_v6, 1 }
 0x161   :  { %v318_v16 = vshll.u32 %v12522_v7, 16  ;;  %v322_v17 = vshrl.u32 %v12522_v7, 16  ;;  %v326_v20 = vshll.u32 %v12532_v11, 16  ;;  %v330_v22 = vshrl.u32 %v12532_v11, 16  ;;  %v290_v31 = vld [vmem:[%s14269_s23 + $0x60] sm:$0xff]  ;;  %v291_v32 = vld [vmem:[%s14269_s23 + $0x68] sm:$0xff] }
 0x162   :  { %v315_v27 = vrot.slane %v313_v15, 1  ;;  %v12563_v29 = vrot.slane %v311_v14, 1  ;;  %v334_v35 = vshll.u32 %v12548_v21, 16  ;;  %v12580_v39 = vpack.c.bf16 %v287_v23, %v286_v19  ;;  %v292_v42 = vld [vmem:[%s14269_s23 + $0x70] sm:$0xff]  ;;  %v293_v47 = vld [vmem:[%s14269_s23 + $0x78] sm:$0xff] }
 0x163   :  { %v320_v28 = vrot.slane %v318_v16, 1  ;;  %v12565_v30 = vrot.slane %v318_v16, 2  ;;  %v328_v33 = vrot.slane %v326_v20, 1  ;;  %v12573_v34 = vrot.slane %v326_v20, 2  ;;  %v12624_v9 = vld [vmem:[#allocation2 + $0x2c] ss:$0 sps:$4 sm:$0xff]  }
 0x164   :  { %v12576_v36 = vrot.slane %v330_v22, 1  ;;  %v316_v37 = vor.u32 %v315_v27, %v311_v14  ;;  %v338_v40 = vshrl.u32 %v12548_v21, 16  ;;  %v336_v44 = vrot.slane %v334_v35, 1  ;;  %v12644_v27 = vld [vmem:[#allocation2 + $0x38] ss:$0 sps:$4 sm:$0xff]  }
 0x165   :  { %v324_v38 = vor.u32 %v322_v17, %v320_v28  ;;  %v332_v43 = vor.u32 %v330_v22, %v328_v33  ;;  %v12588_v45 = vpack.c.bf16 %v289_v25, %v288_v24  ;;  %v12590_v46 = vpack.c.bf16 %v291_v32, %v290_v31 }
 0x166   :  { %v321_v48 = vsel %vm309_vm1, %v316_v37, %v320_v28  ;;  %v342_v50 = vshll.u32 %v12580_v39, 16  ;;  %v346_v51 = vshrl.u32 %v12580_v39, 16  ;;  %v340_v54 = vor.u32 %v338_v40, %v336_v44 }
 0x167   :  { %v329_v49 = vsel %vm309_vm1, %v324_v38, %v328_v33  ;;  %9984 = vmatprep.mubr.msk.bf16.mxu0 %vm382_vm2, %v321_v48  ;;  %v337_v53 = vsel %vm309_vm1, %v332_v43, %v336_v44  ;;  %v350_v55 = vshll.u32 %v12588_v45, 16  ;;  %v354_v56 = vshrl.u32 %v12588_v45, 16 }
 0x168   :  { %9985 = vmatmul.mubr.msk.bf16.vlgmr.msra.gmra.mrb[0].mxu0 %vm382_vm2, %v329_v49  ;;  %v344_v57 = vrot.slane %v342_v50, 1  ;;  %v358_v58 = vshll.u32 %v12590_v46, 16  ;;  %v12610_v60 = vpack.c.bf16 %v293_v47, %v292_v42  ;;  %v362_v62 = vshrl.u32 %v12590_v46, 16 }
 0x169   :  { %10001 = vmatpush3.bf16.msra.mxu0 %v11184_v12  ;;  %9988 = vmatprep.mubr.msk.bf16.mxu0 %vm382_vm2, %v337_v53  ;;  %v352_v61 = vrot.slane %v350_v55, 1  ;;  %v647_v1 = vrot.slane %v12522_v7, 1  ;;  %v649_v13 = vrot.slane %v12532_v11, 1  ;;  %v651_v14 = vrot.slane %v12548_v21, 1 }
 0x16a   :  { %v348_v2 = vor.u32 %v346_v51, %v344_v57  ;;  %v360_v3 = vrot.slane %v358_v58, 1  ;;  %11155 = vmatprep.subr.msk.bf16.mxu0 %vm407_vm0, %v11185_v41  ;;  %v366_v4 = vshll.u32 %v12610_v60, 16  ;;  %v370_v8 = vshrl.u32 %v12610_v60, 16 }
 0x16b   :  { %v356_v5 = vor.u32 %v354_v56, %v352_v61  ;;  %v345_v16 = vsel %vm309_vm1, %v340_v54, %v344_v57  ;;  %v653_v19 = vrot.slane %v12580_v39, 1  ;;  %v655_v20 = vrot.slane %v12588_v45, 1 }
 0x16c   :  { %v364_v10 = vor.u32 %v362_v62, %v360_v3  ;;  %v12626_v12 = vrot.slane %v366_v4, 1  ;;  %v353_v18 = vsel %vm309_vm1, %v348_v2, %v352_v61  ;;  %v12641_v24 = vsel %vm645_vm3, %v649_v13, %v651_v14 }
 0x16d   :  { %10003 = vmatpush3.bf16.msra.mxu0 %v534_v59  ;;  %v361_v22 = vsel %vm309_vm1, %v356_v5, %v360_v3  ;;  %v657_v25 = vrot.slane %v12590_v46, 1  ;;  %v12647_v28 = vsel %vm645_vm3, %v651_v14, %v653_v19  ;;  %v12650_v31 = vsel %vm645_vm3, %v653_v19, %v655_v20 }
 0x16e   :  { %v369_v23 = vsel %vm309_vm1, %v364_v10, %v12626_v12  ;;  %10020 = vmatprep.subr.bf16.mxu0 %v12614_v63  ;;  %v12654_v32 = vsel %vm407_vm0, %v12624_v9, 0  ;;  %v659_v33 = vrot.slane %v12610_v60, 1  ;;  %v816_v38 = vrot.slane %v313_v15, 2 }
 0x16f   :  { %v12659_v37 = vsel %vm645_vm3, %v655_v20, %v657_v25  ;;  %v818_v41 = vrot.slane %v322_v17, 1  ;;  %v824_v42 = vor.u32 %v12573_v34, %v12576_v36  ;;  %v826_v44 = vrot.slane %v338_v40, 1 }
 0x170   :  { %9989 = vmatmul.mubr.msk.bf16.gmra.mrb[4].mxu0 %vm382_vm2, %v345_v16  ;;  %v12671_v43 = vsel %vm645_vm3, %v657_v25, %v659_v33  ;;  %v827_v47 = vrot.slane %v334_v35, 2  ;;  %v830_v15 = vrot.slane %v346_v51, 1  ;;  %v817_v48 = vor.u32 %v816_v38, %v12563_v29 }
 0x171   :  { %9992 = vmatprep.mubr.msk.bf16.mxu0 %vm382_vm2, %v353_v18  ;;  %v820_v17 = vor.u32 %v12565_v30, %v818_v41  ;;  %v831_v49 = vrot.slane %v342_v50, 2  ;;  %v834_v34 = vrot.slane %v354_v56, 1  ;;  %v835_v53 = vrot.slane %v350_v55, 2 }
 0x172   :  { %v828_v36 = vor.u32 %v827_v47, %v826_v44  ;;  %v838_v54 = vrot.slane %v362_v62, 1  ;;  %v839_v57 = vrot.slane %v358_v58, 2  ;;  %v12683_v40 = vsel %vm407_vm0, %v12644_v27, 0 }
 0x173   :  { %v821_v59 = vsel %vm814_vm4, %v817_v48, %v820_v17  ;;  %v825_v61 = vsel %vm814_vm4, %v820_v17, %v824_v42  ;;  %v832_v2 = vor.u32 %v831_v49, %v830_v15  ;;  %v836_v29 = vor.u32 %v835_v53, %v834_v34  ;;  %v11188_v15 = vld [vmem:[#allocation2 + $0x24] sm:$0xff]  }
 0x174   :  { %v829_v35 = vsel %vm814_vm4, %v824_v42, %v828_v36  ;;  %v840_v51 = vor.u32 %v839_v57, %v838_v54  ;;  %v842_v30 = vrot.slane %v370_v8, 1  ;;  %v843_v55 = vrot.slane %v366_v4, 2 }
 0x175   :  { %v833_v50 = vsel %vm814_vm4, %v828_v36, %v832_v2  ;;  %v1000_v56 = vrot.slane %v12520_v6, 2  ;;  %v837_v58 = vsel %vm814_vm4, %v832_v2, %v836_v29  ;;  %v1001_v3 = vrot.slane %v12522_v7, 2 }
 0x176   :  { %v841_v62 = vsel %vm814_vm4, %v836_v29, %v840_v51  ;;  %v1003_v5 = vrot.slane %v12532_v11, 2  ;;  %v844_v10 = vor.u32 %v843_v55, %v842_v30  ;;  %v1005_v14 = vrot.slane %v12548_v21, 2 }
 0x177   :  { %v1007_v16 = vrot.slane %v12580_v39, 2  ;;  %v1009_v4 = vrot.slane %v12588_v45, 2  ;;  %v1002_v18 = vsel %vm999_vm5, %v1000_v56, %v1001_v3  ;;  %v1011_v20 = vrot.slane %v12590_v46, 2 }
 0x178   :  { %9993 = vmatmul.mubr.msk.bf16.gmra.mrb[8].mxu0 %vm382_vm2, %v361_v22  ;;  %v1004_v19 = vsel %vm999_vm5, %v1001_v3, %v1003_v5  ;;  %v1013_v25 = vrot.slane %v12610_v60, 2  ;;  %v845_v38 = vsel %vm814_vm4, %v840_v51, %v844_v10  ;;  %v1006_v22 = vsel %vm999_vm5, %v1003_v5, %v1005_v14 }
 0x179   :  { %9996 = vmatprep.mubr.msk.bf16.mxu0 %vm382_vm2, %v369_v23  ;;  %v1008_v41 = vsel %vm999_vm5, %v1005_v14, %v1007_v16  ;;  %v1010_v42 = vsel %vm999_vm5, %v1007_v16, %v1009_v4  ;;  %v1012_v44 = vsel %vm999_vm5, %v1009_v4, %v1011_v20  ;;  %v372_v47 = vor.u32 %v370_v8, %v12626_v12 }
 0x17a   :  { %v1014_v23 = vsel %vm999_vm5, %v1011_v20, %v1013_v25 }
 0x180   :  { %9997 = vmatmul.mubr.msk.bf16.gmra.mrb[12].mxu0 %vm382_vm2, %v372_v47 }
 0x181   :  { %10004 = vmatprep.mubr.msk.bf16.mxu0 %vm382_vm2, %v12520_v6  ;;  %v11192_v6 = vld [vmem:[#allocation6 + $0x20] sm:$0xff]  }
 0x182   :  { %10922 = vmatprep.subr.bf16.mxu1 %v11192_v6 }
 0x183   :  { %10926 = vmatpush3.bf16.msra.mxu1 %v11192_v6 }
 0x188   :  { %10005 = vmatmul.mubr.msk.bf16.vlgmr.msra.gmra.mrb[0].mxu0 %vm382_vm2, %v12522_v7  ;;  %v11193_v7 = vld [vmem:[#allocation6 + $0x28] sm:$0xff]  }
 0x189   :  { %10021 = vmatpush3.bf16.msra.mxu0 %v12614_v63  ;;  %10008 = vmatprep.mubr.msk.bf16.mxu0 %vm382_vm2, %v12532_v11  ;;  %v11194_v11 = vld [vmem:[#allocation6 + $0x30] sm:$0xff]  }
 0x18a   :  { %11156 = vmatprep.subr.msk.bf16.mxu0 %vm407_vm0, %v12599_v52  ;;  %v648_v52 = vsel %vm645_vm3, %v646_v26, %v647_v1  ;;  %10923 = vmatprep.subr.bf16.mxu1 %v11193_v7  ;;  %v11195_v26 = vld [vmem:[#allocation6 + $0x38] sm:$0xff]  }
 0x18b   :  { %10927 = vmatpush3.bf16.msra.mxu1 %v11193_v7 }
 0x18c   :  { %10924 = vmatprep.subr.bf16.mxu1 %v11194_v11 }
 0x18d   :  { %10023 = vmatpush3.bf16.msra.mxu0 %v12618_v0 }
 0x18e   :  { %10040 = vmatprep.subr.bf16.mxu0 %v11188_v15 }
 0x18f   :  { %10928 = vmatpush3.bf16.msra.mxu1 %v11194_v11 }
 0x190   :  { %10009 = vmatmul.mubr.msk.bf16.gmra.mrb[4].mxu0 %vm382_vm2, %v12548_v21  ;;  %v650_v21 = vsel %vm645_vm3, %v647_v1, %v649_v13  ;;  %10925 = vmatprep.subr.bf16.mxu1 %v11195_v26 }
 0x191   :  { %10012 = vmatprep.mubr.msk.bf16.mxu0 %vm382_vm2, %v12580_v39  ;;  %v11190_v39 = vld [vmem:[#allocation2 + $0x30] sm:$0xff]  }
 0x193   :  { %10929 = vmatpush3.bf16.msra.mxu1 %v11195_v26 }
 0x198   :  { %10013 = vmatmul.mubr.msk.bf16.gmra.mrb[8].mxu0 %vm382_vm2, %v12588_v45  ;;  %v12780_v45 = vld [vmem:[#allocation6] sm:$0xff]  }
 0x199   :  { %10016 = vmatprep.mubr.msk.bf16.mxu0 %vm382_vm2, %v12590_v46  ;;  %10104 = vmatprep.subr.bf16.mxu1 %v12780_v45  ;;  %v12783_v46 = vld [vmem:[#allocation4] ss:$0 sm:$0xff] }
 0x1a0   :  { %10017 = vmatmul.mubr.msk.bf16.gmra.mrb[12].mxu0 %vm382_vm2, %v12610_v60 }
 0x1a1   :  { %10024 = vmatprep.mubr.msk.bf16.mxu0 %vm382_vm2, %v648_v52 }
 0x1a8   :  { %10025 = vmatmul.mubr.msk.bf16.vlgmr.msra.gmra.mrb[0].mxu0 %vm382_vm2, %v650_v21 }
 0x1a9   :  { %10041 = vmatpush3.bf16.msra.mxu0 %v11188_v15  ;;  %10028 = vmatprep.mubr.msk.bf16.mxu0 %vm382_vm2, %v12641_v24 }
 0x1aa   :  { %11157 = vmatprep.subr.msk.bf16.mxu0 %vm407_vm0, %v12624_v9 }
 0x1ad   :  { %10043 = vmatpush3.bf16.msra.mxu0 %v12654_v32 }
 0x1ae   :  { %10060 = vmatprep.subr.bf16.mxu0 %v11190_v39 }
 0x1b0   :  { %10029 = vmatmul.mubr.msk.bf16.gmra.mrb[4].mxu0 %vm382_vm2, %v12647_v28 }
 0x1b1   :  { %10032 = vmatprep.mubr.msk.bf16.mxu0 %vm382_vm2, %v12650_v31 }
 0x1b8   :  { %10033 = vmatmul.mubr.msk.bf16.gmra.mrb[8].mxu0 %vm382_vm2, %v12659_v37 }
 0x1b9   :  { %10036 = vmatprep.mubr.msk.bf16.mxu0 %vm382_vm2, %v12671_v43 }
 0x1c0   :  { %10037 = vmatmul.mubr.msk.bf16.gmra.mrb[12].mxu0 %vm382_vm2, %v659_v33 }
 0x1c1   :  { %10044 = vmatprep.mubr.msk.bf16.mxu0 %vm382_vm2, %v821_v59 }
 0x1c8   :  { %10045 = vmatmul.mubr.msk.bf16.vlgmr.msra.gmra.mrb[0].mxu0 %vm382_vm2, %v825_v61 }
 0x1c9   :  { %10061 = vmatpush3.bf16.msra.mxu0 %v11190_v39  ;;  %10048 = vmatprep.mubr.msk.bf16.mxu0 %vm382_vm2, %v829_v35 }
 0x1ca   :  { %11158 = vmatprep.subr.msk.bf16.mxu0 %vm407_vm0, %v12644_v27 }
 0x1cd   :  { %10063 = vmatpush3.bf16.msra.mxu0 %v12683_v40 }
 0x1ce   :  { %10080 = vmatprep.subr.bf16.mxu0 %v11192_v6 }
 0x1d0   :  { %10049 = vmatmul.mubr.msk.bf16.gmra.mrb[4].mxu0 %vm382_vm2, %v833_v50 }
 0x1d1   :  { %10052 = vmatprep.mubr.msk.bf16.mxu0 %vm382_vm2, %v837_v58 }
 0x1d8   :  { %10053 = vmatmul.mubr.msk.bf16.gmra.mrb[8].mxu0 %vm382_vm2, %v841_v62 }
 0x1d9   :  { %10056 = vmatprep.mubr.msk.bf16.mxu0 %vm382_vm2, %v845_v38 }
 0x1e0   :  { %10057 = vmatmul.mubr.msk.bf16.gmra.mrb[12].mxu0 %vm382_vm2, %v844_v10 }
 0x1e1   :  { %10064 = vmatprep.mubr.msk.bf16.mxu0 %vm382_vm2, %v1002_v18 }
 0x1e8   :  { %10065 = vmatmul.mubr.msk.bf16.vlgmr.msra.gmra.mrb[0].mxu0 %vm382_vm2, %v1004_v19 }
 0x1e9   :  { %10068 = vmatprep.mubr.msk.bf16.mxu0 %vm382_vm2, %v1006_v22  ;;  %10081 = vmatpush3.bf16.msra.mxu0 %v11192_v6 }
 0x1ea   :  { %10082 = vmatprep.subr.bf16.mxu0 %v11193_v7 }
 0x1ed   :  { %10083 = vmatpush3.bf16.msra.mxu0 %v11193_v7 }
 0x1ee   :  { %10084 = vmatprep.subr.bf16.mxu0 %v11194_v11 }
 0x1f0   :  { %10069 = vmatmul.mubr.msk.bf16.gmra.mrb[4].mxu0 %vm382_vm2, %v1008_v41 }
 0x1f1   :  { %10072 = vmatprep.mubr.msk.bf16.mxu0 %vm382_vm2, %v1010_v42  ;;  %10085 = vmatpush3.bf16.msra.mxu0 %v11194_v11 }
 0x1f2   :  { %10086 = vmatprep.subr.bf16.mxu0 %v11195_v26 }
 0x1f5   :  { %10087 = vmatpush3.bf16.msra.mxu0 %v11195_v26 }
 0x1f8   :  { %10073 = vmatmul.mubr.msk.bf16.gmra.mrb[8].mxu0 %vm382_vm2, %v1012_v44 }
 0x1f9   :  { %10076 = vmatprep.mubr.msk.bf16.mxu0 %vm382_vm2, %v1014_v23 }
 0x200   :  { %10077 = vmatmul.mubr.msk.bf16.gmra.mrb[12].mxu0 %vm382_vm2, %v1013_v25 }
 0x2bb   :  { %v10066_v60 = vpop.f32.mrb[0].mxu0 }
 0x2bc   :  { %v1173_v63 = vadd.f32 %v10066_v60, %v12783_v46  ;;  %v1085_v0 = vpop.f32.mrb[1].mxu0 }
 0x2bd   :  { %v1171_v1 = vadd.f32 %v12783_v46, %v1085_v0  ;;  %v10067_v8 = vpop.f32.mrb[2].mxu0 }
 0x2be   :  { %v1174_v9 = vadd.f32 %v10067_v8, %v12783_v46  ;;  %v1088_v12 = vpop.f32.mrb[3].mxu0  ;;  %v1189_v24 = vmax.f32 %v1173_v63, 0.0 }
 0x2bf   :  { %v1172_v13 = vadd.f32 %v12783_v46, %v1088_v12  ;;  %v1187_v28 = vmax.f32 %v1171_v1, 0.0 }
 0x2c0   :  { %v1190_v27 = vmax.f32 %v1174_v9, 0.0 }
 0x2c1   :  { %v1188_v31 = vmax.f32 %v1172_v13, 0.0 }
 0x2c2   :  { %v12789_v32 = vpack.c.bf16 %v1190_v27, %v1189_v24 }
 0x2c3   :  { %v12791_v33 = vpack.c.bf16 %v1188_v31, %v1187_v28  ;;  %v10070_v37 = vpop.f32.mrb[4].mxu0 }
 0x2c4   :  { %v1177_v43 = vadd.f32 %v10070_v37, %v12783_v46  ;;  %v1101_v48 = vpop.f32.mrb[5].mxu0  ;;  %v1236_v17 = vshll.u32 %v12789_v32, 16  ;;  %v1240_v49 = vshrl.u32 %v12789_v32, 16  ;;  %v1590_v34 = vrot.slane %v12789_v32, 1 }
 0x2c5   :  { %v1175_v36 = vadd.f32 %v12783_v46, %v1101_v48  ;;  %v10071_v53 = vpop.f32.mrb[6].mxu0  ;;  %v1229_v54 = vshrl.u32 %v12791_v33, 16  ;;  %v1231_v57 = vshll.u32 %v12791_v33, 16  ;;  %v1589_v59 = vrot.slane %v12791_v33, 1 }
 0x2c6   :  { %v1178_v61 = vadd.f32 %v10071_v53, %v12783_v46  ;;  %v1104_v2 = vpop.f32.mrb[7].mxu0  ;;  %v1238_v40 = vrot.slane %v1236_v17, 1  ;;  %v1775_v30 = vrot.slane %v1240_v49, 1  ;;  %v1193_v50 = vmax.f32 %v1177_v43, 0.0 }
 0x2c7   :  { %v1176_v35 = vadd.f32 %v12783_v46, %v1104_v2  ;;  %v1233_v29 = vrot.slane %v1231_v57, 1  ;;  %v12804_v51 = vsel %vm645_vm3, %v1589_v59, %v1590_v34  ;;  %v1772_v56 = vrot.slane %v1229_v54, 1 }
 0x2c8   :  { %v1194_v55 = vmax.f32 %v1178_v61, 0.0  ;;  %v1773_v58 = vrot.slane %v1231_v57, 2  ;;  %v1191_v62 = vmax.f32 %v1175_v36, 0.0  ;;  %v1776_v10 = vrot.slane %v1236_v17, 2 }
 0x2c9   :  { %v1192_v3 = vmax.f32 %v1176_v35, 0.0  ;;  %v1234_v5 = vor.u32 %v1233_v29, %v1229_v54  ;;  %v1242_v16 = vor.u32 %v1240_v49, %v1238_v40  ;;  %v1971_v38 = vrot.slane %v12791_v33, 2 }
 0x2ca   :  { %v12806_v14 = vpack.c.bf16 %v1194_v55, %v1193_v50  ;;  %v1774_v4 = vor.u32 %v1773_v58, %v1772_v56  ;;  %v12811_v25 = vor.u32 %v1776_v10, %v1775_v30  ;;  %v1972_v23 = vrot.slane %v12789_v32, 2 }
 0x2cb   :  { %v12808_v18 = vpack.c.bf16 %v1192_v3, %v1191_v62  ;;  %v10074_v19 = vpop.f32.mrb[8].mxu0  ;;  %v1239_v20 = vsel %vm309_vm1, %v1234_v5, %v1238_v40 }
 0x2cc   :  { %v1181_v22 = vadd.f32 %v10074_v19, %v12783_v46  ;;  %v1117_v41 = vpop.f32.mrb[9].mxu0  ;;  %10088 = vmatprep.mubr.msk.bf16.mxu0 %vm1315_vm6, %v1239_v20  ;;  %v1252_v42 = vshll.u32 %v12806_v14, 16  ;;  %v1594_v44 = vrot.slane %v12806_v14, 1  ;;  %v1256_v26 = vshrl.u32 %v12806_v14, 16 }
 0x2cd   :  { %v1179_v47 = vadd.f32 %v12783_v46, %v1117_v41  ;;  %v10075_v15 = vpop.f32.mrb[10].mxu0  ;;  %v1244_v52 = vshll.u32 %v12808_v18, 16  ;;  %v1248_v21 = vshrl.u32 %v12808_v18, 16  ;;  %v1592_v39 = vrot.slane %v12808_v18, 1 }
 0x2ce   :  { %v1182_v6 = vadd.f32 %v10075_v15, %v12783_v46  ;;  %v1120_v7 = vpop.f32.mrb[11].mxu0  ;;  %v1254_v11 = vrot.slane %v1252_v42, 1  ;;  %v12827_v60 = vsel %vm814_vm4, %v1774_v4, %v12811_v25  ;;  %v1197_v63 = vmax.f32 %v1181_v22, 0.0 }
 0x2cf   :  { %v1180_v0 = vadd.f32 %v12783_v46, %v1120_v7  ;;  %v1246_v1 = vrot.slane %v1244_v52, 1  ;;  %v1779_v8 = vrot.slane %v1248_v21, 1  ;;  %v1195_v9 = vmax.f32 %v1179_v47, 0.0 }
 0x2d0   :  { %v1198_v12 = vmax.f32 %v1182_v6, 0.0  ;;  %v12831_v13 = vsel %vm645_vm3, %v1590_v34, %v1592_v39  ;;  %v12834_v24 = vsel %vm645_vm3, %v1592_v39, %v1594_v44  ;;  %v1780_v37 = vrot.slane %v1244_v52, 2 }
 0x2d1   :  { %v1196_v27 = vmax.f32 %v1180_v0, 0.0  ;;  %v1247_v28 = vsel %vm309_vm1, %v1242_v16, %v1246_v1  ;;  %v1250_v31 = vor.u32 %v1248_v21, %v1246_v1  ;;  %v1258_v48 = vor.u32 %v1256_v26, %v1254_v11 }
 0x2d2   :  { %v12837_v43 = vpack.c.bf16 %v1198_v12, %v1197_v63  ;;  %10089 = vmatmul.mubr.msk.bf16.vlgmr.msra.gmra.mrb[16].mxu0 %vm1315_vm6, %v1247_v28  ;;  %v1783_v17 = vrot.slane %v1256_v26, 1  ;;  %v12843_v49 = vsel %vm999_vm5, %v1971_v38, %v1972_v23  ;;  %v1781_v54 = vor.u32 %v1780_v37, %v1779_v8 }
 0x2d3   :  { %v12845_v34 = vpack.c.bf16 %v1196_v27, %v1195_v9  ;;  %v10078_v36 = vpop.f32.mrb[12].mxu0  ;;  %v1255_v53 = vsel %vm309_vm1, %v1250_v31, %v1254_v11  ;;  %v1784_v57 = vrot.slane %v1252_v42, 2  ;;  %v1974_v35 = vrot.slane %v12808_v18, 2 }
 0x2d4   :  { %v1185_v59 = vadd.f32 %v10078_v36, %v12783_v46  ;;  %v1133_v61 = vpop.f32.mrb[13].mxu0  ;;  %10092 = vmatprep.mubr.msk.bf16.mxu0 %vm1315_vm6, %v1255_v53  ;;  %v1268_v2 = vshll.u32 %v12837_v43, 16  ;;  %v1598_v40 = vrot.slane %v12837_v43, 1  ;;  %v1272_v10 = vshrl.u32 %v12837_v43, 16 }
 0x2d5   :  { %v1183_v29 = vadd.f32 %v12783_v46, %v1133_v61  ;;  %v10079_v30 = vpop.f32.mrb[14].mxu0  ;;  %v1260_v50 = vshll.u32 %v12845_v34, 16  ;;  %v1264_v55 = vshrl.u32 %v12845_v34, 16  ;;  %v1596_v56 = vrot.slane %v12845_v34, 1 }
 0x2d6   :  { %v1201_v58 = vmax.f32 %v1185_v59, 0.0  ;;  %v1186_v62 = vadd.f32 %v10079_v30, %v12783_v46  ;;  %v1136_v3 = vpop.f32.mrb[15].mxu0  ;;  %v1270_v5 = vrot.slane %v1268_v2, 1  ;;  %v1792_v20 = vrot.slane %v1268_v2, 2  ;;  %v11197_v59 = vld [vmem:[#allocation6 + $0x8] sm:$0xff]  }
 0x2d7   :  { %v1199_v16 = vmax.f32 %v1183_v29, 0.0  ;;  %v1184_v4 = vadd.f32 %v12783_v46, %v1136_v3  ;;  %v1262_v19 = vrot.slane %v1260_v50, 1  ;;  %v1787_v22 = vrot.slane %v1264_v55, 1 }
 0x2d8   :  { %v1202_v38 = vmax.f32 %v1186_v62, 0.0  ;;  %v12861_v41 = vsel %vm645_vm3, %v1594_v44, %v1596_v56  ;;  %v12864_v42 = vsel %vm645_vm3, %v1596_v56, %v1598_v40  ;;  %v12869_v21 = vsel %vm814_vm4, %v12811_v25, %v1781_v54 }
 0x2d9   :  { %v1200_v47 = vmax.f32 %v1184_v4, 0.0  ;;  %v1263_v15 = vsel %vm309_vm1, %v1258_v48, %v1262_v19  ;;  %v1266_v52 = vor.u32 %v1264_v55, %v1262_v19  ;;  %v1785_v46 = vor.u32 %v1784_v57, %v1783_v17 }
 0x2da   :  { %v12871_v39 = vpack.c.bf16 %v1202_v38, %v1201_v58  ;;  %10093 = vmatmul.mubr.msk.bf16.gmra.mrb[20].mxu0 %vm1315_vm6, %v1263_v15  ;;  %v1788_v6 = vrot.slane %v1260_v50, 2  ;;  %v1791_v7 = vrot.slane %v1272_v10, 1  ;;  %v12880_v26 = vsel %vm999_vm5, %v1972_v23, %v1974_v35  ;;  %v11200_v15 = vld [vmem:[#allocation6 + $0x40] sm:$0xff]  }
 0x2db   :  { %v12874_v44 = vpack.c.bf16 %v1200_v47, %v1199_v16  ;;  %v1271_v11 = vsel %vm309_vm1, %v1266_v52, %v1270_v5  ;;  %v1976_v63 = vrot.slane %v12806_v14, 2  ;;  %v12888_v8 = vsel %vm814_vm4, %v1781_v54, %v1785_v46  ;;  %v11199_v47 = vld [vmem:[#allocation6 + $0x18] sm:$0xff]   ;;  %v11201_v52 = vld [vmem:[#allocation6 + $0x48] sm:$0xff]  }
 0x2dc   :  { %10096 = vmatprep.mubr.msk.bf16.mxu1 %vm1315_vm6, %v1271_v11  ;;  %v1284_v25 = vshll.u32 %v12871_v39, 16  ;;  %v1288_v0 = vshrl.u32 %v12871_v39, 16  ;;  %v1602_v1 = vrot.slane %v12871_v39, 1  ;;  %v1789_v27 = vor.u32 %v1788_v6, %v1787_v22  ;;  %v11203_v6 = vld [vmem:[#allocation6 + $0x58] sm:$0xff]   ;;  %v11212_v11 = vld [vmem:[#allocation9 + $0x20] sm:$0xff]  }
 0x2dd   :  { %v1276_v9 = vshll.u32 %v12874_v44, 16  ;;  %v1280_v12 = vshrl.u32 %v12874_v44, 16  ;;  %v1600_v23 = vrot.slane %v12874_v44, 1  ;;  %v1274_v28 = vor.u32 %v1272_v10, %v1270_v5  ;;  %10200 = vmatprep.subr.bf16.mxu0 %v11212_v11 }
 0x2de   :  { %v1793_v31 = vor.u32 %v1792_v20, %v1791_v7  ;;  %v1799_v37 = vrot.slane %v1288_v0, 1  ;;  %v1800_v48 = vrot.slane %v1284_v25, 2  ;;  %v12902_v54 = vsel %vm814_vm4, %v1785_v46, %v1789_v27  ;;  %v11202_v46 = vld [vmem:[#allocation6 + $0x50] sm:$0xff]   ;;  %10201 = vmatpush3.bf16.msra.mxu0 %v11212_v11 }
 0x2df   :  { %v1278_v17 = vrot.slane %v1276_v9, 1  ;;  %v12894_v36 = vsel %vm645_vm3, %v1598_v40, %v1600_v23  ;;  %v12899_v53 = vsel %vm645_vm3, %v1600_v23, %v1602_v1  ;;  %v1286_v57 = vrot.slane %v1284_v25, 1  ;;  %v11215_v25 = vld [vmem:[#allocation9 + $0x38] sm:$0xff]  }
 0x2e0   :  { %v12905_v61 = vsel %vm814_vm4, %v1789_v27, %v1793_v31  ;;  %v1795_v2 = vrot.slane %v1280_v12, 1  ;;  %v1796_v29 = vrot.slane %v1276_v9, 2  ;;  %v12908_v40 = vor.u32 %v1800_v48, %v1799_v37  ;;  %v13015_v9 = vld [vmem:[#allocation9] sm:$0xff]  }
 0x2e1   :  { %v1279_v30 = vsel %vm309_vm1, %v1274_v28, %v1278_v17  ;;  %v1282_v50 = vor.u32 %v1280_v12, %v1278_v17  ;;  %v12911_v55 = vsel %vm999_vm5, %v1974_v35, %v1976_v63  ;;  %v1978_v58 = vrot.slane %v12845_v34, 2  ;;  %v11198_v35 = vld [vmem:[#allocation6 + $0x10] sm:$0xff]  }
 0x2e2   :  { %10097 = vmatmul.mubr.msk.bf16.vlgmr.msra.gmra.mrb[0].mxu1 %vm1315_vm6, %v1279_v30  ;;  %v1797_v56 = vor.u32 %v1796_v29, %v1795_v2  ;;  %v1980_v62 = vrot.slane %v12837_v43, 2  ;;  %v1982_v3 = vrot.slane %v12874_v44, 2  ;;  %v1984_v10 = vrot.slane %v12871_v39, 2 }
 0x2e3   :  { %10105 = vmatpush3.bf16.msra.mxu1 %v12780_v45  ;;  %v1287_v5 = vsel %vm309_vm1, %v1282_v50, %v1286_v57  ;;  %v12929_v19 = vsel %vm999_vm5, %v1976_v63, %v1978_v58  ;;  %v1290_v22 = vor.u32 %v1288_v0, %v1286_v57  ;;  %v11214_v63 = vld [vmem:[#allocation9 + $0x30] sm:$0xff]  }
 0x2e4   :  { %10100 = vmatprep.mubr.msk.bf16.mxu1 %vm1315_vm6, %v1287_v5  ;;  %10106 = vmatprep.subr.bf16.mxu1 %v11197_v59  ;;  %v12922_v16 = vsel %vm814_vm4, %v1793_v31, %v1797_v56  ;;  %v12926_v4 = vsel %vm814_vm4, %v1797_v56, %v12908_v40  ;;  %v12932_v45 = vsel %vm999_vm5, %v1978_v58, %v1980_v62 }
 0x2e5   :  { %v12935_v20 = vsel %vm999_vm5, %v1980_v62, %v1982_v3  ;;  %v12940_v38 = vsel %vm999_vm5, %v1982_v3, %v1984_v10  ;;  %v13024_v62 = vld [vmem:[#allocation7] ss:$0 sm:$0xff] }
 0x2e7   :  { %10107 = vmatpush3.bf16.msra.mxu1 %v11197_v59 }
 0x2e8   :  { %10108 = vmatprep.subr.bf16.mxu1 %v11198_v35 }
 0x2ea   :  { %10101 = vmatmul.mubr.msk.bf16.gmra.mrb[4].mxu1 %vm1315_vm6, %v1290_v22 }
 0x2eb   :  { %10109 = vmatpush3.bf16.msra.mxu1 %v11198_v35  ;;  %10112 = vmatprep.mubr.msk.bf16.mxu1 %vm1315_vm6, %v12791_v33  ;;  %v11204_v33 = vld [vmem:[#allocation6 + $0x60] sm:$0xff]  }
 0x2ec   :  { %10110 = vmatprep.subr.bf16.mxu1 %v11199_v47 }
 0x2ef   :  { %10111 = vmatpush3.bf16.msra.mxu1 %v11199_v47 }
 0x2f0   :  { %10128 = vmatprep.subr.bf16.mxu1 %v11200_v15 }
 0x2f2   :  { %10113 = vmatmul.mubr.msk.bf16.vlgmr.msra.gmra.mrb[8].mxu1 %vm1315_vm6, %v12789_v32  ;;  %v11205_v32 = vld [vmem:[#allocation6 + $0x68] sm:$0xff]  }
 0x2f3   :  { %10116 = vmatprep.mubr.msk.bf16.mxu1 %vm1315_vm6, %v12808_v18  ;;  %10129 = vmatpush3.bf16.msra.mxu1 %v11200_v15  ;;  %v11207_v18 = vld [vmem:[#allocation6 + $0x78] sm:$0xff]  }
 0x2f4   :  { %10130 = vmatprep.subr.bf16.mxu1 %v11201_v52 }
 0x2f7   :  { %10131 = vmatpush3.bf16.msra.mxu1 %v11201_v52 }
 0x2f8   :  { %10132 = vmatprep.subr.bf16.mxu1 %v11202_v46 }
 0x2fa   :  { %10117 = vmatmul.mubr.msk.bf16.gmra.mrb[12].mxu1 %vm1315_vm6, %v12806_v14  ;;  %v11206_v14 = vld [vmem:[#allocation6 + $0x70] sm:$0xff]  }
 0x2fb   :  { %10120 = vmatprep.mubr.msk.bf16.mxu1 %vm1315_vm6, %v12845_v34  ;;  %10133 = vmatpush3.bf16.msra.mxu1 %v11202_v46 }
 0x2fc   :  { %10134 = vmatprep.subr.bf16.mxu1 %v11203_v6 }
 0x2ff   :  { %10135 = vmatpush3.bf16.msra.mxu1 %v11203_v6 }
 0x300   :  { %10152 = vmatprep.subr.bf16.mxu1 %v11204_v33 }
 0x302   :  { %10121 = vmatmul.mubr.msk.bf16.gmra.mrb[0].mxu1 %vm1315_vm6, %v12837_v43  ;;  %v11211_v43 = vld [vmem:[#allocation6 + $0x98] sm:$0xff]  }
 0x303   :  { %10124 = vmatprep.mubr.msk.bf16.mxu1 %vm1315_vm6, %v12874_v44 }
 0x30a   :  { %10125 = vmatmul.mubr.msk.bf16.gmra.mrb[16].mxu1 %vm1315_vm6, %v12871_v39 }
 0x30b   :  { %10136 = vmatprep.mubr.msk.bf16.mxu1 %vm1315_vm6, %v12804_v51  ;;  %v11208_v51 = vld [vmem:[#allocation6 + $0x80] sm:$0xff]  }
 0x312   :  { %10137 = vmatmul.mubr.msk.bf16.vlgmr.msra.gmra.mrb[8].mxu1 %vm1315_vm6, %v12831_v13  ;;  %v11209_v13 = vld [vmem:[#allocation6 + $0x88] sm:$0xff]  }
 0x313   :  { %10140 = vmatprep.mubr.msk.bf16.mxu1 %vm1315_vm6, %v12834_v24  ;;  %10153 = vmatpush3.bf16.msra.mxu1 %v11204_v33  ;;  %v11210_v24 = vld [vmem:[#allocation6 + $0x90] sm:$0xff]  }
 0x314   :  { %10154 = vmatprep.subr.bf16.mxu1 %v11205_v32 }
 0x317   :  { %10155 = vmatpush3.bf16.msra.mxu1 %v11205_v32 }
 0x318   :  { %10156 = vmatprep.subr.bf16.mxu1 %v11206_v14 }
 0x31a   :  { %10141 = vmatmul.mubr.msk.bf16.gmra.mrb[12].mxu1 %vm1315_vm6, %v12861_v41 }
 0x31b   :  { %10144 = vmatprep.mubr.msk.bf16.mxu1 %vm1315_vm6, %v12864_v42  ;;  %10157 = vmatpush3.bf16.msra.mxu1 %v11206_v14 }
 0x31c   :  { %10158 = vmatprep.subr.bf16.mxu1 %v11207_v18 }
 0x31f   :  { %10159 = vmatpush3.bf16.msra.mxu1 %v11207_v18 }
 0x320   :  { %10176 = vmatprep.subr.bf16.mxu1 %v11208_v51 }
 0x322   :  { %10145 = vmatmul.mubr.msk.bf16.gmra.mrb[0].mxu1 %vm1315_vm6, %v12894_v36 }
 0x323   :  { %10148 = vmatprep.mubr.msk.bf16.mxu1 %vm1315_vm6, %v12899_v53 }
 0x32a   :  { %10149 = vmatmul.mubr.msk.bf16.gmra.mrb[20].mxu1 %vm1315_vm6, %v1602_v1 }
 0x32b   :  { %10160 = vmatprep.mubr.msk.bf16.mxu1 %vm1315_vm6, %v12827_v60 }
 0x332   :  { %10161 = vmatmul.mubr.msk.bf16.vlgmr.msra.gmra.mrb[8].mxu1 %vm1315_vm6, %v12869_v21 }
 0x333   :  { %10164 = vmatprep.mubr.msk.bf16.mxu1 %vm1315_vm6, %v12888_v8  ;;  %10177 = vmatpush3.bf16.msra.mxu1 %v11208_v51 }
 0x334   :  { %10178 = vmatprep.subr.bf16.mxu1 %v11209_v13 }
 0x337   :  { %10179 = vmatpush3.bf16.msra.mxu1 %v11209_v13 }
 0x338   :  { %10180 = vmatprep.subr.bf16.mxu1 %v11210_v24 }
 0x33a   :  { %10165 = vmatmul.mubr.msk.bf16.gmra.mrb[12].mxu1 %vm1315_vm6, %v12902_v54 }
 0x33b   :  { %10168 = vmatprep.mubr.msk.bf16.mxu1 %vm1315_vm6, %v12905_v61  ;;  %10181 = vmatpush3.bf16.msra.mxu1 %v11210_v24 }
 0x33c   :  { %10182 = vmatprep.subr.bf16.mxu1 %v11211_v43 }
 0x33f   :  { %10183 = vmatpush3.bf16.msra.mxu1 %v11211_v43 }
 0x342   :  { %10169 = vmatmul.mubr.msk.bf16.gmra.mrb[0].mxu1 %vm1315_vm6, %v12922_v16 }
 0x343   :  { %10172 = vmatprep.mubr.msk.bf16.mxu1 %vm1315_vm6, %v12926_v4 }
 0x34a   :  { %10173 = vmatmul.mubr.msk.bf16.gmra.mrb[24].mxu1 %vm1315_vm6, %v12908_v40 }
 0x34b   :  { %10184 = vmatprep.mubr.msk.bf16.mxu1 %vm1315_vm6, %v12843_v49 }
 0x352   :  { %10185 = vmatmul.mubr.msk.bf16.vlgmr.msra.gmra.mrb[8].mxu1 %vm1315_vm6, %v12880_v26  ;;  %v11213_v26 = vld [vmem:[#allocation9 + $0x28] sm:$0xff]  }
 0x353   :  { %10188 = vmatprep.mubr.msk.bf16.mxu1 %vm1315_vm6, %v12911_v55  ;;  %10202 = vmatprep.subr.bf16.mxu0 %v11213_v26 }
 0x354   :  { %10203 = vmatpush3.bf16.msra.mxu0 %v11213_v26 }
 0x355   :  { %10204 = vmatprep.subr.bf16.mxu0 %v11214_v63 }
 0x358   :  { %10205 = vmatpush3.bf16.msra.mxu0 %v11214_v63 }
 0x359   :  { %10206 = vmatprep.subr.bf16.mxu0 %v11215_v25 }
 0x35a   :  { %10189 = vmatmul.mubr.msk.bf16.gmra.mrb[12].mxu1 %vm1315_vm6, %v12929_v19 }
 0x35b   :  { %10192 = vmatprep.mubr.msk.bf16.mxu1 %vm1315_vm6, %v12932_v45 }
 0x35c   :  { %10207 = vmatpush3.bf16.msra.mxu0 %v11215_v25 }
 0x35d   :  { %10224 = vmatprep.subr.bf16.mxu0 %v13015_v9 }
 0x362   :  { %10193 = vmatmul.mubr.msk.bf16.gmra.mrb[0].mxu1 %vm1315_vm6, %v12935_v20 }
 0x363   :  { %10196 = vmatprep.mubr.msk.bf16.mxu1 %vm1315_vm6, %v12940_v38 }
 0x36a   :  { %10197 = vmatmul.mubr.msk.bf16.gmra.mrb[28].mxu1 %vm1315_vm6, %v1984_v10 }
 0x3a5   :  { %v10090_v60 = vpop.f32.mrb[16].mxu0 }
 0x3a6   :  { %v1374_v49 = vpop.f32.mrb[17].mxu0 }
 0x3a7   :  { %v10091_v34 = vpop.f32.mrb[18].mxu0 }
 0x3a8   :  { %v1377_v41 = vpop.f32.mrb[19].mxu0 }
 0x3ad   :  { %v10094_v42 = vpop.f32.mrb[20].mxu0 }
 0x3ae   :  { %v13009_v21 = vpop.f32.mrb[21].mxu0 }
 0x3af   :  { %v13011_v7 = vpop.f32.mrb[22].mxu0 }
 0x3b0   :  { %v13013_v44 = vpop.f32.mrb[23].mxu0 }
 0x3bd   :  { %v10102_v39 = vpop.f32.mrb[4].mxu1 }
 0x3be   :  { %v1422_v0 = vpop.f32.mrb[5].mxu1 }
 0x3bf   :  { %v10103_v1 = vpop.f32.mrb[6].mxu1 }
 0x3c0   :  { %v1425_v8 = vpop.f32.mrb[7].mxu1 }
 0x3dd   :  { %v10126_v12 = vpop.f32.mrb[16].mxu1 }
 0x3de   :  { %v1567_v23 = vadd.f32 %v10126_v12, %v10102_v39  ;;  %v1558_v27 = vpop.f32.mrb[17].mxu1 }
 0x3df   :  { %v1559_v28 = vadd.f32 %v1558_v27, %v1422_v0  ;;  %v10127_v31 = vpop.f32.mrb[18].mxu1 }
 0x3e0   :  { %v1561_v37 = vpop.f32.mrb[19].mxu1 }
 0x3e1   :  { %v1562_v48 = vadd.f32 %v1561_v37, %v1425_v8 }
 0x3fd   :  { %v10150_v17 = vpop.f32.mrb[20].mxu1 }
 0x3fe   :  { %v1762_v36 = vadd.f32 %v10150_v17, %v1567_v23  ;;  %v1734_v53 = vpop.f32.mrb[21].mxu1 }
 0x3ff   :  { %v1760_v54 = vadd.f32 %v1734_v53, %v1559_v28  ;;  %v10151_v57 = vpop.f32.mrb[22].mxu1 }
 0x400   :  { %v1737_v59 = vpop.f32.mrb[23].mxu1 }
 0x401   :  { %v1761_v61 = vadd.f32 %v1737_v59, %v1562_v48 }
 0x41d   :  { %v10174_v2 = vpop.f32.mrb[24].mxu1 }
 0x41e   :  { %v13018_v29 = vadd.f32 %v10174_v2, %v1762_v36  ;;  %v1933_v30 = vpop.f32.mrb[25].mxu1 }
 0x41f   :  { %v13020_v50 = vadd.f32 %v1933_v30, %v1760_v54  ;;  %v10175_v40 = vpop.f32.mrb[26].mxu1 }
 0x420   :  { %v1936_v55 = vpop.f32.mrb[27].mxu1 }
 0x421   :  { %v13022_v56 = vadd.f32 %v1936_v55, %v1761_v61 }
 0x425   :  { %v10186_v58 = vpop.f32.mrb[8].mxu1 }
 0x426   :  { %v10930_v3 = vadd.f32 %v10186_v58, %v10090_v60  ;;  %v2068_v5 = vpop.f32.mrb[9].mxu1 }
 0x427   :  { %v10931_v10 = vadd.f32 %v2068_v5, %v1374_v49  ;;  %v10187_v35 = vpop.f32.mrb[10].mxu1 }
 0x428   :  { %v2154_v16 = vadd.f32 %v10930_v3, %v13024_v62  ;;  %v10932_v4 = vadd.f32 %v10187_v35, %v10091_v34  ;;  %v2071_v19 = vpop.f32.mrb[11].mxu1 }
 0x429   :  { %v2152_v45 = vadd.f32 %v10931_v10, %v13024_v62  ;;  %v10933_v20 = vadd.f32 %v2071_v19, %v1377_v41 }
 0x42a   :  { %v2155_v38 = vadd.f32 %v10932_v4, %v13024_v62  ;;  %v2169_v47 = vmax.f32 %v2154_v16, 0.0 }
 0x42b   :  { %v2153_v22 = vadd.f32 %v10933_v20, %v13024_v62  ;;  %v2167_v52 = vmax.f32 %v2152_v45, 0.0 }
 0x42c   :  { %v2170_v15 = vmax.f32 %v2155_v38, 0.0 }
 0x42d   :  { %v2168_v46 = vmax.f32 %v2153_v22, 0.0  ;;  %v10190_v6 = vpop.f32.mrb[12].mxu1 }
 0x42e   :  { %v13030_v33 = vpack.c.bf16 %v2170_v15, %v2169_v47  ;;  %v10934_v32 = vadd.f32 %v10190_v6, %v10094_v42  ;;  %v2084_v14 = vpop.f32.mrb[13].mxu1 }
 0x42f   :  { %v13032_v18 = vpack.c.bf16 %v2168_v46, %v2167_v52  ;;  %v10935_v51 = vadd.f32 %v2084_v14, %v13009_v21  ;;  %v10191_v13 = vpop.f32.mrb[14].mxu1  ;;  %v11217_v14 = vld [vmem:[#allocation9 + $0x8] sm:$0xff]  }
 0x430   :  { %v2158_v24 = vadd.f32 %v10934_v32, %v13024_v62  ;;  %v10936_v43 = vadd.f32 %v10191_v13, %v13011_v7  ;;  %v2087_v60 = vpop.f32.mrb[15].mxu1  ;;  %v2215_v49 = vshll.u32 %v13030_v33, 16  ;;  %v2219_v21 = vshrl.u32 %v13030_v33, 16 }
 0x431   :  { %v2156_v34 = vadd.f32 %v10935_v51, %v13024_v62  ;;  %v10937_v41 = vadd.f32 %v2087_v60, %v13013_v44  ;;  %v2208_v11 = vshrl.u32 %v13032_v18, 16  ;;  %v2210_v42 = vshll.u32 %v13032_v18, 16 }
 0x432   :  { %v2159_v26 = vadd.f32 %v10936_v43, %v13024_v62  ;;  %v2217_v63 = vrot.slane %v2215_v49, 1  ;;  %v2567_v39 = vrot.slane %v13032_v18, 1  ;;  %v2173_v25 = vmax.f32 %v2158_v24, 0.0 }
 0x433   :  { %v2157_v7 = vadd.f32 %v10937_v41, %v13024_v62  ;;  %v2212_v0 = vrot.slane %v2210_v42, 1  ;;  %v2568_v1 = vrot.slane %v13030_v33, 1  ;;  %v2171_v8 = vmax.f32 %v2156_v34, 0.0 }
 0x434   :  { %v2174_v12 = vmax.f32 %v2159_v26, 0.0  ;;  %v2750_v44 = vrot.slane %v2208_v11, 1  ;;  %v2751_v23 = vrot.slane %v2210_v42, 2  ;;  %v2221_v37 = vor.u32 %v2219_v21, %v2217_v63 }
 0x435   :  { %v2172_v27 = vmax.f32 %v2157_v7, 0.0  ;;  %v10194_v28 = vpop.f32.mrb[0].mxu1  ;;  %v2213_v31 = vor.u32 %v2212_v0, %v2208_v11  ;;  %v13048_v48 = vsel %vm645_vm3, %v2567_v39, %v2568_v1  ;;  %v2753_v57 = vrot.slane %v2219_v21, 1 }
 0x436   :  { %v13050_v17 = vpack.c.bf16 %v2174_v12, %v2173_v25  ;;  %v2162_v36 = vadd.f32 %v10194_v28, %v13024_v62  ;;  %v2100_v53 = vpop.f32.mrb[1].mxu1  ;;  %v2752_v54 = vor.u32 %v2751_v23, %v2750_v44  ;;  %v2754_v40 = vrot.slane %v2215_v49, 2  ;;  %v11218_v12 = vld [vmem:[#allocation9 + $0x10] sm:$0xff]  }
 0x437   :  { %v13053_v59 = vpack.c.bf16 %v2172_v27, %v2171_v8  ;;  %v2160_v61 = vadd.f32 %v13024_v62, %v2100_v53  ;;  %v10195_v2 = vpop.f32.mrb[2].mxu1  ;;  %v2218_v30 = vsel %vm309_vm1, %v2213_v31, %v2217_v63  ;;  %v2949_v10 = vrot.slane %v13032_v18, 2 }
 0x438   :  { %v2177_v55 = vmax.f32 %v2162_v36, 0.0  ;;  %v2163_v58 = vadd.f32 %v10195_v2, %v13024_v62  ;;  %v2103_v3 = vpop.f32.mrb[3].mxu1  ;;  %10208 = vmatprep.mubr.msk.bf16.mxu0 %vm1315_vm6, %v2218_v30  ;;  %v2231_v5 = vshll.u32 %v13050_v17, 16  ;;  %v2235_v19 = vshrl.u32 %v13050_v17, 16  ;;  %v11219_v30 = vld [vmem:[#allocation9 + $0x18] sm:$0xff]  }
 0x439   :  { %v2161_v35 = vadd.f32 %v13024_v62, %v2103_v3  ;;  %v2223_v16 = vshll.u32 %v13053_v59, 16  ;;  %v2227_v4 = vshrl.u32 %v13053_v59, 16  ;;  %v2570_v38 = vrot.slane %v13053_v59, 1 }
 0x43a   :  { %v2178_v45 = vmax.f32 %v2163_v58, 0.0  ;;  %v2233_v20 = vrot.slane %v2231_v5, 1  ;;  %v2572_v22 = vrot.slane %v13050_v17, 1  ;;  %v2175_v47 = vmax.f32 %v2160_v61, 0.0 }
 0x43b   :  { %v2176_v15 = vmax.f32 %v2161_v35, 0.0  ;;  %v2225_v52 = vrot.slane %v2223_v16, 1  ;;  %v2755_v46 = vor.u32 %v2754_v40, %v2753_v57  ;;  %v2757_v32 = vrot.slane %v2227_v4, 1 }
 0x43c   :  { %v13067_v6 = vpack.c.bf16 %v2178_v45, %v2177_v55  ;;  %v13070_v51 = vsel %vm645_vm3, %v2568_v1, %v2570_v38  ;;  %v13073_v13 = vsel %vm645_vm3, %v2570_v38, %v2572_v22  ;;  %v2237_v42 = vor.u32 %v2235_v19, %v2233_v20 }
 0x43d   :  { %v13075_v24 = vpack.c.bf16 %v2176_v15, %v2175_v47  ;;  %v10198_v43 = vpop.f32.mrb[28].mxu1  ;;  %v2226_v60 = vsel %vm309_vm1, %v2221_v37, %v2225_v52  ;;  %v2229_v49 = vor.u32 %v2227_v4, %v2225_v52  ;;  %v13079_v34 = vsel %vm814_vm4, %v2752_v54, %v2755_v46  ;;  %v11220_v15 = vld [vmem:[#allocation9 + $0x40] sm:$0xff]  }
 0x43e   :  { %v2144_v41 = vadd.f32 %v10198_v43, %v13018_v29  ;;  %v2116_v11 = vpop.f32.mrb[29].mxu1  ;;  %10209 = vmatmul.mubr.msk.bf16.vlgmr.msra.gmra.mrb[24].mxu0 %vm1315_vm6, %v2226_v60  ;;  %v2247_v26 = vshll.u32 %v13067_v6, 16  ;;  %v2576_v63 = vrot.slane %v13067_v6, 1  ;;  %v2251_v28 = vshrl.u32 %v13067_v6, 16 }
 0x43f   :  { %v2142_v21 = vadd.f32 %v2116_v11, %v13020_v50  ;;  %v10199_v39 = vpop.f32.mrb[30].mxu1  ;;  %v2234_v25 = vsel %vm309_vm1, %v2229_v49, %v2233_v20  ;;  %10225 = vmatpush3.bf16.msra.mxu0 %v13015_v9  ;;  %v2239_v7 = vshll.u32 %v13075_v24, 16  ;;  %v2243_v0 = vshrl.u32 %v13075_v24, 16 }
 0x440   :  { %v2166_v29 = vadd.f32 %v13024_v62, %v2144_v41  ;;  %v2119_v1 = vpop.f32.mrb[31].mxu1  ;;  %10212 = vmatprep.mubr.msk.bf16.mxu0 %vm1315_vm6, %v2234_v25  ;;  %v2249_v8 = vrot.slane %v2247_v26, 1  ;;  %10226 = vmatprep.subr.bf16.mxu0 %v11217_v14  ;;  %v2574_v44 = vrot.slane %v13075_v24, 1  ;;  %v2758_v50 = vrot.slane %v2223_v16, 2 }
 0x441   :  { %v2164_v23 = vadd.f32 %v13024_v62, %v2142_v21  ;;  %v2143_v27 = vadd.f32 %v2119_v1, %v13022_v56  ;;  %v2241_v9 = vrot.slane %v2239_v7, 1  ;;  %v2761_v53 = vrot.slane %v2235_v19, 1 }
 0x442   :  { %v2181_v31 = vmax.f32 %v2166_v29, 0.0  ;;  %v13097_v37 = vsel %vm645_vm3, %v2572_v22, %v2574_v44  ;;  %v13102_v36 = vsel %vm645_vm3, %v2574_v44, %v2576_v63  ;;  %v2253_v56 = vor.u32 %v2251_v28, %v2249_v8 }
 0x443   :  { %v2165_v54 = vadd.f32 %v13024_v62, %v2143_v27  ;;  %v2242_v57 = vsel %vm309_vm1, %v2237_v42, %v2241_v9  ;;  %v2245_v61 = vor.u32 %v2243_v0, %v2241_v9  ;;  %10227 = vmatpush3.bf16.msra.mxu0 %v11217_v14  ;;  %v2759_v40 = vor.u32 %v2758_v50, %v2757_v32 }
 0x444   :  { %v13106_v2 = vpack.c.bf16 %v2181_v31, %v2181_v31  ;;  %10228 = vmatprep.subr.bf16.mxu0 %v11218_v12  ;;  %v2762_v55 = vrot.slane %v2231_v5, 2  ;;  %v2765_v58 = vrot.slane %v2243_v0, 1  ;;  %v2179_v3 = vmax.f32 %v2164_v23, 0.0 }
 0x445   :  { %v2180_v35 = vmax.f32 %v2165_v54, 0.0  ;;  %v2250_v16 = vsel %vm309_vm1, %v2245_v61, %v2249_v8  ;;  %v2766_v4 = vrot.slane %v2239_v7, 2  ;;  %v13113_v45 = vsel %vm814_vm4, %v2755_v46, %v2759_v40 }
 0x446   :  { %10213 = vmatmul.mubr.msk.bf16.gmra.mrb[28].mxu0 %vm1315_vm6, %v2242_v57  ;;  %v2263_v62 = vshll.u32 %v13106_v2, 16  ;;  %v2267_v19 = vshrl.u32 %v13106_v2, 16  ;;  %v2769_v20 = vrot.slane %v2251_v28, 1  ;;  %v2763_v5 = vor.u32 %v2762_v55, %v2761_v53 }
 0x447   :  { %v13115_v38 = vpack.c.bf16 %v2180_v35, %v2179_v3  ;;  %10216 = vmatprep.mubr.msk.bf16.mxu0 %vm1315_vm6, %v2250_v16  ;;  %10229 = vmatpush3.bf16.msra.mxu0 %v11218_v12  ;;  %v2767_v22 = vor.u32 %v2766_v4, %v2765_v58  ;;  %v2770_v47 = vrot.slane %v2247_v26, 2  ;;  %v2580_v52 = vrot.slane %v13106_v2, 1  ;;  %v11221_v3 = vld [vmem:[#allocation9 + $0x48] sm:$0xff]   ;;  %v11222_v35 = vld [vmem:[#allocation9 + $0x50] sm:$0xff]   ;;  %v11223_v16 = vld [vmem:[#allocation9 + $0x58] sm:$0xff]  }
 0x448   :  { %10230 = vmatprep.subr.bf16.mxu0 %v11219_v30  ;;  %v2777_v32 = vrot.slane %v2267_v19, 1  ;;  %v2778_v14 = vrot.slane %v2263_v62, 2  ;;  %v2950_v43 = vrot.slane %v13030_v33, 2  ;;  %v13124_v41 = vsel %vm814_vm4, %v2759_v40, %v2763_v5  ;;  %v11235_v4 = vld [vmem:[#allocation12 + $0x30] sm:$0xff]  }
 0x449   :  { %v2255_v46 = vshll.u32 %v13115_v38, 16  ;;  %v2259_v60 = vshrl.u32 %v13115_v38, 16  ;;  %v2578_v49 = vrot.slane %v13115_v38, 1  ;;  %v2265_v11 = vrot.slane %v2263_v62, 1  ;;  %v11236_v62 = vld [vmem:[#allocation12 + $0x68] sm:$0xff]  }
 0x44a   :  { %v13127_v42 = vsel %vm814_vm4, %v2763_v5, %v2767_v22  ;;  %v2771_v26 = vor.u32 %v2770_v47, %v2769_v20  ;;  %v13129_v21 = vor.u32 %v2778_v14, %v2777_v32  ;;  %v13147_v8 = vsel %vm999_vm5, %v2949_v10, %v2950_v43 }
 0x44b   :  { %v2257_v39 = vrot.slane %v2255_v46, 1  ;;  %10231 = vmatpush3.bf16.msra.mxu0 %v11219_v30  ;;  %v13134_v25 = vsel %vm645_vm3, %v2576_v63, %v2578_v49  ;;  %v13139_v7 = vsel %vm645_vm3, %v2578_v49, %v2580_v52  ;;  %v2773_v0 = vrot.slane %v2259_v60, 1 }
 0x44c   :  { %10248 = vmatprep.subr.bf16.mxu0 %v11220_v15  ;;  %v13142_v29 = vsel %vm814_vm4, %v2767_v22, %v2771_v26  ;;  %v2774_v1 = vrot.slane %v2255_v46, 2  ;;  %v2952_v12 = vrot.slane %v13053_v59, 2  ;;  %v2954_v50 = vrot.slane %v13050_v17, 2 }
 0x44d   :  { %v2258_v63 = vsel %vm309_vm1, %v2253_v56, %v2257_v39  ;;  %v2261_v44 = vor.u32 %v2259_v60, %v2257_v39  ;;  %v2956_v23 = vrot.slane %v13075_v24, 2  ;;  %v2958_v28 = vrot.slane %v13067_v6, 2 }
 0x44e   :  { %10217 = vmatmul.mubr.msk.bf16.gmra.mrb[32].mxu0 %vm1315_vm6, %v2258_v63  ;;  %v2775_v27 = vor.u32 %v2774_v1, %v2773_v0  ;;  %v13155_v9 = vsel %vm999_vm5, %v2950_v43, %v2952_v12  ;;  %v2960_v10 = vrot.slane %v13115_v38, 2  ;;  %v13161_v53 = vsel %vm999_vm5, %v2952_v12, %v2954_v50  ;;  %v13266_v12 = vld [vmem:[#allocation10] ss:$0 sm:$0xff] }
 0x44f   :  { %v2266_v31 = vsel %vm309_vm1, %v2261_v44, %v2265_v11  ;;  %v13164_v54 = vsel %vm999_vm5, %v2954_v50, %v2956_v23  ;;  %v2962_v57 = vrot.slane %v13106_v2, 2  ;;  %v13172_v30 = vsel %vm999_vm5, %v2956_v23, %v2958_v28 }
 0x450   :  { %10220 = vmatprep.mubr.msk.bf16.mxu0 %vm1315_vm6, %v2266_v31  ;;  %v2776_v61 = vsel %vm814_vm4, %v2771_v26, %v2775_v27  ;;  %v2780_v56 = vsel %vm814_vm4, %v2775_v27, %v13129_v21  ;;  %v13175_v40 = vsel %vm999_vm5, %v2958_v28, %v2960_v10  ;;  %v2269_v58 = vor.u32 %v2267_v19, %v2265_v11  ;;  %v11238_v19 = vld [vmem:[#allocation12 + $0x38] sm:$0xff]  }
 0x451   :  { %v13180_v55 = vsel %vm999_vm5, %v2960_v10, %v2962_v57 }
 0x456   :  { %10221 = vmatmul.mubr.msk.bf16.gmra.mrb[36].mxu0 %vm1315_vm6, %v2269_v58 }
 0x457   :  { %10232 = vmatprep.mubr.msk.bf16.mxu0 %vm1315_vm6, %v13032_v18  ;;  %v11224_v18 = vld [vmem:[#allocation9 + $0x60] sm:$0xff]  }
 0x45e   :  { %10233 = vmatmul.mubr.msk.bf16.vlgmr.msra.gmra.mrb[24].mxu0 %vm1315_vm6, %v13030_v33  ;;  %v11225_v33 = vld [vmem:[#allocation9 + $0x68] sm:$0xff]  }
 0x45f   :  { %10236 = vmatprep.mubr.msk.bf16.mxu0 %vm1315_vm6, %v13053_v59  ;;  %10249 = vmatpush3.bf16.msra.mxu0 %v11220_v15  ;;  %v11227_v59 = vld [vmem:[#allocation9 + $0x78] sm:$0xff]  }
 0x460   :  { %10250 = vmatprep.subr.bf16.mxu0 %v11221_v3 }
 0x463   :  { %10251 = vmatpush3.bf16.msra.mxu0 %v11221_v3 }
 0x464   :  { %10252 = vmatprep.subr.bf16.mxu0 %v11222_v35 }
 0x466   :  { %10237 = vmatmul.mubr.msk.bf16.gmra.mrb[28].mxu0 %vm1315_vm6, %v13050_v17  ;;  %v11226_v17 = vld [vmem:[#allocation9 + $0x70] sm:$0xff]  }
 0x467   :  { %10240 = vmatprep.mubr.msk.bf16.mxu0 %vm1315_vm6, %v13075_v24  ;;  %10253 = vmatpush3.bf16.msra.mxu0 %v11222_v35  ;;  %v11232_v24 = vld [vmem:[#allocation12 + $0x20] sm:$0xff]  }
 0x468   :  { %10254 = vmatprep.subr.bf16.mxu0 %v11223_v16 }
 0x46b   :  { %10255 = vmatpush3.bf16.msra.mxu0 %v11223_v16 }
 0x46c   :  { %10272 = vmatprep.subr.bf16.mxu0 %v11224_v18 }
 0x46e   :  { %10241 = vmatmul.mubr.msk.bf16.gmra.mrb[32].mxu0 %vm1315_vm6, %v13067_v6  ;;  %v11229_v6 = vld [vmem:[#allocation9 + $0x88] sm:$0xff]  }
 0x46f   :  { %10244 = vmatprep.mubr.msk.bf16.mxu0 %vm1315_vm6, %v13115_v38 }
 0x476   :  { %10245 = vmatmul.mubr.msk.bf16.gmra.mrb[40].mxu0 %vm1315_vm6, %v13106_v2  ;;  %v11237_v2 = vld [vmem:[#allocation12 + $0x70] sm:$0xff]  }
 0x477   :  { %10256 = vmatprep.mubr.msk.bf16.mxu0 %vm1315_vm6, %v13048_v48  ;;  %v11228_v48 = vld [vmem:[#allocation9 + $0x80] sm:$0xff]  }
 0x47e   :  { %10257 = vmatmul.mubr.msk.bf16.vlgmr.msra.gmra.mrb[24].mxu0 %vm1315_vm6, %v13070_v51  ;;  %v11230_v51 = vld [vmem:[#allocation9 + $0x90] sm:$0xff]  }
 0x47f   :  { %10260 = vmatprep.mubr.msk.bf16.mxu0 %vm1315_vm6, %v13073_v13  ;;  %10273 = vmatpush3.bf16.msra.mxu0 %v11224_v18  ;;  %v11231_v13 = vld [vmem:[#allocation9 + $0x98] sm:$0xff]  }
 0x480   :  { %10274 = vmatprep.subr.bf16.mxu0 %v11225_v33 }
 0x483   :  { %10275 = vmatpush3.bf16.msra.mxu0 %v11225_v33 }
 0x484   :  { %10276 = vmatprep.subr.bf16.mxu0 %v11226_v17 }
 0x486   :  { %10261 = vmatmul.mubr.msk.bf16.gmra.mrb[28].mxu0 %vm1315_vm6, %v13097_v37  ;;  %v11233_v37 = vld [vmem:[#allocation12 + $0x28] sm:$0xff]  }
 0x487   :  { %10264 = vmatprep.mubr.msk.bf16.mxu0 %vm1315_vm6, %v13102_v36  ;;  %10277 = vmatpush3.bf16.msra.mxu0 %v11226_v17  ;;  %v11234_v36 = vld [vmem:[#allocation12 + $0x60] sm:$0xff]  }
 0x488   :  { %10278 = vmatprep.subr.bf16.mxu0 %v11227_v59 }
 0x48b   :  { %10279 = vmatpush3.bf16.msra.mxu0 %v11227_v59 }
 0x48c   :  { %10296 = vmatprep.subr.bf16.mxu0 %v11228_v48 }
 0x48e   :  { %10265 = vmatmul.mubr.msk.bf16.gmra.mrb[32].mxu0 %vm1315_vm6, %v13134_v25 }
 0x48f   :  { %10268 = vmatprep.mubr.msk.bf16.mxu0 %vm1315_vm6, %v13139_v7 }
 0x496   :  { %10269 = vmatmul.mubr.msk.bf16.gmra.mrb[44].mxu0 %vm1315_vm6, %v2580_v52 }
 0x497   :  { %10280 = vmatprep.mubr.msk.bf16.mxu0 %vm1315_vm6, %v13079_v34  ;;  %v12144_v34 = vmov 0.0  }
 0x498   :  { %10320 = vmatprep.subr.bf16.mxu1 %v12144_v34  ;;  %10328 = vmatprep.mubr.msk.bf16.mxu1 %vm12145_vm7, %v12144_v34 }
 0x499   :  { %10321 = vmatpush3.bf16.msra.mxu1 %v11232_v24 }
 0x49a   :  { %10322 = vmatprep.subr.bf16.mxu1 %v12144_v34 }
 0x49d   :  { %10323 = vmatpush3.bf16.msra.mxu1 %v11233_v37 }
 0x49e   :  { %10281 = vmatmul.mubr.msk.bf16.vlgmr.msra.gmra.mrb[24].mxu0 %vm1315_vm6, %v13113_v45  ;;  %10324 = vmatprep.subr.bf16.mxu1 %v12144_v34  ;;  %v11239_v45 = vld [vmem:[#allocation12 + $0x78] sm:$0xff]  }
 0x49f   :  { %10284 = vmatprep.mubr.msk.bf16.mxu0 %vm1315_vm6, %v13124_v41  ;;  %10297 = vmatpush3.bf16.msra.mxu0 %v11228_v48 }
 0x4a0   :  { %10298 = vmatprep.subr.bf16.mxu0 %v11229_v6 }
 0x4a1   :  { %10325 = vmatpush3.bf16.msra.mxu1 %v11235_v4 }
 0x4a2   :  { %10326 = vmatprep.subr.bf16.mxu1 %v12144_v34 }
 0x4a3   :  { %10299 = vmatpush3.bf16.msra.mxu0 %v11229_v6 }
 0x4a4   :  { %10300 = vmatprep.subr.bf16.mxu0 %v11230_v51 }
 0x4a5   :  { %10327 = vmatpush3.bf16.msra.mxu1 %v11238_v19 }
 0x4a6   :  { %10285 = vmatmul.mubr.msk.bf16.gmra.mrb[28].mxu0 %vm1315_vm6, %v13127_v42  ;;  %10356 = vmatprep.subr.bf16.mxu1 %v12144_v34 }
 0x4a7   :  { %10288 = vmatprep.mubr.msk.bf16.mxu0 %vm1315_vm6, %v13142_v29  ;;  %10301 = vmatpush3.bf16.msra.mxu0 %v11230_v51 }
 0x4a8   :  { %10302 = vmatprep.subr.bf16.mxu0 %v11231_v13 }
 0x4ab   :  { %10303 = vmatpush3.bf16.msra.mxu0 %v11231_v13 }
 0x4ac   :  { %10428 = vmatprep.subr.bf16.mxu0 %v12144_v34 }
 0x4ae   :  { %10289 = vmatmul.mubr.msk.bf16.gmra.mrb[32].mxu0 %vm1315_vm6, %v2776_v61 }
 0x4af   :  { %10292 = vmatprep.mubr.msk.bf16.mxu0 %vm1315_vm6, %v2780_v56 }
 0x4b6   :  { %10293 = vmatmul.mubr.msk.bf16.gmra.mrb[48].mxu0 %vm1315_vm6, %v13129_v21 }
 0x4b7   :  { %10304 = vmatprep.mubr.msk.bf16.mxu0 %vm1315_vm6, %v13147_v8 }
 0x4be   :  { %10305 = vmatmul.mubr.msk.bf16.vlgmr.msra.gmra.mrb[24].mxu0 %vm1315_vm6, %v13155_v9 }
 0x4bf   :  { %10308 = vmatprep.mubr.msk.bf16.mxu0 %vm1315_vm6, %v13161_v53  ;;  %10429 = vmatpush3.bf16.msra.mxu0 %v11234_v36 }
 0x4c0   :  { %10430 = vmatprep.subr.bf16.mxu0 %v12144_v34 }
 0x4c3   :  { %10431 = vmatpush3.bf16.msra.mxu0 %v11236_v62 }
 0x4c4   :  { %10432 = vmatprep.subr.bf16.mxu0 %v12144_v34 }
 0x4c6   :  { %10309 = vmatmul.mubr.msk.bf16.gmra.mrb[28].mxu0 %vm1315_vm6, %v13164_v54 }
 0x4c7   :  { %10312 = vmatprep.mubr.msk.bf16.mxu0 %vm1315_vm6, %v13172_v30  ;;  %10433 = vmatpush3.bf16.msra.mxu0 %v11237_v2 }
 0x4c8   :  { %10434 = vmatprep.subr.bf16.mxu0 %v12144_v34 }
 0x4cb   :  { %10435 = vmatpush3.bf16.msra.mxu0 %v11239_v45 }
 0x4ce   :  { %10313 = vmatmul.mubr.msk.bf16.gmra.mrb[32].mxu0 %vm1315_vm6, %v13175_v40 }
 0x4cf   :  { %10316 = vmatprep.mubr.msk.bf16.mxu0 %vm1315_vm6, %v13180_v55 }
 0x4d6   :  { %10317 = vmatmul.mubr.msk.bf16.gmra.mrb[52].mxu0 %vm1315_vm6, %v2962_v57 }
 0x4d7   :  { %10436 = vmatprep.mubr.msk.bf16.mxu0 %vm12145_vm7, %v12144_v34 }
 0x529   :  { %v10222_v20 = vpop.f32.mrb[36].mxu0 }
 0x52a   :  { %v2400_v38 = vpop.f32.mrb[37].mxu0 }
 0x52b   :  { %v10223_v5 = vpop.f32.mrb[38].mxu0 }
 0x52c   :  { %v2403_v22 = vpop.f32.mrb[39].mxu0 }
 0x549   :  { %v10246_v47 = vpop.f32.mrb[40].mxu0 }
 0x54a   :  { %v2545_v15 = vadd.f32 %v10246_v47, %v10222_v20  ;;  %v2536_v52 = vpop.f32.mrb[41].mxu0  ;;  %v11240_v20 = vld [vmem:[#allocation12] sm:$0xff]  }
 0x54b   :  { %v2537_v32 = vadd.f32 %v2536_v52, %v2400_v38  ;;  %v10247_v14 = vpop.f32.mrb[42].mxu0 }
 0x54c   :  { %v2539_v43 = vpop.f32.mrb[43].mxu0 }
 0x54d   :  { %v2540_v46 = vadd.f32 %v2539_v43, %v2403_v22 }
 0x569   :  { %v10270_v60 = vpop.f32.mrb[44].mxu0 }
 0x56a   :  { %v2740_v49 = vadd.f32 %v10270_v60, %v2545_v15  ;;  %v2712_v41 = vpop.f32.mrb[45].mxu0 }
 0x56b   :  { %v2738_v11 = vadd.f32 %v2712_v41, %v2537_v32  ;;  %v10271_v42 = vpop.f32.mrb[46].mxu0 }
 0x56c   :  { %v2715_v26 = vpop.f32.mrb[47].mxu0 }
 0x56d   :  { %v2739_v21 = vadd.f32 %v2715_v26, %v2540_v46 }
 0x589   :  { %v10294_v39 = vpop.f32.mrb[48].mxu0 }
 0x58a   :  { %v13260_v25 = vadd.f32 %v10294_v39, %v2740_v49  ;;  %v2911_v7 = vpop.f32.mrb[49].mxu0 }
 0x58b   :  { %v13262_v0 = vadd.f32 %v2911_v7, %v2738_v11  ;;  %v10295_v29 = vpop.f32.mrb[50].mxu0  ;;  %v11241_v11 = vld [vmem:[#allocation12 + $0x8] sm:$0xff]  }
 0x58c   :  { %v2914_v1 = vpop.f32.mrb[51].mxu0 }
 0x58d   :  { %v13264_v8 = vadd.f32 %v2914_v1, %v2739_v21 }
 0x591   :  { %v10306_v63 = vpop.f32.mrb[24].mxu0 }
 0x592   :  { %v3132_v44 = vadd.f32 %v10306_v63, %v13266_v12  ;;  %v3046_v50 = vpop.f32.mrb[25].mxu0 }
 0x593   :  { %v3130_v23 = vadd.f32 %v13266_v12, %v3046_v50  ;;  %v10307_v27 = vpop.f32.mrb[26].mxu0 }
 0x594   :  { %v3133_v9 = vadd.f32 %v10307_v27, %v13266_v12  ;;  %v3049_v28 = vpop.f32.mrb[27].mxu0  ;;  %v3147_v31 = vmax.f32 %v3132_v44, 0.0 }
 0x595   :  { %v3131_v10 = vadd.f32 %v13266_v12, %v3049_v28  ;;  %v3145_v54 = vmax.f32 %v3130_v23, 0.0 }
 0x596   :  { %v3148_v53 = vmax.f32 %v3133_v9, 0.0 }
 0x597   :  { %v3146_v57 = vmax.f32 %v3131_v10, 0.0 }
 0x598   :  { %v13272_v61 = vpack.c.bf16 %v3148_v53, %v3147_v31  ;;  %v11242_v31 = vld [vmem:[#allocation12 + $0x10] sm:$0xff]  }
 0x599   :  { %v13274_v56 = vpack.c.bf16 %v3146_v57, %v3145_v54  ;;  %v10310_v30 = vpop.f32.mrb[28].mxu0 }
 0x59a   :  { %v3197_v40 = vshrl.u32 %v13272_v61, 16  ;;  %v3136_v55 = vadd.f32 %v10310_v30, %v13266_v12  ;;  %v3062_v58 = vpop.f32.mrb[29].mxu0  ;;  %v3193_v3 = vshll.u32 %v13272_v61, 16 }
 0x59b   :  { %v3188_v35 = vshll.u32 %v13274_v56, 16  ;;  %v3134_v16 = vadd.f32 %v13266_v12, %v3062_v58  ;;  %v10311_v18 = vpop.f32.mrb[30].mxu0  ;;  %v3186_v33 = vshrl.u32 %v13274_v56, 16 }
 0x59c   :  { %v3137_v17 = vadd.f32 %v10311_v18, %v13266_v12  ;;  %v3065_v59 = vpop.f32.mrb[31].mxu0  ;;  %v3698_v48 = vrot.slane %v3197_v40, 1  ;;  %v3151_v24 = vmax.f32 %v3136_v55, 0.0  ;;  %v3699_v4 = vrot.slane %v3193_v3, 2 }
 0x59d   :  { %v3135_v6 = vadd.f32 %v13266_v12, %v3065_v59  ;;  %v3190_v51 = vrot.slane %v3188_v35, 1  ;;  %v3695_v13 = vrot.slane %v3186_v33, 1  ;;  %v3696_v36 = vrot.slane %v3188_v35, 2 }
 0x59e   :  { %v3152_v37 = vmax.f32 %v3137_v17, 0.0  ;;  %v3149_v62 = vmax.f32 %v3134_v16, 0.0  ;;  %v3195_v45 = vrot.slane %v3193_v3, 1  ;;  %v3700_v22 = vor.u32 %v3699_v4, %v3698_v48 }
 0x59f   :  { %v3150_v2 = vmax.f32 %v3135_v6, 0.0  ;;  %v3191_v19 = vor.u32 %v3190_v51, %v3186_v33  ;;  %v3697_v5 = vor.u32 %v3696_v36, %v3695_v13 }
 0x5a0   :  { %v13284_v38 = vpack.c.bf16 %v3152_v37, %v3151_v24  ;;  %v3199_v9 = vor.u32 %v3197_v40, %v3195_v45 }
 0x5a1   :  { %v13286_v47 = vpack.c.bf16 %v3150_v2, %v3149_v62  ;;  %v10314_v15 = vpop.f32.mrb[32].mxu0  ;;  %v3196_v52 = vsel %vm309_vm1, %v3191_v19, %v3195_v45  ;;  %v3701_v43 = vsel %vm814_vm4, %v3697_v5, %v3700_v22 }
 0x5a2   :  { %v3140_v32 = vadd.f32 %v10314_v15, %v13266_v12  ;;  %v3078_v14 = vpop.f32.mrb[33].mxu0  ;;  %10329 = vmatmul.mubr.msk.bf16.vlgmr.msra.gmra.mrb[32].mxu1 %vm1315_vm6, %v3196_v52  ;;  %10437 = vmatmul.mubr.msk.bf16.vlgmr.msra.gmra.mrb[56].mxu0 %vm1315_vm6, %v3701_v43  ;;  %v3209_v29 = vshll.u32 %v13284_v38, 16  ;;  %v3213_v50 = vshrl.u32 %v13284_v38, 16 }
 0x5a3   :  { %v3138_v46 = vadd.f32 %v13266_v12, %v3078_v14  ;;  %v10315_v60 = vpop.f32.mrb[34].mxu0  ;;  %10357 = vmatpush3.bf16.msra.mxu1 %v11240_v20  ;;  %v3201_v49 = vshll.u32 %v13286_v47, 16  ;;  %v3205_v41 = vshrl.u32 %v13286_v47, 16  ;;  %10332 = vmatprep.mubr.msk.bf16.mxu1 %vm12145_vm7, %v12144_v34 }
 0x5a4   :  { %v3141_v42 = vadd.f32 %v10315_v60, %v13266_v12  ;;  %v3081_v26 = vpop.f32.mrb[35].mxu0  ;;  %10440 = vmatprep.mubr.msk.bf16.mxu0 %vm12145_vm7, %v12144_v34  ;;  %10358 = vmatprep.subr.bf16.mxu1 %v12144_v34  ;;  %v3155_v1 = vmax.f32 %v3140_v32, 0.0  ;;  %v3706_v40 = vrot.slane %v3213_v50, 1  ;;  %v3707_v3 = vrot.slane %v3209_v29, 2 }
 0x5a5   :  { %v3139_v21 = vadd.f32 %v13266_v12, %v3081_v26  ;;  %v3203_v39 = vrot.slane %v3201_v49, 1  ;;  %v3702_v7 = vrot.slane %v3205_v41, 1  ;;  %v3703_v44 = vrot.slane %v3201_v49, 2 }
 0x5a6   :  { %v3156_v63 = vmax.f32 %v3141_v42, 0.0  ;;  %v3153_v23 = vmax.f32 %v3138_v46, 0.0  ;;  %v3211_v13 = vrot.slane %v3209_v29, 1 }
 0x5a7   :  { %v3154_v27 = vmax.f32 %v3139_v21, 0.0  ;;  %10359 = vmatpush3.bf16.msra.mxu1 %v11241_v11  ;;  %v3704_v10 = vor.u32 %v3703_v44, %v3702_v7  ;;  %v3204_v57 = vsel %vm309_vm1, %v3199_v9, %v3203_v39  ;;  %v3207_v59 = vor.u32 %v3205_v41, %v3203_v39 }
 0x5a8   :  { %v13305_v28 = vpack.c.bf16 %v3156_v63, %v3155_v1  ;;  %10360 = vmatprep.subr.bf16.mxu1 %v12144_v34 }
 0x5a9   :  { %v13308_v53 = vpack.c.bf16 %v3154_v27, %v3153_v23  ;;  %v10318_v54 = vpop.f32.mrb[52].mxu0  ;;  %v3705_v58 = vsel %vm814_vm4, %v3700_v22, %v3704_v10  ;;  %v3212_v36 = vsel %vm309_vm1, %v3207_v59, %v3211_v13  ;;  %v3215_v22 = vor.u32 %v3213_v50, %v3211_v13 }
 0x5aa   :  { %v3122_v30 = vadd.f32 %v10318_v54, %v13260_v25  ;;  %v3094_v55 = vpop.f32.mrb[53].mxu0  ;;  %10333 = vmatmul.mubr.msk.bf16.gmra.mrb[36].mxu1 %vm1315_vm6, %v3204_v57  ;;  %10441 = vmatmul.mubr.msk.bf16.gmra.mrb[60].mxu0 %vm1315_vm6, %v3705_v58  ;;  %v11243_v25 = vld [vmem:[#allocation12 + $0x18] sm:$0xff]   ;;  %v3225_v20 = vshll.u32 %v13305_v28, 16  ;;  %v3229_v5 = vshrl.u32 %v13305_v28, 16  ;;  %v11244_v58 = vld [vmem:[#allocation12 + $0x40] sm:$0xff]   ;;  %v3526_v59 = vrot.slane %v13286_v47, 1 }
 0x5ab   :  { %v3120_v35 = vadd.f32 %v3094_v55, %v13262_v0  ;;  %v10319_v16 = vpop.f32.mrb[54].mxu0  ;;  %10336 = vmatprep.mubr.msk.bf16.mxu1 %vm12145_vm7, %v12144_v34  ;;  %10444 = vmatprep.mubr.msk.bf16.mxu0 %vm12145_vm7, %v12144_v34  ;;  %v3708_v0 = vor.u32 %v3707_v3, %v3706_v40  ;;  %v3217_v48 = vshll.u32 %v13308_v53, 16  ;;  %v3221_v6 = vshrl.u32 %v13308_v53, 16  ;;  %v11245_v40 = vld [vmem:[#allocation12 + $0x48] sm:$0xff]   ;;  %v11246_v3 = vld [vmem:[#allocation12 + $0x50] sm:$0xff]  }
 0x5ac   :  { %v3097_v18 = vpop.f32.mrb[55].mxu0  ;;  %10361 = vmatpush3.bf16.msra.mxu1 %v11242_v31  ;;  %v3714_v32 = vrot.slane %v3229_v5, 1  ;;  %v3715_v14 = vrot.slane %v3225_v20, 2  ;;  %v3144_v43 = vadd.f32 %v13266_v12, %v3122_v30  ;;  %v3227_v11 = vrot.slane %v3225_v20, 1 }
 0x5ad   :  { %v3142_v33 = vadd.f32 %v13266_v12, %v3120_v35  ;;  %v3121_v17 = vadd.f32 %v3097_v18, %v13264_v8  ;;  %10362 = vmatprep.subr.bf16.mxu1 %v12144_v34  ;;  %v3709_v8 = vsel %vm814_vm4, %v3704_v10, %v3708_v0  ;;  %v3710_v4 = vrot.slane %v3221_v6, 1  ;;  %v11247_v35 = vld [vmem:[#allocation12 + $0x58] sm:$0xff]  }
 0x5ae   :  { %v3711_v62 = vrot.slane %v3217_v48, 2  ;;  %v3219_v19 = vrot.slane %v3217_v48, 1  ;;  %v3716_v60 = vor.u32 %v3715_v14, %v3714_v32  ;;  %v3159_v42 = vmax.f32 %v3144_v43, 0.0 }
 0x5af   :  { %v3143_v51 = vadd.f32 %v13266_v12, %v3121_v17  ;;  %v3157_v24 = vmax.f32 %v3142_v33, 0.0  ;;  %v3231_v63 = vor.u32 %v3229_v5, %v3227_v11  ;;  %v3523_v16 = vrot.slane %v13274_v56, 1  ;;  %v11249_v17 = vld [vmem:[#allocation12 + $0x88] sm:$0xff]  }
 0x5b0   :  { %10363 = vmatpush3.bf16.msra.mxu1 %v11243_v25  ;;  %v3712_v45 = vor.u32 %v3711_v62, %v3710_v4  ;;  %v3220_v15 = vsel %vm309_vm1, %v3215_v22, %v3219_v19  ;;  %v3223_v46 = vor.u32 %v3221_v6, %v3219_v19  ;;  %v13356_v12 = vpack.c.bf16 %v3159_v42, %v3159_v42  ;;  %v11248_v25 = vld [vmem:[#allocation12 + $0x80] sm:$0xff]   ;;  %v11251_v6 = vld [vmem:[#allocation12 + $0x98] sm:$0xff]  }
 0x5b1   :  { %v3158_v37 = vmax.f32 %v3143_v51, 0.0  ;;  %10392 = vmatprep.subr.bf16.mxu1 %v12144_v34  ;;  %v3524_v18 = vrot.slane %v13272_v61, 1  ;;  %v3528_v51 = vrot.slane %v13284_v38, 1  ;;  %v3885_v20 = vrot.slane %v13274_v56, 2 }
 0x5b2   :  { %10337 = vmatmul.mubr.msk.bf16.gmra.mrb[40].mxu1 %vm1315_vm6, %v3212_v36  ;;  %10445 = vmatmul.mubr.msk.bf16.gmra.mrb[64].mxu0 %vm1315_vm6, %v3709_v8  ;;  %v3713_v52 = vsel %vm814_vm4, %v3708_v0, %v3712_v45  ;;  %v3228_v26 = vsel %vm309_vm1, %v3223_v46, %v3227_v11  ;;  %v3717_v21 = vsel %vm814_vm4, %v3712_v45, %v3716_v60  ;;  %v3241_v44 = vshll.u32 %v13356_v12, 16  ;;  %v11250_v0 = vld [vmem:[#allocation12 + $0x90] sm:$0xff]  }
 0x5b3   :  { %v13330_v2 = vpack.c.bf16 %v3158_v37, %v3157_v24  ;;  %10340 = vmatprep.mubr.msk.bf16.mxu1 %vm12145_vm7, %v12144_v34  ;;  %10448 = vmatprep.mubr.msk.bf16.mxu0 %vm12145_vm7, %v12144_v34  ;;  %v3722_v50 = vshrl.u32 %v13356_v12, 16  ;;  %v3525_v33 = vsel %vm645_vm3, %v3523_v16, %v3524_v18  ;;  %v3527_v48 = vsel %vm645_vm3, %v3524_v18, %v3526_v59 }
 0x5b4   :  { %v3725_v10 = vrot.slane %v3241_v44, 2  ;;  %v3243_v54 = vrot.slane %v3241_v44, 1  ;;  %v3529_v13 = vsel %vm645_vm3, %v3526_v59, %v3528_v51  ;;  %v3530_v24 = vrot.slane %v13308_v53, 1 }
 0x5b5   :  { %v3233_v49 = vshll.u32 %v13330_v2, 16  ;;  %v3237_v41 = vshrl.u32 %v13330_v2, 16  ;;  %v3724_v9 = vrot.slane %v3722_v50, 1  ;;  %v3532_v36 = vrot.slane %v13305_v28, 1 }
 0x5b6   :  { %v3531_v37 = vsel %vm645_vm3, %v3528_v51, %v3530_v24  ;;  %v3534_v4 = vrot.slane %v13330_v2, 1  ;;  %v3536_v19 = vrot.slane %v13356_v12, 1  ;;  %v3886_v5 = vrot.slane %v13272_v61, 2 }
 0x5b7   :  { %v3718_v39 = vrot.slane %v3237_v41, 1  ;;  %v3719_v7 = vrot.slane %v3233_v49, 2  ;;  %v3235_v29 = vrot.slane %v3233_v49, 1  ;;  %v3726_v57 = vor.u32 %v3725_v10, %v3724_v9 }
 0x5b8   :  { %v3533_v8 = vsel %vm645_vm3, %v3530_v24, %v3532_v36  ;;  %v3535_v62 = vsel %vm645_vm3, %v3532_v36, %v3534_v4  ;;  %v3537_v45 = vsel %vm645_vm3, %v3534_v4, %v3536_v19  ;;  %v3887_v22 = vsel %vm999_vm5, %v3885_v20, %v3886_v5 }
 0x5b9   :  { %v3720_v1 = vor.u32 %v3719_v7, %v3718_v39  ;;  %v3236_v23 = vsel %vm309_vm1, %v3231_v63, %v3235_v29  ;;  %v3239_v31 = vor.u32 %v3237_v41, %v3235_v29  ;;  %v3892_v32 = vrot.slane %v13308_v53, 2 }
 0x5ba   :  { %10341 = vmatmul.mubr.msk.bf16.gmra.mrb[44].mxu1 %vm1315_vm6, %v3220_v15  ;;  %10449 = vmatmul.mubr.msk.bf16.gmra.mrb[68].mxu0 %vm1315_vm6, %v3713_v52  ;;  %v3888_v15 = vrot.slane %v13286_v47, 2  ;;  %v3894_v14 = vrot.slane %v13305_v28, 2  ;;  %v3896_v43 = vrot.slane %v13330_v2, 2  ;;  %v3898_v11 = vrot.slane %v13356_v12, 2 }
 0x5bb   :  { %10344 = vmatprep.mubr.msk.bf16.mxu1 %vm12145_vm7, %v12144_v34  ;;  %10452 = vmatprep.mubr.msk.bf16.mxu0 %vm12145_vm7, %v12144_v34  ;;  %v3721_v27 = vsel %vm814_vm4, %v3716_v60, %v3720_v1  ;;  %v3244_v30 = vsel %vm309_vm1, %v3239_v31, %v3243_v54  ;;  %v3727_v55 = vsel %vm814_vm4, %v3720_v1, %v3726_v57 }
 0x5bc   :  { %v3889_v52 = vsel %vm999_vm5, %v3886_v5, %v3888_v15 }
 0x5c2   :  { %10345 = vmatmul.mubr.msk.bf16.gmra.mrb[48].mxu1 %vm1315_vm6, %v3228_v26  ;;  %10453 = vmatmul.mubr.msk.bf16.gmra.mrb[72].mxu0 %vm1315_vm6, %v3717_v21 }
 0x5c3   :  { %10348 = vmatprep.mubr.msk.bf16.mxu1 %vm12145_vm7, %v12144_v34  ;;  %10456 = vmatprep.mubr.msk.bf16.mxu0 %vm12145_vm7, %v12144_v34 }
 0x5ca   :  { %10349 = vmatmul.mubr.msk.bf16.gmra.mrb[52].mxu1 %vm1315_vm6, %v3236_v23  ;;  %10457 = vmatmul.mubr.msk.bf16.gmra.mrb[76].mxu0 %vm1315_vm6, %v3721_v27 }
 0x5cb   :  { %10352 = vmatprep.mubr.msk.bf16.mxu1 %vm12145_vm7, %v12144_v34  ;;  %10460 = vmatprep.mubr.msk.bf16.mxu0 %vm12145_vm7, %v12144_v34 }
 0x5d2   :  { %10353 = vmatmul.mubr.msk.bf16.gmra.mrb[56].mxu1 %vm1315_vm6, %v3244_v30  ;;  %10461 = vmatmul.mubr.msk.bf16.gmra.mrb[80].mxu0 %vm1315_vm6, %v3727_v55 }
 0x5d3   :  { %10364 = vmatprep.mubr.msk.bf16.mxu1 %vm12145_vm7, %v12144_v34 }
 0x5da   :  { %10365 = vmatmul.mubr.msk.bf16.vlgmr.msra.gmra.mrb[60].mxu1 %vm1315_vm6, %v13274_v56  ;;  %v3890_v56 = vrot.slane %v13284_v38, 2 }
 0x5db   :  { %10393 = vmatpush3.bf16.msra.mxu1 %v11244_v58  ;;  %10368 = vmatprep.mubr.msk.bf16.mxu1 %vm12145_vm7, %v12144_v34 }
 0x5dc   :  { %10394 = vmatprep.subr.bf16.mxu1 %v12144_v34 }
 0x5df   :  { %10395 = vmatpush3.bf16.msra.mxu1 %v11245_v40 }
 0x5e0   :  { %10396 = vmatprep.subr.bf16.mxu1 %v12144_v34 }
 0x5e2   :  { %10369 = vmatmul.mubr.msk.bf16.gmra.mrb[64].mxu1 %vm1315_vm6, %v13272_v61  ;;  %v3891_v61 = vsel %vm999_vm5, %v3888_v15, %v3890_v56 }
 0x5e3   :  { %10372 = vmatprep.mubr.msk.bf16.mxu1 %vm12145_vm7, %v12144_v34  ;;  %10397 = vmatpush3.bf16.msra.mxu1 %v11246_v3 }
 0x5e4   :  { %10398 = vmatprep.subr.bf16.mxu1 %v12144_v34 }
 0x5e7   :  { %10399 = vmatpush3.bf16.msra.mxu1 %v11247_v35 }
 0x5e8   :  { %10464 = vmatprep.subr.bf16.mxu1 %v12144_v34 }
 0x5ea   :  { %10373 = vmatmul.mubr.msk.bf16.gmra.mrb[68].mxu1 %vm1315_vm6, %v13286_v47  ;;  %v3893_v47 = vsel %vm999_vm5, %v3890_v56, %v3892_v32 }
 0x5eb   :  { %10376 = vmatprep.mubr.msk.bf16.mxu1 %vm12145_vm7, %v12144_v34 }
 0x5f2   :  { %10377 = vmatmul.mubr.msk.bf16.gmra.mrb[72].mxu1 %vm1315_vm6, %v13284_v38  ;;  %v3895_v38 = vsel %vm999_vm5, %v3892_v32, %v3894_v14 }
 0x5f3   :  { %10380 = vmatprep.mubr.msk.bf16.mxu1 %vm12145_vm7, %v12144_v34 }
 0x5fa   :  { %10381 = vmatmul.mubr.msk.bf16.gmra.mrb[76].mxu1 %vm1315_vm6, %v13308_v53  ;;  %v3897_v53 = vsel %vm999_vm5, %v3894_v14, %v3896_v43 }
 0x5fb   :  { %10384 = vmatprep.mubr.msk.bf16.mxu1 %vm12145_vm7, %v12144_v34 }
 0x602   :  { %10385 = vmatmul.mubr.msk.bf16.gmra.mrb[80].mxu1 %vm1315_vm6, %v13305_v28 }
 0x603   :  { %10388 = vmatprep.mubr.msk.bf16.mxu1 %vm12145_vm7, %v12144_v34 }
 0x60a   :  { %10389 = vmatmul.mubr.msk.bf16.gmra.mrb[84].mxu1 %vm1315_vm6, %v13330_v2  ;;  %v3899_v2 = vsel %vm999_vm5, %v3896_v43, %v3898_v11 }
 0x60b   :  { %10400 = vmatprep.mubr.msk.bf16.mxu1 %vm12145_vm7, %v12144_v34 }
 0x612   :  { %10401 = vmatmul.mubr.msk.bf16.vlgmr.msra.gmra.mrb[88].mxu1 %vm1315_vm6, %v3525_v33 }
 0x613   :  { %10465 = vmatpush3.bf16.msra.mxu1 %v11248_v25  ;;  %10404 = vmatprep.mubr.msk.bf16.mxu1 %vm12145_vm7, %v12144_v34 }
 0x614   :  { %10466 = vmatprep.subr.bf16.mxu1 %v12144_v34 }
 0x617   :  { %10467 = vmatpush3.bf16.msra.mxu1 %v11249_v17 }
 0x618   :  { %10468 = vmatprep.subr.bf16.mxu1 %v12144_v34 }
 0x61a   :  { %10405 = vmatmul.mubr.msk.bf16.gmra.mrb[92].mxu1 %vm1315_vm6, %v3527_v48 }
 0x61b   :  { %10408 = vmatprep.mubr.msk.bf16.mxu1 %vm12145_vm7, %v12144_v34  ;;  %10469 = vmatpush3.bf16.msra.mxu1 %v11250_v0 }
 0x61c   :  { %10470 = vmatprep.subr.bf16.mxu1 %v12144_v34 }
 0x61f   :  { %10471 = vmatpush3.bf16.msra.mxu1 %v11251_v6 }
 0x622   :  { %10409 = vmatmul.mubr.msk.bf16.gmra.mrb[96].mxu1 %vm1315_vm6, %v3529_v13 }
 0x623   :  { %10412 = vmatprep.mubr.msk.bf16.mxu1 %vm12145_vm7, %v12144_v34 }
 0x62a   :  { %10413 = vmatmul.mubr.msk.bf16.gmra.mrb[100].mxu1 %vm1315_vm6, %v3531_v37 }
 0x62b   :  { %10416 = vmatprep.mubr.msk.bf16.mxu1 %vm12145_vm7, %v12144_v34 }
 0x632   :  { %10417 = vmatmul.mubr.msk.bf16.gmra.mrb[104].mxu1 %vm1315_vm6, %v3533_v8 }
 0x633   :  { %10420 = vmatprep.mubr.msk.bf16.mxu1 %vm12145_vm7, %v12144_v34 }
 0x63a   :  { %10421 = vmatmul.mubr.msk.bf16.gmra.mrb[108].mxu1 %vm1315_vm6, %v3535_v62 }
 0x63b   :  { %10424 = vmatprep.mubr.msk.bf16.mxu1 %vm12145_vm7, %v12144_v34 }
 0x642   :  { %10425 = vmatmul.mubr.msk.bf16.gmra.mrb[112].mxu1 %vm1315_vm6, %v3537_v45 }
 0x643   :  { %10472 = vmatprep.mubr.msk.bf16.mxu1 %vm12145_vm7, %v12144_v34 }
 0x64a   :  { %10473 = vmatmul.mubr.msk.bf16.vlgmr.msra.gmra.mrb[116].mxu1 %vm1315_vm6, %v3887_v22 }
 0x64b   :  { %10476 = vmatprep.mubr.msk.bf16.mxu1 %vm12145_vm7, %v12144_v34 }
 0x652   :  { %10477 = vmatmul.mubr.msk.bf16.gmra.mrb[120].mxu1 %vm1315_vm6, %v3889_v52 }
 0x653   :  { %10480 = vmatprep.mubr.msk.bf16.mxu1 %vm12145_vm7, %v12144_v34 }
 0x65a   :  { %10481 = vmatmul.mubr.msk.bf16.gmra.mrb[124].mxu1 %vm1315_vm6, %v3891_v61 }
 0x65b   :  { %10484 = vmatprep.mubr.msk.bf16.mxu1 %vm12145_vm7, %v12144_v34 }
 0x662   :  { %10485 = vmatmul.mubr.msk.bf16.gmra.mrb[128].mxu1 %vm1315_vm6, %v3893_v47 }
 0x663   :  { %10488 = vmatprep.mubr.msk.bf16.mxu1 %vm12145_vm7, %v12144_v34 }
 0x66a   :  { %10489 = vmatmul.mubr.msk.bf16.gmra.mrb[132].mxu1 %vm1315_vm6, %v3895_v38 }
 0x66b   :  { %10492 = vmatprep.mubr.msk.bf16.mxu1 %vm12145_vm7, %v12144_v34 }
 0x672   :  { %10493 = vmatmul.mubr.msk.bf16.gmra.mrb[136].mxu1 %vm1315_vm6, %v3897_v53 }
 0x673   :  { %10496 = vmatprep.mubr.msk.bf16.mxu1 %vm12145_vm7, %v12144_v34 }
 0x675   :  { %v3324_v46 = vpop.f32.mrb[32].mxu1  ;;  %v13478_v60 = vpop.f32.mrb[56].mxu0 }
 0x676   :  { %v10330_v28 = vpop.f32.mrb[33].mxu1  ;;  %v10438_v49 = vpop.f32.mrb[57].mxu0 }
 0x677   :  { %v3327_v41 = vpop.f32.mrb[34].mxu1  ;;  %v13481_v42 = vpop.f32.mrb[58].mxu0 }
 0x678   :  { %v10331_v26 = vpop.f32.mrb[35].mxu1  ;;  %v10439_v21 = vpop.f32.mrb[59].mxu0 }
 0x67a   :  { %10497 = vmatmul.mubr.msk.bf16.gmra.mrb[140].mxu1 %vm1315_vm6, %v3899_v2 }
 0x67d   :  { %v3332_v39 = vpop.f32.mrb[36].mxu1  ;;  %v13485_v7 = vpop.f32.mrb[60].mxu0 }
 0x67e   :  { %v10334_v29 = vpop.f32.mrb[37].mxu1  ;;  %v10442_v1 = vpop.f32.mrb[61].mxu0 }
 0x67f   :  { %v3335_v63 = vpop.f32.mrb[38].mxu1  ;;  %v13487_v44 = vpop.f32.mrb[62].mxu0 }
 0x680   :  { %v10335_v50 = vpop.f32.mrb[39].mxu1  ;;  %v10443_v23 = vpop.f32.mrb[63].mxu0 }
 0x685   :  { %v3340_v27 = vpop.f32.mrb[40].mxu1  ;;  %v13489_v12 = vpop.f32.mrb[64].mxu0 }
 0x686   :  { %v10338_v9 = vpop.f32.mrb[41].mxu1  ;;  %v10446_v10 = vpop.f32.mrb[65].mxu0 }
 0x687   :  { %v3343_v31 = vpop.f32.mrb[42].mxu1  ;;  %v13491_v54 = vpop.f32.mrb[66].mxu0 }
 0x688   :  { %v10339_v57 = vpop.f32.mrb[43].mxu1  ;;  %v10447_v30 = vpop.f32.mrb[67].mxu0 }
 0x68d   :  { %v3348_v55 = vpop.f32.mrb[44].mxu1  ;;  %v13493_v58 = vpop.f32.mrb[68].mxu0 }
 0x68e   :  { %v10342_v40 = vpop.f32.mrb[45].mxu1  ;;  %v10450_v3 = vpop.f32.mrb[69].mxu0 }
 0x68f   :  { %v3351_v35 = vpop.f32.mrb[46].mxu1  ;;  %v13495_v16 = vpop.f32.mrb[70].mxu0 }
 0x690   :  { %v10343_v18 = vpop.f32.mrb[47].mxu1  ;;  %v10451_v25 = vpop.f32.mrb[71].mxu0 }
 0x695   :  { %v3356_v33 = vpop.f32.mrb[48].mxu1  ;;  %v13497_v17 = vpop.f32.mrb[72].mxu0 }
 0x696   :  { %v10346_v59 = vpop.f32.mrb[49].mxu1  ;;  %v10454_v0 = vpop.f32.mrb[73].mxu0 }
 0x697   :  { %v3359_v48 = vpop.f32.mrb[50].mxu1  ;;  %v13499_v6 = vpop.f32.mrb[74].mxu0 }
 0x698   :  { %v10347_v51 = vpop.f32.mrb[51].mxu1  ;;  %v10455_v13 = vpop.f32.mrb[75].mxu0 }
 0x69d   :  { %v3364_v24 = vpop.f32.mrb[52].mxu1  ;;  %v13501_v37 = vpop.f32.mrb[76].mxu0 }
 0x69e   :  { %v10350_v36 = vpop.f32.mrb[53].mxu1  ;;  %v10458_v8 = vpop.f32.mrb[77].mxu0 }
 0x69f   :  { %v3367_v4 = vpop.f32.mrb[54].mxu1  ;;  %v13503_v62 = vpop.f32.mrb[78].mxu0 }
 0x6a0   :  { %v10351_v19 = vpop.f32.mrb[55].mxu1  ;;  %v10459_v45 = vpop.f32.mrb[79].mxu0 }
 0x6a1   :  { %v11252_v19 = vld [vmem:[#allocation15] sm:$0xff]  }
 0x6a2   :  { %10514 = vmatprep.mubr.msk.bf16.mxu0 %vm4115_vm8, %v11252_v19 }
 0x6a5   :  { %v3372_v20 = vpop.f32.mrb[56].mxu1  ;;  %v13505_v5 = vpop.f32.mrb[80].mxu0 }
 0x6a6   :  { %v10354_v22 = vpop.f32.mrb[57].mxu1  ;;  %v10462_v15 = vpop.f32.mrb[81].mxu0 }
 0x6a7   :  { %v3375_v52 = vpop.f32.mrb[58].mxu1  ;;  %v13507_v56 = vpop.f32.mrb[82].mxu0 }
 0x6a8   :  { %v10355_v61 = vpop.f32.mrb[59].mxu1  ;;  %v10463_v32 = vpop.f32.mrb[83].mxu0 }
 0x6ad   :  { %v3451_v47 = vpop.f32.mrb[60].mxu1 }
 0x6ae   :  { %v3452_v14 = vadd.f32 %v3451_v47, %v3324_v46  ;;  %v10366_v38 = vpop.f32.mrb[61].mxu1 }
 0x6af   :  { %v3454_v43 = vpop.f32.mrb[62].mxu1 }
 0x6b0   :  { %v3455_v53 = vadd.f32 %v3454_v43, %v3327_v41  ;;  %v10367_v28 = vpop.f32.mrb[63].mxu1 }
 0x6b1   :  { %v11258_v28 = vld [vmem:[%s14230_s10 + $0x50] sm:$0xff]  }
 0x6b5   :  { %v3459_v49 = vpop.f32.mrb[64].mxu1 }
 0x6b6   :  { %v3460_v11 = vadd.f32 %v3459_v49, %v3332_v39  ;;  %v10370_v26 = vpop.f32.mrb[65].mxu1 }
 0x6b7   :  { %v3462_v21 = vpop.f32.mrb[66].mxu1 }
 0x6b8   :  { %v3463_v2 = vadd.f32 %v3462_v21, %v3335_v63  ;;  %v10371_v29 = vpop.f32.mrb[67].mxu1 }
 0x6bd   :  { %v3467_v1 = vpop.f32.mrb[68].mxu1 }
 0x6be   :  { %v13509_v50 = vadd.f32 %v3467_v1, %v3340_v27  ;;  %v10374_v23 = vpop.f32.mrb[69].mxu1 }
 0x6bf   :  { %v3470_v9 = vpop.f32.mrb[70].mxu1 }
 0x6c0   :  { %v13511_v10 = vadd.f32 %v3470_v9, %v3343_v31  ;;  %v10375_v57 = vpop.f32.mrb[71].mxu1 }
 0x6c5   :  { %v3475_v30 = vpop.f32.mrb[72].mxu1 }
 0x6c6   :  { %v13513_v46 = vadd.f32 %v3475_v30, %v3348_v55  ;;  %v10378_v40 = vpop.f32.mrb[73].mxu1 }
 0x6c7   :  { %v3478_v41 = vpop.f32.mrb[74].mxu1 }
 0x6c8   :  { %v13515_v3 = vadd.f32 %v3478_v41, %v3351_v35  ;;  %v10379_v39 = vpop.f32.mrb[75].mxu1 }
 0x6cd   :  { %v3483_v18 = vpop.f32.mrb[76].mxu1 }
 0x6ce   :  { %v13517_v25 = vadd.f32 %v3483_v18, %v3356_v33  ;;  %v10382_v63 = vpop.f32.mrb[77].mxu1 }
 0x6cf   :  { %v3486_v59 = vpop.f32.mrb[78].mxu1 }
 0x6d0   :  { %v13519_v27 = vadd.f32 %v3486_v59, %v3359_v48  ;;  %v10383_v0 = vpop.f32.mrb[79].mxu1 }
 0x6d5   :  { %v3491_v51 = vpop.f32.mrb[80].mxu1 }
 0x6d6   :  { %v13521_v31 = vadd.f32 %v3491_v51, %v3364_v24  ;;  %v10386_v13 = vpop.f32.mrb[81].mxu1  ;;  %v11256_v24 = vld [vmem:[%s14230_s10 + $0x40] sm:$0xff]  }
 0x6d7   :  { %v3494_v36 = vpop.f32.mrb[82].mxu1  ;;  %10522 = vmatprep.subr.bf16.mxu1 %v11256_v24 }
 0x6d8   :  { %v13523_v55 = vadd.f32 %v3494_v36, %v3367_v4  ;;  %v10387_v8 = vpop.f32.mrb[83].mxu1  ;;  %v11257_v4 = vld [vmem:[%s14230_s10 + $0x48] sm:$0xff]   ;;  %10523 = vmatpush3.bf16.msra.mxu1 %v11256_v24 }
 0x6d9   :  { %10524 = vmatprep.subr.bf16.mxu1 %v11257_v4 }
 0x6dc   :  { %10525 = vmatpush3.bf16.msra.mxu1 %v11257_v4 }
 0x6dd   :  { %v3499_v35 = vpop.f32.mrb[84].mxu1  ;;  %10526 = vmatprep.subr.bf16.mxu1 %v11258_v28 }
 0x6de   :  { %v13526_v33 = vadd.f32 %v3499_v35, %v3372_v20  ;;  %v10390_v45 = vpop.f32.mrb[85].mxu1 }
 0x6df   :  { %v3502_v22 = vpop.f32.mrb[86].mxu1 }
 0x6e0   :  { %v13528_v48 = vadd.f32 %v3502_v22, %v3375_v52  ;;  %v10391_v15 = vpop.f32.mrb[87].mxu1  ;;  %10527 = vmatpush3.bf16.msra.mxu1 %v11258_v28 }
 0x6e5   :  { %v3617_v61 = vpop.f32.mrb[88].mxu1 }
 0x6e6   :  { %v3672_v32 = vadd.f32 %v3617_v61, %v3452_v14  ;;  %v10402_v47 = vpop.f32.mrb[89].mxu1  ;;  %v11259_v14 = vld [vmem:[%s14230_s10 + $0x58] sm:$0xff]  }
 0x6e7   :  { %v3620_v38 = vpop.f32.mrb[90].mxu1  ;;  %10528 = vmatprep.subr.bf16.mxu1 %v11259_v14 }
 0x6e8   :  { %v3673_v20 = vadd.f32 %v3620_v38, %v3455_v53  ;;  %v10403_v43 = vpop.f32.mrb[91].mxu1  ;;  %v13537_v52 = vadd.f32 %v13478_v60, %v3672_v32  ;;  %10529 = vmatpush3.bf16.msra.mxu1 %v11259_v14 }
 0x6ea   :  { %v13543_v49 = vadd.f32 %v13481_v42, %v3673_v20  ;;  %v11260_v42 = vld [vmem:[%s14230_s10 + $0x60] sm:$0xff]  }
 0x6eb   :  { %10530 = vmatprep.subr.bf16.mxu1 %v11260_v42 }
 0x6ec   :  { %10531 = vmatpush3.bf16.msra.mxu1 %v11260_v42 }
 0x6ed   :  { %v3625_v26 = vpop.f32.mrb[92].mxu1 }
 0x6ee   :  { %v3674_v53 = vadd.f32 %v3625_v26, %v3460_v11  ;;  %v10406_v21 = vpop.f32.mrb[93].mxu1 }
 0x6ef   :  { %v3628_v29 = vpop.f32.mrb[94].mxu1 }
 0x6f0   :  { %v3675_v60 = vadd.f32 %v3628_v29, %v3463_v2  ;;  %v10407_v1 = vpop.f32.mrb[95].mxu1  ;;  %v3864_v23 = vadd.f32 %v13485_v7, %v3674_v53 }
 0x6f2   :  { %v3865_v9 = vadd.f32 %v13487_v44, %v3675_v60 }
 0x6f5   :  { %v3633_v57 = vpop.f32.mrb[96].mxu1 }
 0x6f6   :  { %v3676_v30 = vadd.f32 %v3633_v57, %v13509_v50  ;;  %v10410_v11 = vpop.f32.mrb[97].mxu1 }
 0x6f7   :  { %v3636_v40 = vpop.f32.mrb[98].mxu1 }
 0x6f8   :  { %v3677_v2 = vadd.f32 %v3636_v40, %v13511_v10  ;;  %v10411_v41 = vpop.f32.mrb[99].mxu1  ;;  %v3866_v7 = vadd.f32 %v13489_v12, %v3676_v30 }
 0x6fa   :  { %v13557_v39 = vadd.f32 %v13491_v54, %v3677_v2 }
 0x6fd   :  { %v3641_v18 = vpop.f32.mrb[100].mxu1 }
 0x6fe   :  { %v3678_v63 = vadd.f32 %v3641_v18, %v13513_v46  ;;  %v10414_v44 = vpop.f32.mrb[101].mxu1 }
 0x6ff   :  { %v3644_v59 = vpop.f32.mrb[102].mxu1 }
 0x700   :  { %v3679_v0 = vadd.f32 %v3644_v59, %v13515_v3  ;;  %v10415_v51 = vpop.f32.mrb[103].mxu1  ;;  %v13562_v50 = vadd.f32 %v13493_v58, %v3678_v63 }
 0x702   :  { %v13565_v13 = vadd.f32 %v13495_v16, %v3679_v0 }
 0x705   :  { %v3649_v10 = vpop.f32.mrb[104].mxu1 }
 0x706   :  { %v3680_v12 = vadd.f32 %v3649_v10, %v13517_v25  ;;  %v10418_v36 = vpop.f32.mrb[105].mxu1 }
 0x707   :  { %v3652_v54 = vpop.f32.mrb[106].mxu1 }
 0x708   :  { %v3681_v8 = vadd.f32 %v3652_v54, %v13519_v27  ;;  %v10419_v19 = vpop.f32.mrb[107].mxu1  ;;  %v13570_v46 = vadd.f32 %v13497_v17, %v3680_v12 }
 0x70a   :  { %v13573_v3 = vadd.f32 %v13499_v6, %v3681_v8 }
 0x70d   :  { %v3657_v35 = vpop.f32.mrb[108].mxu1 }
 0x70e   :  { %v3682_v58 = vadd.f32 %v3657_v35, %v13521_v31  ;;  %v10422_v45 = vpop.f32.mrb[109].mxu1 }
 0x70f   :  { %v3660_v16 = vpop.f32.mrb[110].mxu1 }
 0x710   :  { %v3683_v22 = vadd.f32 %v3660_v16, %v13523_v55  ;;  %v10423_v15 = vpop.f32.mrb[111].mxu1  ;;  %v13578_v25 = vadd.f32 %v13501_v37, %v3682_v58  ;;  %v13591_v37 = vld [vmem:[#allocation13] ss:$0 sm:$0xff] }
 0x712   :  { %v13581_v27 = vadd.f32 %v13503_v62, %v3683_v22 }
 0x715   :  { %v3665_v24 = vpop.f32.mrb[112].mxu1 }
 0x716   :  { %v3684_v17 = vadd.f32 %v3665_v24, %v13526_v33  ;;  %v10426_v4 = vpop.f32.mrb[113].mxu1 }
 0x717   :  { %v3668_v6 = vpop.f32.mrb[114].mxu1 }
 0x718   :  { %v3685_v61 = vadd.f32 %v3668_v6, %v13528_v48  ;;  %v10427_v32 = vpop.f32.mrb[115].mxu1  ;;  %v13586_v31 = vadd.f32 %v13505_v5, %v3684_v17 }
 0x71a   :  { %v13589_v55 = vadd.f32 %v13507_v56, %v3685_v61 }
 0x71d   :  { %v3979_v47 = vpop.f32.mrb[116].mxu1 }
 0x71e   :  { %v4034_v62 = vadd.f32 %v3979_v47, %v13537_v52  ;;  %v10474_v38 = vpop.f32.mrb[117].mxu1 }
 0x71f   :  { %v3982_v20 = vpop.f32.mrb[118].mxu1 }
 0x720   :  { %v4055_v33 = vadd.f32 %v13591_v37, %v4034_v62  ;;  %v4035_v43 = vadd.f32 %v3982_v20, %v13543_v49  ;;  %v10475_v28 = vpop.f32.mrb[119].mxu1 }
 0x722   :  { %v4056_v48 = vadd.f32 %v13591_v37, %v4035_v43  ;;  %v4069_v14 = vmax.f32 %v4055_v33, 0.0 }
 0x724   :  { %v4070_v5 = vmax.f32 %v4056_v48, 0.0 }
 0x725   :  { %v3987_v26 = vpop.f32.mrb[120].mxu1 }
 0x726   :  { %v4036_v53 = vadd.f32 %v3987_v26, %v3864_v23  ;;  %v10478_v56 = vpop.f32.mrb[121].mxu1  ;;  %v4083_v21 = vpack.c.bf16 %v4070_v5, %v4069_v14 }
 0x727   :  { %v3990_v29 = vpop.f32.mrb[122].mxu1 }
 0x728   :  { %v4057_v60 = vadd.f32 %v13591_v37, %v4036_v53  ;;  %v4037_v1 = vadd.f32 %v3990_v29, %v3865_v9  ;;  %v10479_v52 = vpop.f32.mrb[123].mxu1  ;;  %10500 = vmatprep.subr.bf16.mxu0 %v4083_v21 }
 0x729   :  { %10501 = vmatpush3.bf16.msra.mxu0 %v4083_v21  ;;  %v11253_v52 = vld [vmem:[#allocation15 + $0x8] sm:$0xff]  }
 0x72a   :  { %v4058_v42 = vadd.f32 %v13591_v37, %v4037_v1  ;;  %v4071_v57 = vmax.f32 %v4057_v60, 0.0 }
 0x72c   :  { %v4072_v49 = vmax.f32 %v4058_v42, 0.0  ;;  %v11254_v42 = vld [vmem:[#allocation15 + $0x10] sm:$0xff]  }
 0x72d   :  { %v3995_v30 = vpop.f32.mrb[124].mxu1 }
 0x72e   :  { %v4038_v11 = vadd.f32 %v3995_v30, %v3866_v7  ;;  %v10482_v40 = vpop.f32.mrb[125].mxu1  ;;  %v4084_v2 = vpack.c.bf16 %v4072_v49, %v4071_v57  ;;  %v11263_v57 = vld [vmem:[%s14230_s10 + $0x78] sm:$0xff]   ;;  %v13636_v49 = vld [vmem:[%s14230_s10] sm:$0xff]  }
 0x72f   :  { %v3998_v41 = vpop.f32.mrb[126].mxu1 }
 0x730   :  { %v4059_v23 = vadd.f32 %v13591_v37, %v4038_v11  ;;  %v4039_v18 = vadd.f32 %v3998_v41, %v13557_v39  ;;  %v10483_v63 = vpop.f32.mrb[127].mxu1  ;;  %10502 = vmatprep.subr.bf16.mxu0 %v4084_v2 }
 0x731   :  { %10503 = vmatpush3.bf16.msra.mxu0 %v4084_v2 }
 0x732   :  { %v4060_v9 = vadd.f32 %v13591_v37, %v4039_v18  ;;  %v4073_v44 = vmax.f32 %v4059_v23, 0.0 }
 0x734   :  { %v4074_v59 = vmax.f32 %v4060_v9, 0.0 }
 0x735   :  { %v4003_v0 = vpop.f32.mrb[128].mxu1 }
 0x736   :  { %v4040_v51 = vadd.f32 %v4003_v0, %v13562_v50  ;;  %v10486_v10 = vpop.f32.mrb[129].mxu1  ;;  %v4085_v12 = vpack.c.bf16 %v4074_v59, %v4073_v44 }
 0x737   :  { %v4006_v7 = vpop.f32.mrb[130].mxu1 }
 0x738   :  { %v4061_v36 = vadd.f32 %v13591_v37, %v4040_v51  ;;  %v4041_v54 = vadd.f32 %v4006_v7, %v13565_v13  ;;  %v10487_v8 = vpop.f32.mrb[131].mxu1  ;;  %10504 = vmatprep.subr.bf16.mxu0 %v4085_v12 }
 0x739   :  { %10505 = vmatpush3.bf16.msra.mxu0 %v4085_v12 }
 0x73a   :  { %v4062_v39 = vadd.f32 %v13591_v37, %v4041_v54  ;;  %v4075_v19 = vmax.f32 %v4061_v36, 0.0 }
 0x73c   :  { %v4076_v35 = vmax.f32 %v4062_v39, 0.0 }
 0x73d   :  { %v4011_v58 = vpop.f32.mrb[132].mxu1 }
 0x73e   :  { %v4042_v45 = vadd.f32 %v4011_v58, %v13570_v46  ;;  %v10490_v16 = vpop.f32.mrb[133].mxu1  ;;  %v4086_v22 = vpack.c.bf16 %v4076_v35, %v4075_v19 }
 0x73f   :  { %v4014_v50 = vpop.f32.mrb[134].mxu1 }
 0x740   :  { %v4063_v15 = vadd.f32 %v13591_v37, %v4042_v45  ;;  %v4043_v24 = vadd.f32 %v4014_v50, %v13573_v3  ;;  %v10491_v17 = vpop.f32.mrb[135].mxu1  ;;  %10506 = vmatprep.subr.bf16.mxu0 %v4086_v22 }
 0x741   :  { %10507 = vmatpush3.bf16.msra.mxu0 %v4086_v22 }
 0x742   :  { %v4064_v13 = vadd.f32 %v13591_v37, %v4043_v24  ;;  %v4077_v4 = vmax.f32 %v4063_v15, 0.0 }
 0x744   :  { %v4078_v6 = vmax.f32 %v4064_v13, 0.0 }
 0x745   :  { %v4019_v61 = vpop.f32.mrb[136].mxu1 }
 0x746   :  { %v4044_v32 = vadd.f32 %v4019_v61, %v13578_v25  ;;  %v10494_v47 = vpop.f32.mrb[137].mxu1  ;;  %v4087_v62 = vpack.c.bf16 %v4078_v6, %v4077_v4 }
 0x747   :  { %v4022_v46 = vpop.f32.mrb[138].mxu1 }
 0x748   :  { %v4065_v38 = vadd.f32 %v13591_v37, %v4044_v32  ;;  %v4045_v20 = vadd.f32 %v4022_v46, %v13581_v27  ;;  %v10495_v33 = vpop.f32.mrb[139].mxu1  ;;  %10508 = vmatprep.subr.bf16.mxu0 %v4087_v62 }
 0x749   :  { %10509 = vmatpush3.bf16.msra.mxu0 %v4087_v62 }
 0x74a   :  { %v4066_v3 = vadd.f32 %v13591_v37, %v4045_v20  ;;  %v4079_v43 = vmax.f32 %v4065_v38, 0.0 }
 0x74c   :  { %v4080_v28 = vmax.f32 %v4066_v3, 0.0 }
 0x74d   :  { %v4027_v48 = vpop.f32.mrb[140].mxu1 }
 0x74e   :  { %v4046_v14 = vadd.f32 %v4027_v48, %v13586_v31  ;;  %v10498_v5 = vpop.f32.mrb[141].mxu1  ;;  %v4088_v26 = vpack.c.bf16 %v4080_v28, %v4079_v43  ;;  %v11255_v31 = vld [vmem:[#allocation15 + $0x18] ss:$0 sps:$4 sm:$0xff]  }
 0x74f   :  { %v4030_v25 = vpop.f32.mrb[142].mxu1 }
 0x750   :  { %v4067_v53 = vadd.f32 %v13591_v37, %v4046_v14  ;;  %v4047_v56 = vadd.f32 %v4030_v25, %v13589_v55  ;;  %v10499_v21 = vpop.f32.mrb[143].mxu1  ;;  %10510 = vmatprep.subr.bf16.mxu0 %v4088_v26  ;;  %v11261_v55 = vld [vmem:[%s14230_s10 + $0x68] sm:$0xff]  }
 0x751   :  { %10511 = vmatpush3.bf16.msra.mxu0 %v4088_v26  ;;  %10532 = vmatprep.subr.bf16.mxu1 %v11261_v55 }
 0x752   :  { %v4068_v27 = vadd.f32 %v13591_v37, %v4047_v56  ;;  %v4081_v29 = vmax.f32 %v4067_v53, 0.0  ;;  %10533 = vmatpush3.bf16.msra.mxu1 %v11261_v55  ;;  %v11262_v37 = vld [vmem:[%s14230_s10 + $0x70] sm:$0xff]   ;;  %v11265_v53 = vld [vmem:[%s14230_s10 + $0x8] sm:$0xff]  }
 0x753   :  { %10534 = vmatprep.subr.bf16.mxu1 %v11262_v37 }
 0x754   :  { %v4082_v60 = vmax.f32 %v4068_v27, 0.0 }
 0x756   :  { %v4089_v1 = vpack.c.bf16 %v4082_v60, %v4081_v29  ;;  %10535 = vmatpush3.bf16.msra.mxu1 %v11262_v37 }
 0x757   :  { %10536 = vmatprep.subr.bf16.mxu1 %v11263_v57 }
 0x758   :  { %10512 = vmatprep.subr.bf16.mxu0 %v4089_v1 }
 0x759   :  { %10513 = vmatpush3.bf16.msra.mxu0 %v4089_v1 }
 0x75a   :  { %10642 = vmatprep.subr.bf16.mxu0 %v12144_v34  ;;  %10537 = vmatpush3.bf16.msra.mxu1 %v11263_v57 }
 0x75b   :  { %10546 = vmatprep.subr.bf16.mxu1 %v13636_v49 }
 0x75c   :  { %10515 = vmatmul.mubr.msk.bf16.vlgmr.msra.gmra.mrb[84].mxu0 %vm4115_vm8, %v11253_v52 }
 0x75d   :  { %10518 = vmatprep.mubr.msk.bf16.mxu0 %vm4115_vm8, %v11254_v42 }
 0x764   :  { %10519 = vmatmul.mubr.msk.bf16.gmra.mrb[88].mxu0 %vm4115_vm8, %v11255_v31  ;;  %v11266_v31 = vld [vmem:[%s14230_s10 + $0x10] sm:$0xff]  }
 0x765   :  { %10658 = vmatprep.mubr.msk.bf16.mxu0 %vm12145_vm7, %v12144_v34 }
 0x82f   :  { %v10516_v30 = vpop.f32.mrb[84].mxu0 }
 0x830   :  { %v4162_v11 = vpop.f32.mrb[85].mxu0 }
 0x831   :  { %v10517_v40 = vpop.f32.mrb[86].mxu0 }
 0x832   :  { %v13639_v2 = vpack.c.bf16 %v10517_v40, %v10516_v30  ;;  %v4165_v41 = vpop.f32.mrb[87].mxu0  ;;  %v11268_v30 = vld [vmem:[%s14230_s10 + $0x20] sm:$0xff]   ;;  %v11270_v40 = vld [vmem:[%s14230_s10 + $0x30] sm:$0xff]  }
 0x833   :  { %v13641_v23 = vpack.c.bf16 %v4165_v41, %v4162_v11  ;;  %v11269_v11 = vld [vmem:[%s14230_s10 + $0x28] sm:$0xff]   ;;  %v11271_v41 = vld [vmem:[%s14230_s10 + $0x38] sm:$0xff]  }
 0x834   :  { %v4237_v18 = vshll.u32 %v13639_v2, 16  ;;  %v4241_v63 = vshrl.u32 %v13639_v2, 16  ;;  %v4510_v9 = vrot.slane %v13639_v2, 1  ;;  %v4812_v44 = vrot.slane %v13639_v2, 2 }
 0x835   :  { %v4230_v59 = vshrl.u32 %v13641_v23, 16  ;;  %v4232_v0 = vshll.u32 %v13641_v23, 16  ;;  %v4509_v51 = vrot.slane %v13641_v23, 1  ;;  %v4811_v10 = vrot.slane %v13641_v23, 2 }
 0x836   :  { %v4659_v12 = vrot.slane %v4241_v63, 1  ;;  %v4660_v7 = vrot.slane %v4237_v18, 2  ;;  %v4239_v15 = vrot.slane %v4237_v18, 1  ;;  %v11273_v18 = vld [vmem:[%s14230_s10 + $0x88] sm:$0xff]  }
 0x837   :  { %v10520_v36 = vpop.f32.mrb[88].mxu0  ;;  %v4234_v54 = vrot.slane %v4232_v0, 1  ;;  %v13652_v8 = vsel %vm645_vm3, %v4509_v51, %v4510_v9  ;;  %v4656_v39 = vrot.slane %v4230_v59, 1  ;;  %v4657_v19 = vrot.slane %v4232_v0, 2  ;;  %v11279_v0 = vld [vmem:[%s14230_s10 + $0xb8] sm:$0xff]   ;;  %v11280_v51 = vld [vmem:[%s14230_s10 + $0xc0] sm:$0xff]  }
 0x838   :  { %v13654_v35 = vpack.c.bf16 %v10520_v36, %v10520_v36  ;;  %v4178_v58 = vpop.f32.mrb[89].mxu0  ;;  %v4661_v45 = vor.u32 %v4660_v7, %v4659_v12  ;;  %v13657_v16 = vsel %vm999_vm5, %v4811_v10, %v4812_v44  ;;  %v4243_v43 = vor.u32 %v4241_v63, %v4239_v15  ;;  %v11274_v63 = vld [vmem:[%s14230_s10 + $0x90] sm:$0xff]   ;;  %v11281_v10 = vld [vmem:[%s14230_s10 + $0xc8] sm:$0xff]   ;;  %v11283_v7 = vld [vmem:[%s14230_s10 + $0xd8] sm:$0xff]  }
 0x839   :  { %v10521_v22 = vpop.f32.mrb[90].mxu0  ;;  %v4235_v50 = vor.u32 %v4234_v54, %v4230_v59  ;;  %v4658_v24 = vor.u32 %v4657_v19, %v4656_v39  ;;  %v11278_v59 = vld [vmem:[%s14230_s10 + $0xb0] sm:$0xff]   ;;  %v11284_v36 = vld [vmem:[%s14230_s10 + $0xe0] sm:$0xff]   ;;  %v11285_v54 = vld [vmem:[%s14230_s10 + $0xe8] sm:$0xff]  }
 0x83a   :  { %v4181_v17 = vpop.f32.mrb[91].mxu0  ;;  %v4253_v13 = vshll.u32 %v13654_v35, 16  ;;  %v4257_v4 = vshrl.u32 %v13654_v35, 16  ;;  %v4514_v62 = vrot.slane %v13654_v35, 1  ;;  %v4816_v48 = vrot.slane %v13654_v35, 2  ;;  %v11282_v12 = vld [vmem:[%s14230_s10 + $0xd0] sm:$0xff]  }
 0x83b   :  { %v4194_v6 = vpack.c.bf16 %v4181_v17, %v4178_v58  ;;  %v4240_v61 = vsel %vm309_vm1, %v4235_v50, %v4239_v15  ;;  %v13663_v32 = vsel %vm814_vm4, %v4658_v24, %v4661_v45  ;;  %v11287_v39 = vld [vmem:[%s14230_s10 + $0xf8] sm:$0xff]   ;;  %v11288_v19 = vld [vmem:[%s14230_s10 + $0x100] sm:$0xff]   ;;  %v11289_v58 = vld [vmem:[%s14230_s10 + $0x108] sm:$0xff]  }
 0x83c   :  { %10538 = vmatprep.mubr.bf16.mxu1 %v4240_v61  ;;  %v4667_v47 = vrot.slane %v4257_v4, 1  ;;  %v4668_v46 = vrot.slane %v4253_v13, 2  ;;  %v4255_v1 = vrot.slane %v4253_v13, 1  ;;  %v11291_v22 = vld [vmem:[%s14230_s10 + $0x118] sm:$0xff]   ;;  %v11292_v50 = vld [vmem:[%s14230_s10 + $0x120] sm:$0xff]   ;;  %v11293_v15 = vld [vmem:[%s14230_s10 + $0x128] sm:$0xff]  }
 0x83d   :  { %v4245_v38 = vshll.u32 %v4194_v6, 16  ;;  %v4249_v20 = vshrl.u32 %v4194_v6, 16  ;;  %v4512_v33 = vrot.slane %v4194_v6, 1  ;;  %v4814_v3 = vrot.slane %v4194_v6, 2  ;;  %v11294_v24 = vld [vmem:[%s14230_s10 + $0x130] sm:$0xff]   ;;  %v11296_v17 = vld [vmem:[#allocation18 + $0x40] sm:$0xff]  }
 0x83e   :  { %v13666_v28 = vor.u32 %v4668_v46, %v4667_v47  ;;  %v4259_v57 = vor.u32 %v4257_v4, %v4255_v1  ;;  %10643 = vmatpush3.bf16.msra.mxu0 %v11296_v17  ;;  %v11297_v13 = vld [vmem:[#allocation18 + $0x48] sm:$0xff]   ;;  %v11298_v4 = vld [vmem:[#allocation18 + $0x50] sm:$0xff]  }
 0x83f   :  { %v4247_v14 = vrot.slane %v4245_v38, 1  ;;  %v4663_v5 = vrot.slane %v4249_v20, 1  ;;  %v13670_v26 = vsel %vm645_vm3, %v4510_v9, %v4512_v33  ;;  %v13675_v25 = vsel %vm645_vm3, %v4512_v33, %v4514_v62  ;;  %v11275_v9 = vld [vmem:[%s14230_s10 + $0x98] sm:$0xff]   ;;  %10644 = vmatprep.subr.bf16.mxu0 %v12144_v34 }
 0x840   :  { %v4664_v56 = vrot.slane %v4245_v38, 2  ;;  %v13681_v21 = vsel %vm999_vm5, %v4812_v44, %v4814_v3  ;;  %v13686_v27 = vsel %vm999_vm5, %v4814_v3, %v4816_v48  ;;  %v11277_v44 = vld [vmem:[%s14230_s10 + $0xa8] sm:$0xff]   ;;  %v11302_v38 = vld [vmem:[#allocation18 + $0x70] sm:$0xff]  }
 0x841   :  { %v4248_v29 = vsel %vm309_vm1, %v4243_v43, %v4247_v14  ;;  %v4251_v60 = vor.u32 %v4249_v20, %v4247_v14  ;;  %v11303_v20 = vld [vmem:[#allocation18 + $0x78] sm:$0xff]  }
 0x842   :  { %10539 = vmatmul.mubr.bf16.vlgmr.msra.gmra.mrb[144].mxu1 %v4248_v29  ;;  %v4665_v52 = vor.u32 %v4664_v56, %v4663_v5  ;;  %10645 = vmatpush3.bf16.msra.mxu0 %v11297_v13 }
 0x843   :  { %10547 = vmatpush3.bf16.msra.mxu1 %v13636_v49  ;;  %v4256_v42 = vsel %vm309_vm1, %v4251_v60, %v4255_v1  ;;  %v11267_v49 = vld [vmem:[%s14230_s10 + $0x18] sm:$0xff]   ;;  %10646 = vmatprep.subr.bf16.mxu0 %v12144_v34 }
 0x844   :  { %10542 = vmatprep.mubr.bf16.mxu1 %v4256_v42  ;;  %10548 = vmatprep.subr.bf16.mxu1 %v11265_v53  ;;  %v13695_v55 = vsel %vm814_vm4, %v4661_v45, %v4665_v52  ;;  %v13699_v37 = vsel %vm814_vm4, %v4665_v52, %v13666_v28  ;;  %v11290_v45 = vld [vmem:[%s14230_s10 + $0x110] sm:$0xff]  }
 0x846   :  { %10647 = vmatpush3.bf16.msra.mxu0 %v11298_v4 }
 0x847   :  { %10549 = vmatpush3.bf16.msra.mxu1 %v11265_v53  ;;  %10648 = vmatprep.subr.bf16.mxu0 %v12144_v34 }
 0x848   :  { %10550 = vmatprep.subr.bf16.mxu1 %v11266_v31 }
 0x84a   :  { %10543 = vmatmul.mubr.bf16.gmra.mrb[148].mxu1 %v4259_v57  ;;  %v9207_v57 = vld [vmem:[#allocation16] ss:$0 sm:$0xff] }
 0x84b   :  { %10551 = vmatpush3.bf16.msra.mxu1 %v11266_v31  ;;  %10562 = vmatprep.mubr.bf16.mxu1 %v13641_v23  ;;  %v11272_v23 = vld [vmem:[%s14230_s10 + $0x80] sm:$0xff]  }
 0x84c   :  { %10552 = vmatprep.subr.bf16.mxu1 %v11267_v49 }
 0x84f   :  { %10553 = vmatpush3.bf16.msra.mxu1 %v11267_v49 }
 0x850   :  { %10554 = vmatprep.subr.bf16.mxu1 %v11268_v30 }
 0x853   :  { %10555 = vmatpush3.bf16.msra.mxu1 %v11268_v30 }
 0x854   :  { %10556 = vmatprep.subr.bf16.mxu1 %v11269_v11 }
 0x857   :  { %10557 = vmatpush3.bf16.msra.mxu1 %v11269_v11 }
 0x858   :  { %10558 = vmatprep.subr.bf16.mxu1 %v11270_v40 }
 0x85b   :  { %10559 = vmatpush3.bf16.msra.mxu1 %v11270_v40 }
 0x85c   :  { %10560 = vmatprep.subr.bf16.mxu1 %v11271_v41 }
 0x85f   :  { %10561 = vmatpush3.bf16.msra.mxu1 %v11271_v41 }
 0x860   :  { %10570 = vmatprep.subr.bf16.mxu1 %v11272_v23 }
 0x862   :  { %10563 = vmatmul.mubr.bf16.vlgmr.msra.gmra.mrb[144].mxu1 %v13639_v2  ;;  %v11276_v2 = vld [vmem:[%s14230_s10 + $0xa0] sm:$0xff]  }
 0x863   :  { %10566 = vmatprep.mubr.bf16.mxu1 %v4194_v6  ;;  %10571 = vmatpush3.bf16.msra.mxu1 %v11272_v23  ;;  %v11299_v6 = vld [vmem:[#allocation18 + $0x58] sm:$0xff]  }
 0x864   :  { %10572 = vmatprep.subr.bf16.mxu1 %v11273_v18  ;;  %10649 = vmatpush3.bf16.msra.mxu0 %v11299_v6 }
 0x865   :  { %10650 = vmatprep.subr.bf16.mxu0 %v12144_v34 }
 0x867   :  { %10573 = vmatpush3.bf16.msra.mxu1 %v11273_v18 }
 0x868   :  { %10574 = vmatprep.subr.bf16.mxu1 %v11274_v63 }
 0x86a   :  { %10567 = vmatmul.mubr.bf16.gmra.mrb[152].mxu1 %v13654_v35  ;;  %v11300_v35 = vld [vmem:[#allocation18 + $0x60] sm:$0xff]  }
 0x86b   :  { %10575 = vmatpush3.bf16.msra.mxu1 %v11274_v63  ;;  %10586 = vmatprep.mubr.bf16.mxu1 %v13652_v8  ;;  %v11286_v8 = vld [vmem:[%s14230_s10 + $0xf0] sm:$0xff]  }
 0x86c   :  { %10576 = vmatprep.subr.bf16.mxu1 %v11275_v9  ;;  %10651 = vmatpush3.bf16.msra.mxu0 %v11300_v35 }
 0x86d   :  { %10652 = vmatprep.subr.bf16.mxu0 %v12144_v34 }
 0x86f   :  { %10577 = vmatpush3.bf16.msra.mxu1 %v11275_v9 }
 0x870   :  { %10578 = vmatprep.subr.bf16.mxu1 %v11276_v2 }
 0x873   :  { %10579 = vmatpush3.bf16.msra.mxu1 %v11276_v2 }
 0x874   :  { %10580 = vmatprep.subr.bf16.mxu1 %v11277_v44 }
 0x877   :  { %10581 = vmatpush3.bf16.msra.mxu1 %v11277_v44 }
 0x878   :  { %10582 = vmatprep.subr.bf16.mxu1 %v11278_v59 }
 0x87b   :  { %10583 = vmatpush3.bf16.msra.mxu1 %v11278_v59 }
 0x87c   :  { %10584 = vmatprep.subr.bf16.mxu1 %v11279_v0 }
 0x87f   :  { %10585 = vmatpush3.bf16.msra.mxu1 %v11279_v0 }
 0x880   :  { %10594 = vmatprep.subr.bf16.mxu1 %v11280_v51 }
 0x882   :  { %10587 = vmatmul.mubr.bf16.vlgmr.msra.gmra.mrb[144].mxu1 %v13670_v26 }
 0x883   :  { %10590 = vmatprep.mubr.bf16.mxu1 %v13675_v25  ;;  %10595 = vmatpush3.bf16.msra.mxu1 %v11280_v51 }
 0x884   :  { %10596 = vmatprep.subr.bf16.mxu1 %v11281_v10 }
 0x887   :  { %10597 = vmatpush3.bf16.msra.mxu1 %v11281_v10 }
 0x888   :  { %10598 = vmatprep.subr.bf16.mxu1 %v11282_v12 }
 0x88a   :  { %10591 = vmatmul.mubr.bf16.gmra.mrb[156].mxu1 %v4514_v62 }
 0x88b   :  { %10599 = vmatpush3.bf16.msra.mxu1 %v11282_v12  ;;  %10610 = vmatprep.mubr.bf16.mxu1 %v13663_v32  ;;  %v11301_v32 = vld [vmem:[#allocation18 + $0x68] sm:$0xff]  }
 0x88c   :  { %10600 = vmatprep.subr.bf16.mxu1 %v11283_v7  ;;  %10653 = vmatpush3.bf16.msra.mxu0 %v11301_v32 }
 0x88d   :  { %10654 = vmatprep.subr.bf16.mxu0 %v12144_v34 }
 0x88f   :  { %10601 = vmatpush3.bf16.msra.mxu1 %v11283_v7 }
 0x890   :  { %10602 = vmatprep.subr.bf16.mxu1 %v11284_v36  ;;  %10655 = vmatpush3.bf16.msra.mxu0 %v11302_v38  ;;  %v11304_v38 = vld [vmem:[#allocation18] sm:$0xff]  }
 0x891   :  { %10656 = vmatprep.subr.bf16.mxu0 %v12144_v34 }
 0x893   :  { %10603 = vmatpush3.bf16.msra.mxu1 %v11284_v36 }
 0x894   :  { %10604 = vmatprep.subr.bf16.mxu1 %v11285_v54  ;;  %10657 = vmatpush3.bf16.msra.mxu0 %v11303_v20 }
 0x895   :  { %10670 = vmatprep.subr.bf16.mxu0 %v12144_v34 }
 0x897   :  { %10605 = vmatpush3.bf16.msra.mxu1 %v11285_v54 }
 0x898   :  { %10606 = vmatprep.subr.bf16.mxu1 %v11286_v8 }
 0x89b   :  { %10607 = vmatpush3.bf16.msra.mxu1 %v11286_v8 }
 0x89c   :  { %10608 = vmatprep.subr.bf16.mxu1 %v11287_v39 }
 0x89f   :  { %10609 = vmatpush3.bf16.msra.mxu1 %v11287_v39 }
 0x8a0   :  { %10618 = vmatprep.subr.bf16.mxu1 %v11288_v19 }
 0x8a2   :  { %10611 = vmatmul.mubr.bf16.vlgmr.msra.gmra.mrb[144].mxu1 %v13695_v55 }
 0x8a3   :  { %10614 = vmatprep.mubr.bf16.mxu1 %v13699_v37  ;;  %10619 = vmatpush3.bf16.msra.mxu1 %v11288_v19 }
 0x8a4   :  { %10620 = vmatprep.subr.bf16.mxu1 %v11289_v58 }
 0x8a7   :  { %10621 = vmatpush3.bf16.msra.mxu1 %v11289_v58 }
 0x8a8   :  { %10622 = vmatprep.subr.bf16.mxu1 %v11290_v45 }
 0x8aa   :  { %10615 = vmatmul.mubr.bf16.gmra.mrb[160].mxu1 %v13666_v28 }
 0x8ab   :  { %10623 = vmatpush3.bf16.msra.mxu1 %v11290_v45  ;;  %10634 = vmatprep.mubr.bf16.mxu1 %v13657_v16  ;;  %v11295_v16 = vld [vmem:[%s14230_s10 + $0x138] sm:$0xff]  }
 0x8ac   :  { %10624 = vmatprep.subr.bf16.mxu1 %v11291_v22 }
 0x8af   :  { %10625 = vmatpush3.bf16.msra.mxu1 %v11291_v22 }
 0x8b0   :  { %10626 = vmatprep.subr.bf16.mxu1 %v11292_v50 }
 0x8b3   :  { %10627 = vmatpush3.bf16.msra.mxu1 %v11292_v50 }
 0x8b4   :  { %10628 = vmatprep.subr.bf16.mxu1 %v11293_v15 }
 0x8b7   :  { %10629 = vmatpush3.bf16.msra.mxu1 %v11293_v15 }
 0x8b8   :  { %10630 = vmatprep.subr.bf16.mxu1 %v11294_v24 }
 0x8bb   :  { %10631 = vmatpush3.bf16.msra.mxu1 %v11294_v24 }
 0x8bc   :  { %10632 = vmatprep.subr.bf16.mxu1 %v11295_v16 }
 0x8bf   :  { %10633 = vmatpush3.bf16.msra.mxu1 %v11295_v16 }
 0x8c0   :  { %10782 = vmatprep.subr.bf16.mxu1 %v12144_v34 }
 0x8c2   :  { %10635 = vmatmul.mubr.bf16.vlgmr.msra.gmra.mrb[144].mxu1 %v13681_v21 }
 0x8c3   :  { %10638 = vmatprep.mubr.bf16.mxu1 %v13686_v27 }
 0x8ca   :  { %10639 = vmatmul.mubr.bf16.gmra.mrb[164].mxu1 %v4816_v48 }
 0x8cb   :  { %10798 = vmatprep.mubr.msk.bf16.mxu1 %vm12145_vm7, %v12144_v34 }
 0x91d   :  { %v10544_v61 = vpop.f32.mrb[148].mxu1 }
 0x91e   :  { %v4362_v47 = vpop.f32.mrb[149].mxu1 }
 0x91f   :  { %v10545_v62 = vpop.f32.mrb[150].mxu1 }
 0x920   :  { %v4365_v46 = vpop.f32.mrb[151].mxu1 }
 0x93d   :  { %v10568_v33 = vpop.f32.mrb[152].mxu1 }
 0x93e   :  { %v4483_v3 = vadd.f32 %v10568_v33, %v10544_v61  ;;  %v4474_v43 = vpop.f32.mrb[153].mxu1 }
 0x93f   :  { %v4475_v28 = vadd.f32 %v4474_v43, %v4362_v47  ;;  %v10569_v48 = vpop.f32.mrb[154].mxu1 }
 0x940   :  { %v4477_v14 = vpop.f32.mrb[155].mxu1 }
 0x941   :  { %v4478_v5 = vadd.f32 %v4477_v14, %v4365_v46 }
 0x95d   :  { %v10592_v26 = vpop.f32.mrb[156].mxu1 }
 0x95e   :  { %v4638_v25 = vadd.f32 %v10592_v26, %v4483_v3  ;;  %v4618_v53 = vpop.f32.mrb[157].mxu1 }
 0x95f   :  { %v4636_v56 = vadd.f32 %v4618_v53, %v4475_v28  ;;  %v10593_v21 = vpop.f32.mrb[158].mxu1 }
 0x960   :  { %v4621_v27 = vpop.f32.mrb[159].mxu1  ;;  %v11305_v21 = vld [vmem:[#allocation18 + $0x8] sm:$0xff]  }
 0x961   :  { %v4637_v29 = vadd.f32 %v4621_v27, %v4478_v5 }
 0x97d   :  { %v10616_v60 = vpop.f32.mrb[160].mxu1 }
 0x97e   :  { %v4793_v1 = vadd.f32 %v10616_v60, %v4638_v25  ;;  %v4773_v52 = vpop.f32.mrb[161].mxu1 }
 0x97f   :  { %v4791_v42 = vadd.f32 %v4773_v52, %v4636_v56  ;;  %v10617_v31 = vpop.f32.mrb[162].mxu1 }
 0x980   :  { %v4776_v55 = vpop.f32.mrb[163].mxu1 }
 0x981   :  { %v4792_v37 = vadd.f32 %v4776_v55, %v4637_v29 }
 0x995   :  { %v10636_v49 = vpop.f32.mrb[144].mxu1 }
 0x996   :  { %v4950_v30 = vadd.f32 %v10636_v49, %v9207_v57  ;;  %v4904_v11 = vpop.f32.mrb[145].mxu1 }
 0x997   :  { %v4948_v40 = vadd.f32 %v9207_v57, %v4904_v11  ;;  %v10637_v41 = vpop.f32.mrb[146].mxu1  ;;  %v11306_v11 = vld [vmem:[#allocation18 + $0x10] sm:$0xff]  }
 0x998   :  { %v4951_v23 = vadd.f32 %v10637_v41, %v9207_v57  ;;  %v4907_v18 = vpop.f32.mrb[147].mxu1  ;;  %v4957_v9 = vmax.f32 %v4950_v30, 0.0 }
 0x999   :  { %v4949_v63 = vadd.f32 %v9207_v57, %v4907_v18  ;;  %v4955_v44 = vmax.f32 %v4948_v40, 0.0 }
 0x99a   :  { %v4958_v2 = vmax.f32 %v4951_v23, 0.0 }
 0x99b   :  { %v4956_v59 = vmax.f32 %v4949_v63, 0.0 }
 0x99c   :  { %v13816_v0 = vpack.c.bf16 %v4958_v2, %v4957_v9 }
 0x99d   :  { %v13818_v51 = vpack.c.bf16 %v4956_v59, %v4955_v44  ;;  %v10640_v10 = vpop.f32.mrb[164].mxu1 }
 0x99e   :  { %v4940_v12 = vadd.f32 %v10640_v10, %v4793_v1  ;;  %v4920_v7 = vpop.f32.mrb[165].mxu1  ;;  %v5007_v36 = vshll.u32 %v13816_v0, 16  ;;  %v5011_v54 = vshrl.u32 %v13816_v0, 16  ;;  %v5262_v8 = vrot.slane %v13816_v0, 1 }
 0x99f   :  { %v4938_v39 = vadd.f32 %v4920_v7, %v4791_v42  ;;  %v10641_v19 = vpop.f32.mrb[166].mxu1  ;;  %v5000_v58 = vshrl.u32 %v13818_v51, 16  ;;  %v5002_v45 = vshll.u32 %v13818_v51, 16  ;;  %v5261_v22 = vrot.slane %v13818_v51, 1 }
 0x9a0   :  { %v4954_v50 = vadd.f32 %v9207_v57, %v4940_v12  ;;  %v4923_v15 = vpop.f32.mrb[167].mxu1  ;;  %v5402_v24 = vrot.slane %v5011_v54, 1  ;;  %v5403_v16 = vrot.slane %v5007_v36, 2  ;;  %v5009_v46 = vrot.slane %v5007_v36, 1  ;;  %v11307_v12 = vld [vmem:[#allocation18 + $0x18] sm:$0xff]   ;;  %v11310_v19 = vld [vmem:[#allocation18 + $0x30] sm:$0xff]  }
 0x9a1   :  { %v4952_v17 = vadd.f32 %v9207_v57, %v4938_v39  ;;  %v4939_v13 = vadd.f32 %v4923_v15, %v4792_v37  ;;  %v5004_v4 = vrot.slane %v5002_v45, 1  ;;  %v13827_v6 = vsel %vm645_vm3, %v5261_v22, %v5262_v8  ;;  %v11309_v39 = vld [vmem:[#allocation18 + $0x28] sm:$0xff]   ;;  %v11315_v15 = vld [vmem:[#allocation18 + $0x98] sm:$0xff]  }
 0x9a2   :  { %v4961_v35 = vmax.f32 %v4954_v50, 0.0  ;;  %v5399_v61 = vrot.slane %v5000_v58, 1  ;;  %v5400_v32 = vrot.slane %v5002_v45, 2  ;;  %v5404_v20 = vor.u32 %v5403_v16, %v5402_v24  ;;  %v11312_v45 = vld [vmem:[#allocation18 + $0x80] sm:$0xff]   ;;  %v11313_v22 = vld [vmem:[#allocation18 + $0x88] sm:$0xff]   ;;  %v11314_v50 = vld [vmem:[#allocation18 + $0x90] sm:$0xff]  }
 0x9a3   :  { %v4953_v47 = vadd.f32 %v9207_v57, %v4939_v13  ;;  %v5005_v62 = vor.u32 %v5004_v4, %v5000_v58  ;;  %v5547_v43 = vrot.slane %v13818_v51, 2  ;;  %v5548_v28 = vrot.slane %v13816_v0, 2  ;;  %v11311_v58 = vld [vmem:[#allocation18 + $0x38] sm:$0xff]   ;;  %v11317_v24 = vld [vmem:[#allocation18 + $0xa8] sm:$0xff]   ;;  %v11322_v4 = vld [vmem:[#allocation18 + $0xd0] sm:$0xff]  }
 0x9a4   :  { %v4965_v33 = vpack.c.bf16 %v4961_v35, %v4961_v35  ;;  %v5401_v3 = vor.u32 %v5400_v32, %v5399_v61  ;;  %v4959_v48 = vmax.f32 %v4952_v17, 0.0  ;;  %v5013_v37 = vor.u32 %v5011_v54, %v5009_v46  ;;  %v11319_v16 = vld [vmem:[#allocation18 + $0xb8] sm:$0xff]   ;;  %v11320_v17 = vld [vmem:[#allocation18 + $0xc0] sm:$0xff]   ;;  %v11321_v13 = vld [vmem:[#allocation18 + $0xc8] sm:$0xff]  }
 0x9a5   :  { %v4960_v14 = vmax.f32 %v4953_v47, 0.0  ;;  %v5010_v5 = vsel %vm309_vm1, %v5005_v62, %v5009_v46  ;;  %v13840_v27 = vsel %vm999_vm5, %v5547_v43, %v5548_v28  ;;  %v11323_v35 = vld [vmem:[#allocation18 + $0xd8] sm:$0xff]   ;;  %v11325_v61 = vld [vmem:[#allocation18 + $0xe8] sm:$0xff]   ;;  %v11326_v32 = vld [vmem:[#allocation18 + $0xf0] sm:$0xff]  }
 0x9a6   :  { %10659 = vmatmul.mubr.bf16.vlgmr.msra.gmra.mrb[92].mxu0 %v5010_v5  ;;  %v5023_v26 = vshll.u32 %v4965_v33, 16  ;;  %v13833_v25 = vsel %vm814_vm4, %v5401_v3, %v5404_v20  ;;  %v5410_v53 = vshrl.u32 %v4965_v33, 16  ;;  %v5266_v29 = vrot.slane %v4965_v33, 1  ;;  %v11327_v47 = vld [vmem:[#allocation18 + $0xf8] sm:$0xff]   ;;  %v11328_v62 = vld [vmem:[#allocation18 + $0x100] sm:$0xff]   ;;  %v11329_v46 = vld [vmem:[#allocation18 + $0x108] sm:$0xff]  }
 0x9a7   :  { %v13835_v56 = vpack.c.bf16 %v4960_v14, %v4959_v48  ;;  %10671 = vmatpush3.bf16.msra.mxu0 %v11304_v38  ;;  %10662 = vmatprep.mubr.msk.bf16.mxu0 %vm12145_vm7, %v12144_v34  ;;  %v5552_v49 = vrot.slane %v4965_v33, 2  ;;  %v11330_v38 = vld [vmem:[#allocation18 + $0x110] sm:$0xff]   ;;  %v11332_v33 = vld [vmem:[#allocation18 + $0x120] sm:$0xff]   ;;  %v11333_v3 = vld [vmem:[#allocation18 + $0x128] sm:$0xff]  }
 0x9a8   :  { %10672 = vmatprep.subr.bf16.mxu0 %v12144_v34  ;;  %v5412_v60 = vrot.slane %v5410_v53, 1  ;;  %v5413_v1 = vrot.slane %v5023_v26, 2  ;;  %v5025_v59 = vrot.slane %v5023_v26, 1  ;;  %v11334_v43 = vld [vmem:[#allocation18 + $0x130] sm:$0xff]   ;;  %v11336_v48 = vld [vmem:[#allocation21] sm:$0xff]  }
 0x9a9   :  { %v5015_v52 = vshll.u32 %v13835_v56, 16  ;;  %v5019_v42 = vshrl.u32 %v13835_v56, 16  ;;  %v5264_v31 = vrot.slane %v13835_v56, 1  ;;  %v5550_v55 = vrot.slane %v13835_v56, 2  ;;  %v11337_v14 = vld [vmem:[#allocation21 + $0x8] sm:$0xff]   ;;  %v11338_v5 = vld [vmem:[#allocation21 + $0x10] sm:$0xff]  }
 0x9aa   :  { %v5414_v57 = vor.u32 %v5413_v1, %v5412_v60  ;;  %v11340_v26 = vld [vmem:[#allocation21 + $0x40] sm:$0xff]   ;;  %v11342_v53 = vld [vmem:[#allocation21 + $0x48] sm:$0xff]  }
 0x9ab   :  { %10673 = vmatpush3.bf16.msra.mxu0 %v11305_v21  ;;  %v5017_v30 = vrot.slane %v5015_v52, 1  ;;  %v13848_v40 = vsel %vm645_vm3, %v5262_v8, %v5264_v31  ;;  %v13851_v41 = vsel %vm645_vm3, %v5264_v31, %v5266_v29  ;;  %v5406_v23 = vrot.slane %v5019_v42, 1  ;;  %v11308_v8 = vld [vmem:[#allocation18 + $0x20] sm:$0xff]   ;;  %10783 = vmatpush3.bf16.msra.mxu1 %v11340_v26  ;;  %v11343_v21 = vld [vmem:[#allocation21 + $0x28] sm:$0xff]  }
 0x9ac   :  { %10674 = vmatprep.subr.bf16.mxu0 %v12144_v34  ;;  %v5407_v18 = vrot.slane %v5015_v52, 2  ;;  %v13855_v63 = vsel %vm999_vm5, %v5548_v28, %v5550_v55  ;;  %v13858_v9 = vsel %vm999_vm5, %v5550_v55, %v5552_v49  ;;  %v11335_v28 = vld [vmem:[#allocation18 + $0x138] sm:$0xff]   ;;  %10784 = vmatprep.subr.bf16.mxu1 %v12144_v34 }
 0x9ad   :  { %v5018_v2 = vsel %vm309_vm1, %v5013_v37, %v5017_v30  ;;  %v5021_v44 = vor.u32 %v5019_v42, %v5017_v30  ;;  %v11344_v52 = vld [vmem:[#allocation21 + $0x50] sm:$0xff]   ;;  %v11346_v37 = vld [vmem:[#allocation21 + $0x58] sm:$0xff]  }
 0x9ae   :  { %10663 = vmatmul.mubr.bf16.gmra.mrb[96].mxu0 %v5018_v2  ;;  %v5408_v10 = vor.u32 %v5407_v18, %v5406_v23  ;;  %v11345_v55 = vld [vmem:[#allocation21 + $0x30] sm:$0xff]   ;;  %v11347_v30 = vld [vmem:[#allocation21 + $0x38] sm:$0xff]   ;;  %v11350_v23 = vld [vmem:[#allocation21 + $0x68] sm:$0xff]  }
 0x9af   :  { %10675 = vmatpush3.bf16.msra.mxu0 %v11306_v11  ;;  %10666 = vmatprep.mubr.msk.bf16.mxu0 %vm12145_vm7, %v12144_v34  ;;  %v5026_v7 = vsel %vm309_vm1, %v5021_v44, %v5025_v59  ;;  %v11348_v11 = vld [vmem:[#allocation21 + $0x60] sm:$0xff]   ;;  %v11354_v2 = vld [vmem:[#allocation21 + $0x78] sm:$0xff]  }
 0x9b0   :  { %10676 = vmatprep.subr.bf16.mxu0 %v12144_v34  ;;  %v13866_v36 = vsel %vm814_vm4, %v5404_v20, %v5408_v10  ;;  %v13869_v54 = vsel %vm814_vm4, %v5408_v10, %v5414_v57  ;;  %v11331_v20 = vld [vmem:[#allocation18 + $0x118] sm:$0xff]   ;;  %10785 = vmatpush3.bf16.msra.mxu1 %v11342_v53 }
 0x9b1   :  { %10786 = vmatprep.subr.bf16.mxu1 %v12144_v34 }
 0x9b3   :  { %10677 = vmatpush3.bf16.msra.mxu0 %v11307_v12 }
 0x9b4   :  { %10678 = vmatprep.subr.bf16.mxu0 %v12144_v34  ;;  %10787 = vmatpush3.bf16.msra.mxu1 %v11344_v52 }
 0x9b5   :  { %10788 = vmatprep.subr.bf16.mxu1 %v12144_v34 }
 0x9b6   :  { %10667 = vmatmul.mubr.bf16.gmra.mrb[100].mxu0 %v5026_v7 }
 0x9b7   :  { %10679 = vmatpush3.bf16.msra.mxu0 %v11308_v8  ;;  %10686 = vmatprep.mubr.msk.bf16.mxu0 %vm12145_vm7, %v12144_v34 }
 0x9b8   :  { %10680 = vmatprep.subr.bf16.mxu0 %v12144_v34  ;;  %10789 = vmatpush3.bf16.msra.mxu1 %v11346_v37 }
 0x9b9   :  { %10790 = vmatprep.subr.bf16.mxu1 %v12144_v34 }
 0x9bb   :  { %10681 = vmatpush3.bf16.msra.mxu0 %v11309_v39 }
 0x9bc   :  { %10682 = vmatprep.subr.bf16.mxu0 %v12144_v34  ;;  %10791 = vmatpush3.bf16.msra.mxu1 %v11348_v11  ;;  %v9248_v11 = vld [vmem:[#allocation19] ss:$0 sm:$0xff] }
 0x9bd   :  { %10792 = vmatprep.subr.bf16.mxu1 %v12144_v34 }
 0x9bf   :  { %10683 = vmatpush3.bf16.msra.mxu0 %v11310_v19 }
 0x9c0   :  { %10684 = vmatprep.subr.bf16.mxu0 %v12144_v34  ;;  %10793 = vmatpush3.bf16.msra.mxu1 %v11350_v23 }
 0x9c1   :  { %10794 = vmatprep.subr.bf16.mxu1 %v12144_v34 }
 0x9c3   :  { %10685 = vmatpush3.bf16.msra.mxu0 %v11311_v58 }
 0x9c4   :  { %10698 = vmatprep.subr.bf16.mxu0 %v12144_v34 }
 0x9c6   :  { %10687 = vmatmul.mubr.bf16.vlgmr.msra.gmra.mrb[104].mxu0 %v13818_v51  ;;  %v11316_v51 = vld [vmem:[#allocation18 + $0xa0] sm:$0xff]  }
 0x9c7   :  { %10699 = vmatpush3.bf16.msra.mxu0 %v11312_v45  ;;  %10690 = vmatprep.mubr.msk.bf16.mxu0 %vm12145_vm7, %v12144_v34 }
 0x9c8   :  { %10700 = vmatprep.subr.bf16.mxu0 %v12144_v34 }
 0x9cb   :  { %10701 = vmatpush3.bf16.msra.mxu0 %v11313_v22 }
 0x9cc   :  { %10702 = vmatprep.subr.bf16.mxu0 %v12144_v34 }
 0x9ce   :  { %10691 = vmatmul.mubr.bf16.gmra.mrb[108].mxu0 %v13816_v0  ;;  %v11318_v0 = vld [vmem:[#allocation18 + $0xb0] sm:$0xff]  }
 0x9cf   :  { %10703 = vmatpush3.bf16.msra.mxu0 %v11314_v50  ;;  %10694 = vmatprep.mubr.msk.bf16.mxu0 %vm12145_vm7, %v12144_v34 }
 0x9d0   :  { %10704 = vmatprep.subr.bf16.mxu0 %v12144_v34 }
 0x9d3   :  { %10705 = vmatpush3.bf16.msra.mxu0 %v11315_v15 }
 0x9d4   :  { %10706 = vmatprep.subr.bf16.mxu0 %v12144_v34 }
 0x9d6   :  { %10695 = vmatmul.mubr.bf16.gmra.mrb[112].mxu0 %v13835_v56  ;;  %v11341_v56 = vld [vmem:[#allocation21 + $0x20] sm:$0xff]  }
 0x9d7   :  { %10707 = vmatpush3.bf16.msra.mxu0 %v11316_v51  ;;  %10714 = vmatprep.mubr.msk.bf16.mxu0 %vm12145_vm7, %v12144_v34 }
 0x9d8   :  { %10708 = vmatprep.subr.bf16.mxu0 %v12144_v34 }
 0x9db   :  { %10709 = vmatpush3.bf16.msra.mxu0 %v11317_v24 }
 0x9dc   :  { %10710 = vmatprep.subr.bf16.mxu0 %v12144_v34 }
 0x9df   :  { %10711 = vmatpush3.bf16.msra.mxu0 %v11318_v0 }
 0x9e0   :  { %10712 = vmatprep.subr.bf16.mxu0 %v12144_v34 }
 0x9e3   :  { %10713 = vmatpush3.bf16.msra.mxu0 %v11319_v16 }
 0x9e4   :  { %10726 = vmatprep.subr.bf16.mxu0 %v12144_v34 }
 0x9e6   :  { %10715 = vmatmul.mubr.bf16.vlgmr.msra.gmra.mrb[116].mxu0 %v13827_v6  ;;  %v11324_v6 = vld [vmem:[#allocation18 + $0xe0] sm:$0xff]  }
 0x9e7   :  { %10727 = vmatpush3.bf16.msra.mxu0 %v11320_v17  ;;  %10718 = vmatprep.mubr.msk.bf16.mxu0 %vm12145_vm7, %v12144_v34 }
 0x9e8   :  { %10728 = vmatprep.subr.bf16.mxu0 %v12144_v34 }
 0x9eb   :  { %10729 = vmatpush3.bf16.msra.mxu0 %v11321_v13 }
 0x9ec   :  { %10730 = vmatprep.subr.bf16.mxu0 %v12144_v34 }
 0x9ee   :  { %10719 = vmatmul.mubr.bf16.gmra.mrb[120].mxu0 %v13848_v40 }
 0x9ef   :  { %10731 = vmatpush3.bf16.msra.mxu0 %v11322_v4  ;;  %10722 = vmatprep.mubr.msk.bf16.mxu0 %vm12145_vm7, %v12144_v34 }
 0x9f0   :  { %10732 = vmatprep.subr.bf16.mxu0 %v12144_v34 }
 0x9f3   :  { %10733 = vmatpush3.bf16.msra.mxu0 %v11323_v35 }
 0x9f4   :  { %10734 = vmatprep.subr.bf16.mxu0 %v12144_v34 }
 0x9f6   :  { %10723 = vmatmul.mubr.bf16.gmra.mrb[124].mxu0 %v13851_v41 }
 0x9f7   :  { %10735 = vmatpush3.bf16.msra.mxu0 %v11324_v6  ;;  %10742 = vmatprep.mubr.msk.bf16.mxu0 %vm12145_vm7, %v12144_v34 }
 0x9f8   :  { %10736 = vmatprep.subr.bf16.mxu0 %v12144_v34 }
 0x9fb   :  { %10737 = vmatpush3.bf16.msra.mxu0 %v11325_v61 }
 0x9fc   :  { %10738 = vmatprep.subr.bf16.mxu0 %v12144_v34 }
 0x9ff   :  { %10739 = vmatpush3.bf16.msra.mxu0 %v11326_v32 }
 0xa00   :  { %10740 = vmatprep.subr.bf16.mxu0 %v12144_v34 }
 0xa03   :  { %10741 = vmatpush3.bf16.msra.mxu0 %v11327_v47 }
 0xa04   :  { %10754 = vmatprep.subr.bf16.mxu0 %v12144_v34 }
 0xa06   :  { %10743 = vmatmul.mubr.bf16.vlgmr.msra.gmra.mrb[128].mxu0 %v13833_v25  ;;  %v11339_v25 = vld [vmem:[#allocation21 + $0x18] sm:$0xff]  }
 0xa07   :  { %10755 = vmatpush3.bf16.msra.mxu0 %v11328_v62  ;;  %10746 = vmatprep.mubr.msk.bf16.mxu0 %vm12145_vm7, %v12144_v34 }
 0xa08   :  { %10756 = vmatprep.subr.bf16.mxu0 %v12144_v34 }
 0xa0b   :  { %10757 = vmatpush3.bf16.msra.mxu0 %v11329_v46 }
 0xa0c   :  { %10758 = vmatprep.subr.bf16.mxu0 %v12144_v34 }
 0xa0e   :  { %10747 = vmatmul.mubr.bf16.gmra.mrb[132].mxu0 %v13866_v36 }
 0xa0f   :  { %10759 = vmatpush3.bf16.msra.mxu0 %v11330_v38  ;;  %10750 = vmatprep.mubr.msk.bf16.mxu0 %vm12145_vm7, %v12144_v34 }
 0xa10   :  { %10760 = vmatprep.subr.bf16.mxu0 %v12144_v34 }
 0xa13   :  { %10761 = vmatpush3.bf16.msra.mxu0 %v11331_v20 }
 0xa14   :  { %10762 = vmatprep.subr.bf16.mxu0 %v12144_v34 }
 0xa16   :  { %10751 = vmatmul.mubr.bf16.gmra.mrb[136].mxu0 %v13869_v54 }
 0xa17   :  { %10763 = vmatpush3.bf16.msra.mxu0 %v11332_v33  ;;  %10770 = vmatprep.mubr.msk.bf16.mxu0 %vm12145_vm7, %v12144_v34 }
 0xa18   :  { %10764 = vmatprep.subr.bf16.mxu0 %v12144_v34 }
 0xa1b   :  { %10765 = vmatpush3.bf16.msra.mxu0 %v11333_v3 }
 0xa1c   :  { %10766 = vmatprep.subr.bf16.mxu0 %v12144_v34 }
 0xa1f   :  { %10767 = vmatpush3.bf16.msra.mxu0 %v11334_v43 }
 0xa20   :  { %10768 = vmatprep.subr.bf16.mxu0 %v12144_v34 }
 0xa23   :  { %10769 = vmatpush3.bf16.msra.mxu0 %v11335_v28 }
 0xa24   :  { %10810 = vmatprep.subr.bf16.mxu0 %v12144_v34 }
 0xa26   :  { %10771 = vmatmul.mubr.bf16.vlgmr.msra.gmra.mrb[140].mxu0 %v13840_v27 }
 0xa27   :  { %10774 = vmatprep.mubr.msk.bf16.mxu0 %vm12145_vm7, %v12144_v34  ;;  %10811 = vmatpush3.bf16.msra.mxu0 %v11336_v48 }
 0xa28   :  { %10812 = vmatprep.subr.bf16.mxu0 %v12144_v34 }
 0xa2b   :  { %10813 = vmatpush3.bf16.msra.mxu0 %v11337_v14 }
 0xa2c   :  { %10814 = vmatprep.subr.bf16.mxu0 %v12144_v34 }
 0xa2e   :  { %10775 = vmatmul.mubr.bf16.gmra.mrb[144].mxu0 %v13855_v63 }
 0xa2f   :  { %10778 = vmatprep.mubr.msk.bf16.mxu0 %vm12145_vm7, %v12144_v34  ;;  %10815 = vmatpush3.bf16.msra.mxu0 %v11338_v5 }
 0xa30   :  { %10816 = vmatprep.subr.bf16.mxu0 %v12144_v34 }
 0xa33   :  { %10817 = vmatpush3.bf16.msra.mxu0 %v11339_v25 }
 0xa34   :  { %10818 = vmatprep.subr.bf16.mxu0 %v12144_v34 }
 0xa36   :  { %10779 = vmatmul.mubr.bf16.gmra.mrb[148].mxu0 %v13858_v9  ;;  %v11352_v9 = vld [vmem:[#allocation21 + $0x70] sm:$0xff]  }
 0xa37   :  { %10826 = vmatprep.mubr.msk.bf16.mxu0 %vm12145_vm7, %v12144_v34  ;;  %10819 = vmatpush3.bf16.msra.mxu0 %v11341_v56 }
 0xa38   :  { %10820 = vmatprep.subr.bf16.mxu0 %v12144_v34  ;;  %10795 = vmatpush3.bf16.msra.mxu1 %v11352_v9 }
 0xa39   :  { %10796 = vmatprep.subr.bf16.mxu1 %v12144_v34 }
 0xa3b   :  { %10821 = vmatpush3.bf16.msra.mxu0 %v11343_v21 }
 0xa3c   :  { %10822 = vmatprep.subr.bf16.mxu0 %v12144_v34  ;;  %10797 = vmatpush3.bf16.msra.mxu1 %v11354_v2 }
 0xa3d   :  { %10838 = vmatprep.subr.bf16.mxu1 %v12144_v34 }
 0xa3f   :  { %10823 = vmatpush3.bf16.msra.mxu0 %v11345_v55 }
 0xa40   :  { %10824 = vmatprep.subr.bf16.mxu0 %v12144_v34 }
 0xa43   :  { %10825 = vmatpush3.bf16.msra.mxu0 %v11347_v30 }
 0xa44   :  { %10866 = vmatprep.subr.bf16.mxu0 %v12144_v34 }
 0xa79   :  { %v5112_v27 = vpop.f32.mrb[92].mxu0 }
 0xa7a   :  { %v10660_v29 = vpop.f32.mrb[93].mxu0 }
 0xa7b   :  { %v5115_v60 = vpop.f32.mrb[94].mxu0 }
 0xa7c   :  { %v10661_v1 = vpop.f32.mrb[95].mxu0 }
 0xa81   :  { %v5120_v42 = vpop.f32.mrb[96].mxu0 }
 0xa82   :  { %v10664_v31 = vpop.f32.mrb[97].mxu0 }
 0xa83   :  { %v5123_v57 = vpop.f32.mrb[98].mxu0 }
 0xa84   :  { %v10665_v49 = vpop.f32.mrb[99].mxu0 }
 0xa89   :  { %v5128_v40 = vpop.f32.mrb[100].mxu0 }
 0xa8a   :  { %v10668_v41 = vpop.f32.mrb[101].mxu0 }
 0xa8b   :  { %v5131_v18 = vpop.f32.mrb[102].mxu0 }
 0xa8c   :  { %v10669_v63 = vpop.f32.mrb[103].mxu0 }
 0xa99   :  { %v5217_v44 = vpop.f32.mrb[104].mxu0 }
 0xa9a   :  { %v5218_v59 = vadd.f32 %v5217_v44, %v5112_v27  ;;  %v10688_v10 = vpop.f32.mrb[105].mxu0 }
 0xa9b   :  { %v5220_v12 = vpop.f32.mrb[106].mxu0 }
 0xa9c   :  { %v5221_v7 = vadd.f32 %v5220_v12, %v5115_v60  ;;  %v10689_v36 = vpop.f32.mrb[107].mxu0  ;;  %v11349_v12 = vld [vmem:[#allocation21 + $0xc0] sm:$0xff]  }
 0xaa1   :  { %v5225_v54 = vpop.f32.mrb[108].mxu0 }
 0xaa2   :  { %v5226_v8 = vadd.f32 %v5225_v54, %v5120_v42  ;;  %v10692_v39 = vpop.f32.mrb[109].mxu0 }
 0xaa3   :  { %v5228_v19 = vpop.f32.mrb[110].mxu0 }
 0xaa4   :  { %v5229_v58 = vadd.f32 %v5228_v19, %v5123_v57  ;;  %v10693_v45 = vpop.f32.mrb[111].mxu0 }
 0xaa5   :  { %v11351_v45 = vld [vmem:[#allocation21 + $0xc8] sm:$0xff]  }
 0xaa9   :  { %v5233_v22 = vpop.f32.mrb[112].mxu0 }
 0xaaa   :  { %v5234_v50 = vadd.f32 %v5233_v22, %v5128_v40  ;;  %v10696_v15 = vpop.f32.mrb[113].mxu0 }
 0xaab   :  { %v5236_v51 = vpop.f32.mrb[114].mxu0 }
 0xaac   :  { %v5237_v24 = vadd.f32 %v5236_v51, %v5131_v18  ;;  %v10697_v0 = vpop.f32.mrb[115].mxu0 }
 0xaad   :  { %v11353_v0 = vld [vmem:[#allocation21 + $0xd0] sm:$0xff]  }
 0xab9   :  { %v5353_v16 = vpop.f32.mrb[116].mxu0 }
 0xaba   :  { %v5376_v17 = vadd.f32 %v5353_v16, %v5218_v59  ;;  %v10716_v13 = vpop.f32.mrb[117].mxu0 }
 0xabb   :  { %v5356_v4 = vpop.f32.mrb[118].mxu0 }
 0xabc   :  { %v5377_v35 = vadd.f32 %v5356_v4, %v5221_v7  ;;  %v10717_v6 = vpop.f32.mrb[119].mxu0 }
 0xac1   :  { %v5361_v61 = vpop.f32.mrb[120].mxu0 }
 0xac2   :  { %v5378_v32 = vadd.f32 %v5361_v61, %v5226_v8  ;;  %v10720_v47 = vpop.f32.mrb[121].mxu0 }
 0xac3   :  { %v5364_v62 = vpop.f32.mrb[122].mxu0 }
 0xac4   :  { %v5379_v46 = vadd.f32 %v5364_v62, %v5229_v58  ;;  %v10721_v38 = vpop.f32.mrb[123].mxu0 }
 0xac9   :  { %v5369_v20 = vpop.f32.mrb[124].mxu0 }
 0xaca   :  { %v5380_v33 = vadd.f32 %v5369_v20, %v5234_v50  ;;  %v10724_v3 = vpop.f32.mrb[125].mxu0 }
 0xacb   :  { %v5372_v43 = vpop.f32.mrb[126].mxu0 }
 0xacc   :  { %v5381_v28 = vadd.f32 %v5372_v43, %v5237_v24  ;;  %v10725_v48 = vpop.f32.mrb[127].mxu0 }
 0xad9   :  { %v5501_v14 = vpop.f32.mrb[128].mxu0 }
 0xada   :  { %v5524_v5 = vadd.f32 %v5501_v14, %v5376_v17  ;;  %v10744_v26 = vpop.f32.mrb[129].mxu0 }
 0xadb   :  { %v5504_v25 = vpop.f32.mrb[130].mxu0 }
 0xadc   :  { %v5525_v53 = vadd.f32 %v5504_v25, %v5377_v35  ;;  %v10745_v56 = vpop.f32.mrb[131].mxu0  ;;  %v11356_v25 = vld [vmem:[#allocation21 + $0x80] sm:$0xff]  }
 0xae1   :  { %v5509_v21 = vpop.f32.mrb[132].mxu0 }
 0xae2   :  { %v5526_v27 = vadd.f32 %v5509_v21, %v5378_v32  ;;  %v10748_v29 = vpop.f32.mrb[133].mxu0 }
 0xae3   :  { %v5512_v60 = vpop.f32.mrb[134].mxu0 }
 0xae4   :  { %v5527_v1 = vadd.f32 %v5512_v60, %v5379_v46  ;;  %v10749_v52 = vpop.f32.mrb[135].mxu0 }
 0xae5   :  { %v11357_v52 = vld [vmem:[#allocation21 + $0xe0] sm:$0xff]  }
 0xae9   :  { %v5517_v42 = vpop.f32.mrb[136].mxu0 }
 0xaea   :  { %v5528_v31 = vadd.f32 %v5517_v42, %v5380_v33  ;;  %v10752_v55 = vpop.f32.mrb[137].mxu0  ;;  %v11355_v33 = vld [vmem:[#allocation21 + $0xd8] sm:$0xff]  }
 0xaeb   :  { %v5520_v37 = vpop.f32.mrb[138].mxu0 }
 0xaec   :  { %v5529_v57 = vadd.f32 %v5520_v37, %v5381_v28  ;;  %v10753_v49 = vpop.f32.mrb[139].mxu0  ;;  %v11358_v37 = vld [vmem:[#allocation21 + $0x88] sm:$0xff]  }
 0xaf9   :  { %v5639_v30 = vpop.f32.mrb[140].mxu0 }
 0xafa   :  { %v5662_v40 = vadd.f32 %v5639_v30, %v5524_v5  ;;  %v10772_v41 = vpop.f32.mrb[141].mxu0 }
 0xafb   :  { %v5642_v23 = vpop.f32.mrb[142].mxu0  ;;  %v11359_v41 = vld [vmem:[#allocation21 + $0xe8] sm:$0xff]  }
 0xafc   :  { %v5675_v18 = vadd.f32 %v9248_v11, %v5662_v40  ;;  %v5663_v63 = vadd.f32 %v5642_v23, %v5525_v53  ;;  %v10773_v9 = vpop.f32.mrb[143].mxu0 }
 0xafe   :  { %v5676_v2 = vadd.f32 %v9248_v11, %v5663_v63  ;;  %v5681_v44 = vmax.f32 %v5675_v18, 0.0  ;;  %v11360_v63 = vld [vmem:[#allocation21 + $0x90] sm:$0xff]  }
 0xb00   :  { %v5682_v59 = vmax.f32 %v5676_v2, 0.0 }
 0xb01   :  { %v5647_v10 = vpop.f32.mrb[144].mxu0 }
 0xb02   :  { %v5687_v7 = vpack.c.bf16 %v5682_v59, %v5681_v44  ;;  %v5664_v36 = vadd.f32 %v5647_v10, %v5526_v27  ;;  %v10776_v54 = vpop.f32.mrb[145].mxu0 }
 0xb03   :  { %v5650_v8 = vpop.f32.mrb[146].mxu0 }
 0xb04   :  { %v5677_v39 = vadd.f32 %v9248_v11, %v5664_v36  ;;  %v5665_v19 = vadd.f32 %v5650_v8, %v5527_v1  ;;  %v10777_v58 = vpop.f32.mrb[147].mxu0  ;;  %10827 = vmatmul.mubr.bf16.vlgmr.msra.gmra.mrb[152].mxu0 %v5687_v7  ;;  %v5726_v50 = vshll.u32 %v5687_v7, 16  ;;  %v5724_v16 = vshrl.u32 %v5687_v7, 16  ;;  %v11362_v36 = vld [vmem:[#allocation21 + $0x98] sm:$0xff]  }
 0xb05   :  { %10867 = vmatpush3.bf16.msra.mxu0 %v11349_v12  ;;  %10830 = vmatprep.mubr.msk.bf16.mxu0 %vm12145_vm7, %v12144_v34  ;;  %v5979_v61 = vrot.slane %v5687_v7, 1  ;;  %v6257_v32 = vrot.slane %v5687_v7, 2  ;;  %v11361_v7 = vld [vmem:[#allocation21 + $0xf0] sm:$0xff]   ;;  %v11363_v8 = vld [vmem:[#allocation21 + $0xf8] sm:$0xff]   ;;  %v11365_v58 = vld [vmem:[#allocation21 + $0xa8] sm:$0xff]  }
 0xb06   :  { %v5678_v22 = vadd.f32 %v9248_v11, %v5665_v19  ;;  %10868 = vmatprep.subr.bf16.mxu0 %v12144_v34  ;;  %v5683_v15 = vmax.f32 %v5677_v39, 0.0  ;;  %v5728_v35 = vrot.slane %v5726_v50, 1  ;;  %v6115_v3 = vrot.slane %v5724_v16, 1  ;;  %v11364_v39 = vld [vmem:[#allocation21 + $0xa0] sm:$0xff]  }
 0xb07   :  { %v6116_v43 = vrot.slane %v5726_v50, 2  ;;  %v11368_v50 = vld [vmem:[#allocation21 + $0x100] sm:$0xff]  }
 0xb08   :  { %v5684_v51 = vmax.f32 %v5678_v22, 0.0  ;;  %v5729_v5 = vor.u32 %v5728_v35, %v5724_v16  ;;  %v11367_v22 = vld [vmem:[#allocation21 + $0xb8] sm:$0xff]   ;;  %v11373_v16 = vld [vmem:[#allocation21 + $0x128] sm:$0xff]  }
 0xb09   :  { %10869 = vmatpush3.bf16.msra.mxu0 %v11351_v45  ;;  %v5655_v24 = vpop.f32.mrb[148].mxu0  ;;  %v6117_v42 = vor.u32 %v6116_v43, %v6115_v3  ;;  %v11366_v45 = vld [vmem:[#allocation21 + $0xb0] sm:$0xff]   ;;  %v11394_v43 = vld [vmem:[#allocation24 + $0xe0] ss:$8 sps:$4 sm:$0xff]  }
 0xb0a   :  { %v13957_v17 = vpack.c.bf16 %v5684_v51, %v5683_v15  ;;  %v5666_v13 = vadd.f32 %v5655_v24, %v5528_v31  ;;  %v10780_v4 = vpop.f32.mrb[149].mxu0  ;;  %10870 = vmatprep.subr.bf16.mxu0 %v12144_v34  ;;  %v11369_v15 = vld [vmem:[#allocation21 + $0x108] sm:$0xff]   ;;  %v11370_v51 = vld [vmem:[#allocation21 + $0x110] sm:$0xff]   ;;  %v11371_v24 = vld [vmem:[#allocation21 + $0x118] sm:$0xff]  }
 0xb0b   :  { %v5658_v6 = vpop.f32.mrb[150].mxu0  ;;  %v11376_v4 = vld [vmem:[#allocation24 + $0x80] ss:$8 sps:$4 sm:$0xff]   ;;  %v11378_v35 = vld [vmem:[#allocation24 + $0x84] ss:$8 sps:$4 sm:$0xff]  }
 0xb0c   :  { %v5679_v47 = vadd.f32 %v9248_v11, %v5666_v13  ;;  %v5667_v62 = vadd.f32 %v5658_v6, %v5529_v57  ;;  %v10781_v46 = vpop.f32.mrb[151].mxu0  ;;  %10831 = vmatmul.mubr.bf16.gmra.mrb[156].mxu0 %v13957_v17  ;;  %v5731_v38 = vshll.u32 %v13957_v17, 16  ;;  %v5735_v20 = vshrl.u32 %v13957_v17, 16  ;;  %v11375_v13 = vld [vmem:[#allocation21 + $0x138] sm:$0xff]   ;;  %v11396_v3 = vld [vmem:[#allocation24 + $0xe4] ss:$8 sps:$4 sm:$0xff]  }
 0xb0d   :  { %10871 = vmatpush3.bf16.msra.mxu0 %v11353_v0  ;;  %10834 = vmatprep.mubr.msk.bf16.mxu0 %vm12145_vm7, %v12144_v34  ;;  %v5980_v28 = vrot.slane %v13957_v17, 1  ;;  %v6258_v48 = vrot.slane %v13957_v17, 2  ;;  %v11372_v0 = vld [vmem:[#allocation21 + $0x120] sm:$0xff]   ;;  %v11374_v17 = vld [vmem:[#allocation21 + $0x130] sm:$0xff]  }
 0xb0e   :  { %v5680_v14 = vadd.f32 %v9248_v11, %v5667_v62  ;;  %10872 = vmatprep.subr.bf16.mxu0 %v12144_v34  ;;  %v5733_v26 = vrot.slane %v5731_v38, 1  ;;  %v6118_v53 = vrot.slane %v5735_v20, 1  ;;  %v6119_v56 = vrot.slane %v5731_v38, 2  ;;  %v11381_v6 = vld [vmem:[#allocation24 + $0x94] ss:$8 sps:$4 sm:$0xff]  }
 0xb0f   :  { %v13969_v21 = vsel %vm645_vm3, %v5979_v61, %v5980_v28  ;;  %v13972_v27 = vsel %vm999_vm5, %v6257_v32, %v6258_v48  ;;  %v5685_v29 = vmax.f32 %v5679_v47, 0.0  ;;  %v11379_v61 = vld [vmem:[#allocation24 + $0x90] ss:$8 sps:$4 sm:$0xff]   ;;  %v11384_v32 = vld [vmem:[#allocation24 + $0xa4] ss:$8 sps:$4 sm:$0xff]  }
 0xb10   :  { %v5686_v60 = vmax.f32 %v5680_v14, 0.0  ;;  %v5734_v1 = vsel %vm309_vm1, %v5729_v5, %v5733_v26  ;;  %v6120_v31 = vor.u32 %v6119_v56, %v6118_v53  ;;  %v5737_v23 = vor.u32 %v5735_v20, %v5733_v26  ;;  %v11382_v47 = vld [vmem:[#allocation24 + $0xa0] ss:$8 sps:$4 sm:$0xff]   ;;  %v11385_v62 = vld [vmem:[#allocation24 + $0xb0] ss:$8 sps:$4 sm:$0xff]  }
 0xb11   :  { %10873 = vmatpush3.bf16.msra.mxu0 %v11355_v33  ;;  %10799 = vmatmul.mubr.bf16.vlgmr.msra.gmra.mrb[168].mxu1 %v5734_v1  ;;  %v11387_v46 = vld [vmem:[#allocation24 + $0xb4] ss:$8 sps:$4 sm:$0xff]   ;;  %v11390_v38 = vld [vmem:[#allocation24 + $0xc4] ss:$8 sps:$4 sm:$0xff]   ;;  %v11391_v20 = vld [vmem:[#allocation24 + $0xd0] ss:$8 sps:$4 sm:$0xff]  }
 0xb12   :  { %v13975_v55 = vpack.c.bf16 %v5686_v60, %v5685_v29  ;;  %10839 = vmatpush3.bf16.msra.mxu1 %v11356_v25  ;;  %10874 = vmatprep.subr.bf16.mxu0 %v12144_v34  ;;  %v6121_v57 = vsel %vm814_vm4, %v6117_v42, %v6120_v31  ;;  %v11393_v33 = vld [vmem:[#allocation24 + $0xd4] ss:$8 sps:$4 sm:$0xff]   ;;  %v12146_v14 = vmov 0   ;;  %v11402_v5 = vld [vmem:[#allocation24 + $0x4] ss:$8 sps:$4 sm:$0xff]  }
 0xb13   :  { %10840 = vmatprep.subr.bf16.mxu1 %v12144_v34  ;;  %10802 = vmatprep.mubr.msk.bf16.mxu1 %vm12145_vm7, %v12144_v34 }
 0xb14   :  { %10835 = vmatmul.mubr.bf16.gmra.mrb[160].mxu0 %v13975_v55  ;;  %v5739_v49 = vshll.u32 %v13975_v55, 16  ;;  %v5743_v30 = vshrl.u32 %v13975_v55, 16  ;;  %v5982_v11 = vrot.slane %v13975_v55, 1  ;;  %v6260_v40 = vrot.slane %v13975_v55, 2 }
 0xb15   :  { %10875 = vmatpush3.bf16.msra.mxu0 %v11357_v52  ;;  %10882 = vmatprep.mubr.msk.bf16.mxu0 %vm12145_vm7, %v12144_v34 }
 0xb16   :  { %10841 = vmatpush3.bf16.msra.mxu1 %v11358_v37  ;;  %10876 = vmatprep.subr.bf16.mxu0 %v12144_v34  ;;  %v5741_v18 = vrot.slane %v5739_v49, 1  ;;  %v6122_v9 = vrot.slane %v5743_v30, 1  ;;  %v6123_v2 = vrot.slane %v5739_v49, 2  ;;  %v5983_v44 = vsel %vm645_vm3, %v5980_v28, %v5982_v11  ;;  %v11397_v28 = vld [vmem:[#allocation24 + $0xf0] ss:$8 sps:$4 sm:$0xff]  }
 0xb17   :  { %10842 = vmatprep.subr.bf16.mxu1 %v12144_v34  ;;  %v13997_v59 = vsel %vm999_vm5, %v6258_v48, %v6260_v40  ;;  %v11399_v48 = vld [vmem:[#allocation24 + $0xf4] ss:$8 sps:$4 sm:$0xff]  }
 0xb18   :  { %v5742_v10 = vsel %vm309_vm1, %v5737_v23, %v5741_v18  ;;  %v6124_v12 = vor.u32 %v6123_v2, %v6122_v9  ;;  %v5745_v19 = vor.u32 %v5743_v30, %v5741_v18 }
 0xb19   :  { %10877 = vmatpush3.bf16.msra.mxu0 %v11359_v41  ;;  %10803 = vmatmul.mubr.bf16.gmra.mrb[172].mxu1 %v5742_v10 }
 0xb1a   :  { %10843 = vmatpush3.bf16.msra.mxu1 %v11360_v63  ;;  %10878 = vmatprep.subr.bf16.mxu0 %v12144_v34  ;;  %v6125_v54 = vsel %vm814_vm4, %v6120_v31, %v6124_v12 }
 0xb1b   :  { %10844 = vmatprep.subr.bf16.mxu1 %v12144_v34  ;;  %10806 = vmatprep.mubr.msk.bf16.mxu1 %vm12145_vm7, %v12144_v34 }
 0xb1d   :  { %10879 = vmatpush3.bf16.msra.mxu0 %v11361_v7 }
 0xb1e   :  { %10845 = vmatpush3.bf16.msra.mxu1 %v11362_v36  ;;  %10880 = vmatprep.subr.bf16.mxu0 %v12144_v34 }
 0xb1f   :  { %10846 = vmatprep.subr.bf16.mxu1 %v12144_v34 }
 0xb21   :  { %10881 = vmatpush3.bf16.msra.mxu0 %v11363_v8  ;;  %10807 = vmatmul.mubr.bf16.gmra.mrb[176].mxu1 %v5745_v19 }
 0xb22   :  { %10847 = vmatpush3.bf16.msra.mxu1 %v11364_v39  ;;  %10854 = vmatprep.mubr.msk.bf16.mxu1 %vm12145_vm7, %v12144_v34 }
 0xb23   :  { %10848 = vmatprep.subr.bf16.mxu1 %v12144_v34  ;;  %6537 = vmatprep.subr.bf16.mxu0 %v11378_v35 }
 0xb24   :  { %10883 = vmatmul.mubr.bf16.vlgmr.msra.gmra.mrb[164].mxu0 %v6121_v57 }
 0xb25   :  { %10886 = vmatprep.mubr.msk.bf16.mxu0 %vm12145_vm7, %v12144_v34  ;;  %6538 = vmatpush1.bf16.msra.mxu0 %v11376_v4 }
 0xb26   :  { %10849 = vmatpush3.bf16.msra.mxu1 %v11365_v58  ;;  %6539 = vmatprep.subr.bf16.mxu0 %v11381_v6 }
 0xb27   :  { %10850 = vmatprep.subr.bf16.mxu1 %v12144_v34 }
 0xb29   :  { %6540 = vmatpush1.bf16.msra.mxu0 %v11379_v61 }
 0xb2a   :  { %10851 = vmatpush3.bf16.msra.mxu1 %v11366_v45  ;;  %6541 = vmatprep.subr.bf16.mxu0 %v11384_v32 }
 0xb2b   :  { %10852 = vmatprep.subr.bf16.mxu1 %v12144_v34 }
 0xb2c   :  { %10887 = vmatmul.mubr.bf16.gmra.mrb[168].mxu0 %v6125_v54 }
 0xb2d   :  { %10890 = vmatprep.mubr.msk.bf16.mxu0 %vm12145_vm7, %v12144_v34  ;;  %6542 = vmatpush1.bf16.msra.mxu0 %v11382_v47 }
 0xb2e   :  { %10853 = vmatpush3.bf16.msra.mxu1 %v11367_v22  ;;  %6543 = vmatprep.subr.bf16.mxu0 %v11387_v46 }
 0xb2f   :  { %10894 = vmatprep.subr.bf16.mxu1 %v12144_v34 }
 0xb31   :  { %10855 = vmatmul.mubr.bf16.vlgmr.msra.gmra.mrb[180].mxu1 %v13969_v21  ;;  %6544 = vmatpush1.bf16.msra.mxu0 %v11385_v62 }
 0xb32   :  { %10895 = vmatpush3.bf16.msra.mxu1 %v11368_v50  ;;  %10858 = vmatprep.mubr.msk.bf16.mxu1 %vm12145_vm7, %v12144_v34 }
 0xb33   :  { %10896 = vmatprep.subr.bf16.mxu1 %v12144_v34  ;;  %6545 = vmatprep.subr.bf16.mxu0 %v11390_v38 }
 0xb34   :  { %10891 = vmatmul.mubr.bf16.gmra.mrb[172].mxu0 %v6124_v12 }
 0xb35   :  { %6569 = vmatprep.mubr.bf16.mxu0 %v12146_v14 }
 0xb36   :  { %10897 = vmatpush3.bf16.msra.mxu1 %v11369_v15 }
 0xb37   :  { %10898 = vmatprep.subr.bf16.mxu1 %v12144_v34 }
 0xb39   :  { %10859 = vmatmul.mubr.bf16.gmra.mrb[184].mxu1 %v5983_v44 }
 0xb3a   :  { %10899 = vmatpush3.bf16.msra.mxu1 %v11370_v51  ;;  %10862 = vmatprep.mubr.msk.bf16.mxu1 %vm12145_vm7, %v12144_v34 }
 0xb3b   :  { %10900 = vmatprep.subr.bf16.mxu1 %v12144_v34 }
 0xb3e   :  { %10901 = vmatpush3.bf16.msra.mxu1 %v11371_v24 }
 0xb3f   :  { %10902 = vmatprep.subr.bf16.mxu1 %v12144_v34 }
 0xb41   :  { %10863 = vmatmul.mubr.bf16.gmra.mrb[188].mxu1 %v5982_v11 }
 0xb42   :  { %10903 = vmatpush3.bf16.msra.mxu1 %v11372_v0  ;;  %10910 = vmatprep.mubr.msk.bf16.mxu1 %vm12145_vm7, %v12144_v34 }
 0xb43   :  { %10904 = vmatprep.subr.bf16.mxu1 %v12144_v34 }
 0xb46   :  { %10905 = vmatpush3.bf16.msra.mxu1 %v11373_v16 }
 0xb47   :  { %10906 = vmatprep.subr.bf16.mxu1 %v12144_v34 }
 0xb4a   :  { %10907 = vmatpush3.bf16.msra.mxu1 %v11374_v17 }
 0xb4b   :  { %10908 = vmatprep.subr.bf16.mxu1 %v12144_v34 }
 0xb4e   :  { %10909 = vmatpush3.bf16.msra.mxu1 %v11375_v13 }
 0xb51   :  { %10911 = vmatmul.mubr.bf16.vlgmr.msra.gmra.mrb[192].mxu1 %v13972_v27 }
 0xb52   :  { %10914 = vmatprep.mubr.msk.bf16.mxu1 %vm12145_vm7, %v12144_v34 }
 0xb59   :  { %10915 = vmatmul.mubr.bf16.gmra.mrb[196].mxu1 %v13997_v59 }
 0xb5a   :  { %10918 = vmatprep.mubr.msk.bf16.mxu1 %vm12145_vm7, %v12144_v34  ;;  %v11388_v34 = vld [vmem:[#allocation24 + $0xc0] ss:$8 sps:$4 sm:$0xff]  }
 0xb5b   :  { %6546 = vmatpush1.bf16.msra.mxu0 %v11388_v34 }
 0xb5c   :  { %6547 = vmatprep.subr.bf16.mxu0 %v11393_v33 }
 0xb5f   :  { %6548 = vmatpush1.bf16.msra.mxu0 %v11391_v20 }
 0xb60   :  { %6549 = vmatprep.subr.bf16.mxu0 %v11396_v3 }
 0xb61   :  { %10919 = vmatmul.mubr.bf16.gmra.mrb[200].mxu1 %v6260_v40 }
 0xb62   :  { %7370 = vmatprep.mubr.bf16.mxu1 %v12146_v14 }
 0xb63   :  { %6550 = vmatpush1.bf16.msra.mxu0 %v11394_v43 }
 0xb64   :  { %6551 = vmatprep.subr.bf16.mxu0 %v11399_v48 }
 0xb67   :  { %6552 = vmatpush1.bf16.msra.mxu0 %v11397_v28 }
 0xb68   :  { %6678 = vmatprep.subr.bf16.mxu0 %v11402_v5 }
 0xbd7   :  { %v5936_v26 = vpop.f32.mrb[152].mxu0 }
 0xbd8   :  { %v10828_v25 = vpop.f32.mrb[153].mxu0 }
 0xbd9   :  { %v5939_v53 = vpop.f32.mrb[154].mxu0 }
 0xbda   :  { %v10829_v56 = vpop.f32.mrb[155].mxu0 }
 0xbdf   :  { %v5944_v21 = vpop.f32.mrb[156].mxu0 }
 0xbe0   :  { %v10832_v27 = vpop.f32.mrb[157].mxu0 }
 0xbe1   :  { %v5947_v29 = vpop.f32.mrb[158].mxu0 }
 0xbe2   :  { %v10833_v60 = vpop.f32.mrb[159].mxu0 }
 0xbe4   :  { %v5831_v1 = vpop.f32.mrb[168].mxu1 }
 0xbe5   :  { %v5937_v52 = vadd.f32 %v5936_v26, %v5831_v1  ;;  %v10800_v42 = vpop.f32.mrb[169].mxu1 }
 0xbe6   :  { %v5834_v31 = vpop.f32.mrb[170].mxu1 }
 0xbe7   :  { %v5940_v55 = vadd.f32 %v5939_v53, %v5834_v31  ;;  %v10801_v37 = vpop.f32.mrb[171].mxu1  ;;  %v5952_v57 = vpop.f32.mrb[160].mxu0 }
 0xbe8   :  { %v10836_v49 = vpop.f32.mrb[161].mxu0 }
 0xbe9   :  { %v5955_v30 = vpop.f32.mrb[162].mxu0 }
 0xbea   :  { %v10837_v11 = vpop.f32.mrb[163].mxu0 }
 0xbec   :  { %v5839_v40 = vpop.f32.mrb[172].mxu1 }
 0xbed   :  { %v5945_v41 = vadd.f32 %v5944_v21, %v5839_v40  ;;  %v10804_v23 = vpop.f32.mrb[173].mxu1  ;;  %v9289_v21 = vld [vmem:[#allocation22] ss:$0 sm:$0xff] }
 0xbee   :  { %v5842_v18 = vpop.f32.mrb[174].mxu1 }
 0xbef   :  { %v5948_v63 = vadd.f32 %v5947_v29, %v5842_v18  ;;  %v10805_v9 = vpop.f32.mrb[175].mxu1 }
 0xbf4   :  { %v5847_v2 = vpop.f32.mrb[176].mxu1 }
 0xbf5   :  { %v5953_v44 = vadd.f32 %v5952_v57, %v5847_v2  ;;  %v10808_v59 = vpop.f32.mrb[177].mxu1 }
 0xbf6   :  { %v5850_v10 = vpop.f32.mrb[178].mxu1 }
 0xbf7   :  { %v5956_v12 = vadd.f32 %v5955_v30, %v5850_v10  ;;  %v6211_v7 = vpop.f32.mrb[164].mxu0  ;;  %v10809_v36 = vpop.f32.mrb[179].mxu1 }
 0xbf8   :  { %v10884_v54 = vpop.f32.mrb[165].mxu0 }
 0xbf9   :  { %v6214_v8 = vpop.f32.mrb[166].mxu0 }
 0xbfa   :  { %v10885_v39 = vpop.f32.mrb[167].mxu0 }
 0xbff   :  { %v6219_v19 = vpop.f32.mrb[168].mxu0 }
 0xc00   :  { %v10888_v58 = vpop.f32.mrb[169].mxu0 }
 0xc01   :  { %v6222_v45 = vpop.f32.mrb[170].mxu0 }
 0xc02   :  { %v10889_v22 = vpop.f32.mrb[171].mxu0 }
 0xc04   :  { %v6069_v50 = vpop.f32.mrb[180].mxu1 }
 0xc05   :  { %v6092_v15 = vadd.f32 %v6069_v50, %v5937_v52  ;;  %v10856_v51 = vpop.f32.mrb[181].mxu1 }
 0xc06   :  { %v6072_v24 = vpop.f32.mrb[182].mxu1 }
 0xc07   :  { %v6093_v0 = vadd.f32 %v6072_v24, %v5940_v55  ;;  %v10857_v16 = vpop.f32.mrb[183].mxu1  ;;  %v6227_v17 = vpop.f32.mrb[172].mxu0  ;;  %v6234_v13 = vadd.f32 %v6211_v7, %v6092_v15 }
 0xc08   :  { %v10892_v4 = vpop.f32.mrb[173].mxu0 }
 0xc09   :  { %v6230_v35 = vpop.f32.mrb[174].mxu0  ;;  %v6235_v6 = vadd.f32 %v6214_v8, %v6093_v0  ;;  %v11400_v4 = vld [vmem:[#allocation24] ss:$8 sps:$4 sm:$0xff]  }
 0xc0a   :  { %v10893_v61 = vpop.f32.mrb[175].mxu0 }
 0xc0c   :  { %v6077_v32 = vpop.f32.mrb[184].mxu1 }
 0xc0d   :  { %v6094_v47 = vadd.f32 %v6077_v32, %v5945_v41  ;;  %v10860_v62 = vpop.f32.mrb[185].mxu1  ;;  %v11405_v32 = vld [vmem:[#allocation24 + $0x14] ss:$8 sps:$4 sm:$0xff]  }
 0xc0e   :  { %v6080_v46 = vpop.f32.mrb[186].mxu1 }
 0xc0f   :  { %v6095_v38 = vadd.f32 %v6080_v46, %v5948_v63  ;;  %v10861_v34 = vpop.f32.mrb[187].mxu1  ;;  %v6236_v20 = vadd.f32 %v6219_v19, %v6094_v47 }
 0xc11   :  { %v6237_v33 = vadd.f32 %v6222_v45, %v6095_v38 }
 0xc14   :  { %v6085_v3 = vpop.f32.mrb[188].mxu1 }
 0xc15   :  { %v6096_v43 = vadd.f32 %v6085_v3, %v5953_v44  ;;  %v10864_v28 = vpop.f32.mrb[189].mxu1 }
 0xc16   :  { %v6088_v48 = vpop.f32.mrb[190].mxu1  ;;  %v11408_v28 = vld [vmem:[#allocation24 + $0x24] ss:$8 sps:$4 sm:$0xff]  }
 0xc17   :  { %v6097_v5 = vadd.f32 %v6088_v48, %v5956_v12  ;;  %v10865_v26 = vpop.f32.mrb[191].mxu1  ;;  %v6238_v25 = vadd.f32 %v6227_v17, %v6096_v43  ;;  %v11403_v43 = vld [vmem:[#allocation24 + $0x10] ss:$8 sps:$4 sm:$0xff]  }
 0xc19   :  { %v6239_v53 = vadd.f32 %v6230_v35, %v6097_v5 }
 0xc24   :  { %v6347_v56 = vpop.f32.mrb[192].mxu1 }
 0xc25   :  { %v6370_v27 = vadd.f32 %v6347_v56, %v6234_v13  ;;  %v10912_v29 = vpop.f32.mrb[193].mxu1 }
 0xc26   :  { %v6350_v60 = vpop.f32.mrb[194].mxu1 }
 0xc27   :  { %v6383_v1 = vadd.f32 %v9289_v21, %v6370_v27  ;;  %v6371_v52 = vadd.f32 %v6350_v60, %v6235_v6  ;;  %v10913_v42 = vpop.f32.mrb[195].mxu1 }
 0xc29   :  { %v6384_v31 = vadd.f32 %v9289_v21, %v6371_v52  ;;  %v6389_v55 = vmax.f32 %v6383_v1, 0.0  ;;  %v11411_v52 = vld [vmem:[#allocation24 + $0x34] ss:$8 sps:$4 sm:$0xff]  }
 0xc2b   :  { %v6390_v37 = vmax.f32 %v6384_v31, 0.0 }
 0xc2c   :  { %v6355_v57 = vpop.f32.mrb[196].mxu1 }
 0xc2d   :  { %v14043_v49 = vpack.c.bf16 %v6390_v37, %v6389_v55  ;;  %v6372_v30 = vadd.f32 %v6355_v57, %v6236_v20  ;;  %v10916_v11 = vpop.f32.mrb[197].mxu1  ;;  %v11409_v37 = vld [vmem:[#allocation24 + $0x30] ss:$8 sps:$4 sm:$0xff]  }
 0xc2e   :  { %v6358_v40 = vpop.f32.mrb[198].mxu1  ;;  %v11412_v11 = vld [vmem:[#allocation24 + $0x40] ss:$8 sps:$4 sm:$0xff]  }
 0xc2f   :  { %v6385_v41 = vadd.f32 %v9289_v21, %v6372_v30  ;;  %v6373_v23 = vadd.f32 %v6358_v40, %v6237_v33  ;;  %v10917_v18 = vpop.f32.mrb[199].mxu1  ;;  %v6432_v63 = vshrl.u32 %v14043_v49, 16  ;;  %v6434_v9 = vshll.u32 %v14043_v49, 16  ;;  %v11414_v30 = vld [vmem:[#allocation24 + $0x44] ss:$8 sps:$4 sm:$0xff]  }
 0xc30   :  { %v6759_v24 = vrot.slane %v14043_v49, 1  ;;  %v7117_v16 = vrot.slane %v14043_v49, 2  ;;  %v11420_v18 = vld [vmem:[#allocation24 + $0x64] ss:$8 sps:$4 sm:$0xff]  }
 0xc31   :  { %v6386_v2 = vadd.f32 %v9289_v21, %v6373_v23  ;;  %v6935_v44 = vrot.slane %v6432_v63, 1  ;;  %v6936_v59 = vrot.slane %v6434_v9, 2  ;;  %v6391_v10 = vmax.f32 %v6385_v41, 0.0  ;;  %v11417_v41 = vld [vmem:[#allocation24 + $0x54] ss:$8 sps:$4 sm:$0xff]  }
 0xc32   :  { %v6436_v19 = vrot.slane %v6434_v9, 1  ;;  %v11415_v23 = vld [vmem:[#allocation24 + $0x50] ss:$8 sps:$4 sm:$0xff]   ;;  %v11423_v9 = vld [vmem:[#allocation24 + $0x74] ss:$8 sps:$4 sm:$0xff]  }
 0xc33   :  { %v6392_v12 = vmax.f32 %v6386_v2, 0.0  ;;  %v6937_v36 = vor.u32 %v6936_v59, %v6935_v44  ;;  %v11421_v2 = vld [vmem:[#allocation24 + $0x70] ss:$8 sps:$4 sm:$0xff]   ;;  %v11426_v44 = vld [vmem:[#allocation24 + $0x104] ss:$8 sps:$4 sm:$0xff]  }
 0xc34   :  { %v6363_v7 = vpop.f32.mrb[200].mxu1  ;;  %v6437_v35 = vor.u32 %v6436_v19, %v6432_v63  ;;  %v11418_v63 = vld [vmem:[#allocation24 + $0x60] ss:$8 sps:$4 sm:$0xff]   ;;  %v11438_v19 = vld [vmem:[#allocation24 + $0x144] ss:$8 sps:$4 sm:$0xff]  }
 0xc35   :  { %v14047_v54 = vpack.c.bf16 %v6392_v12, %v6391_v10  ;;  %v6374_v8 = vadd.f32 %v6363_v7, %v6238_v25  ;;  %v10920_v39 = vpop.f32.mrb[201].mxu1  ;;  %v11424_v59 = vld [vmem:[#allocation24 + $0x100] ss:$8 sps:$4 sm:$0xff]   ;;  %v11429_v10 = vld [vmem:[#allocation24 + $0x114] ss:$8 sps:$4 sm:$0xff]  }
 0xc36   :  { %v6366_v58 = vpop.f32.mrb[202].mxu1  ;;  %v11427_v12 = vld [vmem:[#allocation24 + $0x110] ss:$8 sps:$4 sm:$0xff]   ;;  %v11432_v7 = vld [vmem:[#allocation24 + $0x124] ss:$8 sps:$4 sm:$0xff]  }
 0xc37   :  { %v6387_v45 = vadd.f32 %v9289_v21, %v6374_v8  ;;  %v6375_v22 = vadd.f32 %v6366_v58, %v6239_v53  ;;  %v10921_v50 = vpop.f32.mrb[203].mxu1  ;;  %v6439_v15 = vshll.u32 %v14047_v54, 16  ;;  %v6443_v51 = vshrl.u32 %v14047_v54, 16  ;;  %v11435_v8 = vld [vmem:[#allocation24 + $0x134] ss:$8 sps:$4 sm:$0xff]  }
 0xc38   :  { %v6760_v0 = vrot.slane %v14047_v54, 1  ;;  %v7118_v17 = vrot.slane %v14047_v54, 2  ;;  %v11433_v39 = vld [vmem:[#allocation24 + $0x130] ss:$8 sps:$4 sm:$0xff]   ;;  %v11441_v58 = vld [vmem:[#allocation24 + $0x154] ss:$8 sps:$4 sm:$0xff]  }
 0xc39   :  { %v6388_v13 = vadd.f32 %v9289_v21, %v6375_v22  ;;  %v6441_v6 = vrot.slane %v6439_v15, 1  ;;  %v6938_v61 = vrot.slane %v6443_v51, 1  ;;  %v6939_v62 = vrot.slane %v6439_v15, 2  ;;  %v11406_v21 = vld [vmem:[#allocation24 + $0x20] ss:$8 sps:$4 sm:$0xff]  }
 0xc3a   :  { %v14056_v47 = vsel %vm645_vm3, %v6759_v24, %v6760_v0  ;;  %v14059_v46 = vsel %vm999_vm5, %v7117_v16, %v7118_v17  ;;  %v6393_v38 = vmax.f32 %v6387_v45, 0.0  ;;  %v11439_v45 = vld [vmem:[#allocation24 + $0x150] ss:$8 sps:$4 sm:$0xff]   ;;  %v11444_v22 = vld [vmem:[#allocation24 + $0x164] ss:$8 sps:$4 sm:$0xff]  }
 0xc3b   :  { %v6394_v34 = vmax.f32 %v6388_v13, 0.0  ;;  %v6442_v20 = vsel %vm309_vm1, %v6437_v35, %v6441_v6  ;;  %v6940_v33 = vor.u32 %v6939_v62, %v6938_v61  ;;  %v6445_v56 = vor.u32 %v6443_v51, %v6441_v6  ;;  %v11447_v50 = vld [vmem:[#allocation24 + $0x174] ss:$8 sps:$4 sm:$0xff]   ;;  %v11445_v15 = vld [vmem:[#allocation24 + $0x170] ss:$8 sps:$4 sm:$0xff]  }
 0xc3c   :  { %6570 = vmatmul.mubr.bf16.vlgmr.msra.gmra.mrb[176].mxu0 %v6442_v20  ;;  %v11450_v51 = vld [vmem:[#allocation24 + $0x184] ss:$8 sps:$4 sm:$0xff]   ;;  %v11448_v24 = vld [vmem:[#allocation24 + $0x180] ss:$8 sps:$4 sm:$0xff]   ;;  %v11451_v16 = vld [vmem:[#allocation24 + $0x190] ss:$8 sps:$4 sm:$0xff]  }
 0xc3d   :  { %v14062_v3 = vpack.c.bf16 %v6394_v34, %v6393_v38  ;;  %6679 = vmatpush1.bf16.msra.mxu0 %v11400_v4  ;;  %6579 = vmatprep.mubr.bf16.mxu0 %v12146_v14  ;;  %v14066_v48 = vsel %vm814_vm4, %v6937_v36, %v6940_v33  ;;  %v11430_v36 = vld [vmem:[#allocation24 + $0x120] ss:$8 sps:$4 sm:$0xff]   ;;  %v11459_v4 = vld [vmem:[#allocation24 + $0x1b4] ss:$8 sps:$4 sm:$0xff]   ;;  %v11457_v35 = vld [vmem:[#allocation24 + $0x1b0] ss:$8 sps:$4 sm:$0xff]  }
 0xc3e   :  { %6680 = vmatprep.subr.bf16.mxu0 %v11405_v32  ;;  %v11454_v13 = vld [vmem:[#allocation24 + $0x1a0] ss:$8 sps:$4 sm:$0xff]   ;;  %v11462_v6 = vld [vmem:[#allocation24 + $0x1c4] ss:$8 sps:$4 sm:$0xff]   ;;  %v11465_v32 = vld [vmem:[#allocation24 + $0x1d4] ss:$8 sps:$4 sm:$0xff]  }
 0xc3f   :  { %v6447_v5 = vshll.u32 %v14062_v3, 16  ;;  %v6451_v26 = vshrl.u32 %v14062_v3, 16  ;;  %v6762_v25 = vrot.slane %v14062_v3, 1  ;;  %v7120_v53 = vrot.slane %v14062_v3, 2  ;;  %v11460_v61 = vld [vmem:[#allocation24 + $0x1c0] ss:$8 sps:$4 sm:$0xff]  }
 0xc40   :  { %v11468_v62 = vld [vmem:[#allocation24 + $0x1e4] ss:$8 sps:$4 sm:$0xff]   ;;  %v11466_v38 = vld [vmem:[#allocation24 + $0x1e0] ss:$8 sps:$4 sm:$0xff]   ;;  %v11471_v34 = vld [vmem:[#allocation24 + $0x1f4] ss:$8 sps:$4 sm:$0xff]  }
 0xc41   :  { %6681 = vmatpush1.bf16.msra.mxu0 %v11403_v43  ;;  %v6449_v27 = vrot.slane %v6447_v5, 1  ;;  %v6942_v29 = vrot.slane %v6451_v26, 1  ;;  %v14075_v60 = vsel %vm645_vm3, %v6760_v0, %v6762_v25  ;;  %v6943_v1 = vrot.slane %v6447_v5, 2  ;;  %v11453_v0 = vld [vmem:[#allocation24 + $0x194] ss:$8 sps:$4 sm:$0xff]  }
 0xc42   :  { %6682 = vmatprep.subr.bf16.mxu0 %v11408_v28  ;;  %v14080_v42 = vsel %vm999_vm5, %v7118_v17, %v7120_v53  ;;  %v11456_v17 = vld [vmem:[#allocation24 + $0x1a4] ss:$8 sps:$4 sm:$0xff]   ;;  %v11469_v20 = vld [vmem:[#allocation24 + $0x1f0] ss:$8 sps:$4 sm:$0xff]   ;;  %v11472_v43 = vld [vmem:[#allocation24 + $0x200] ss:$8 sps:$4 sm:$0xff]  }
 0xc43   :  { %v6450_v31 = vsel %vm309_vm1, %v6445_v56, %v6449_v27  ;;  %v14083_v55 = vor.u32 %v6943_v1, %v6942_v29  ;;  %v6453_v40 = vor.u32 %v6451_v26, %v6449_v27  ;;  %v11477_v28 = vld [vmem:[#allocation24 + $0x214] ss:$8 sps:$4 sm:$0xff]   ;;  %v11475_v5 = vld [vmem:[#allocation24 + $0x210] ss:$8 sps:$4 sm:$0xff]   ;;  %v11480_v26 = vld [vmem:[#allocation24 + $0x224] ss:$8 sps:$4 sm:$0xff]  }
 0xc44   :  { %6580 = vmatmul.mubr.bf16.gmra.mrb[180].mxu0 %v6450_v31  ;;  %v11483_v56 = vld [vmem:[#allocation24 + $0x234] ss:$8 sps:$4 sm:$0xff]   ;;  %v11486_v27 = vld [vmem:[#allocation24 + $0x244] ss:$8 sps:$4 sm:$0xff]  }
 0xc45   :  { %6683 = vmatpush1.bf16.msra.mxu0 %v11406_v21  ;;  %6589 = vmatprep.mubr.bf16.mxu0 %v12146_v14  ;;  %v14088_v57 = vsel %vm814_vm4, %v6940_v33, %v14083_v55  ;;  %v11474_v33 = vld [vmem:[#allocation24 + $0x204] ss:$8 sps:$4 sm:$0xff]   ;;  %v11481_v21 = vld [vmem:[#allocation24 + $0x230] ss:$8 sps:$4 sm:$0xff]   ;;  %v11489_v29 = vld [vmem:[#allocation24 + $0x254] ss:$8 sps:$4 sm:$0xff]  }
 0xc46   :  { %6684 = vmatprep.subr.bf16.mxu0 %v11411_v52  ;;  %v11492_v1 = vld [vmem:[#allocation24 + $0x264] ss:$8 sps:$4 sm:$0xff]   ;;  %v11490_v52 = vld [vmem:[#allocation24 + $0x260] ss:$8 sps:$4 sm:$0xff]   ;;  %v11495_v31 = vld [vmem:[#allocation24 + $0x274] ss:$8 sps:$4 sm:$0xff]  }
 0xc49   :  { %6685 = vmatpush1.bf16.msra.mxu0 %v11409_v37  ;;  %v11493_v37 = vld [vmem:[#allocation24 + $0x270] ss:$8 sps:$4 sm:$0xff]  }
 0xc4a   :  { %6686 = vmatprep.subr.bf16.mxu0 %v11414_v30 }
 0xc4c   :  { %6590 = vmatmul.mubr.bf16.gmra.mrb[184].mxu0 %v6453_v40  ;;  %v11507_v40 = vld [vmem:[#allocation25 + $0x100] ss:$8 sps:$4 sm:$0xff]  }
 0xc4d   :  { %6687 = vmatpush1.bf16.msra.mxu0 %v11412_v11  ;;  %6710 = vmatprep.mubr.bf16.mxu0 %v12146_v14 }
 0xc4e   :  { %6688 = vmatprep.subr.bf16.mxu0 %v11417_v41  ;;  %v11509_v41 = vld [vmem:[#allocation25 + $0x104] ss:$8 sps:$4 sm:$0xff]  }
 0xc51   :  { %6689 = vmatpush1.bf16.msra.mxu0 %v11415_v23  ;;  %v11513_v23 = vld [vmem:[#allocation25 + $0x110] ss:$8 sps:$4 sm:$0xff]  }
 0xc52   :  { %6690 = vmatprep.subr.bf16.mxu0 %v11420_v18  ;;  %v11515_v18 = vld [vmem:[#allocation25 + $0x114] ss:$8 sps:$4 sm:$0xff]  }
 0xc55   :  { %6691 = vmatpush1.bf16.msra.mxu0 %v11418_v63  ;;  %v11521_v63 = vld [vmem:[#allocation25 + $0x124] ss:$8 sps:$4 sm:$0xff]  }
 0xc56   :  { %6692 = vmatprep.subr.bf16.mxu0 %v11423_v9 }
 0xc59   :  { %6693 = vmatpush1.bf16.msra.mxu0 %v11421_v2 }
 0xc5a   :  { %6847 = vmatprep.subr.bf16.mxu0 %v11426_v44 }
 0xc5c   :  { %6711 = vmatmul.mubr.bf16.vlgmr.msra.gmra.mrb[176].mxu0 %v14043_v49  ;;  %v11436_v49 = vld [vmem:[#allocation24 + $0x140] ss:$8 sps:$4 sm:$0xff]  }
 0xc5d   :  { %6848 = vmatpush1.bf16.msra.mxu0 %v11424_v59  ;;  %6720 = vmatprep.mubr.bf16.mxu0 %v12146_v14  ;;  %v11525_v59 = vld [vmem:[#allocation25 + $0x130] ss:$8 sps:$4 sm:$0xff]  }
 0xc5e   :  { %6849 = vmatprep.subr.bf16.mxu0 %v11429_v10  ;;  %v11527_v10 = vld [vmem:[#allocation25 + $0x134] ss:$8 sps:$4 sm:$0xff]  }
 0xc61   :  { %6850 = vmatpush1.bf16.msra.mxu0 %v11427_v12  ;;  %v11531_v12 = vld [vmem:[#allocation25 + $0x140] ss:$8 sps:$4 sm:$0xff]  }
 0xc62   :  { %6851 = vmatprep.subr.bf16.mxu0 %v11432_v7  ;;  %v11533_v7 = vld [vmem:[#allocation25 + $0x144] ss:$8 sps:$4 sm:$0xff]  }
 0xc64   :  { %6721 = vmatmul.mubr.bf16.gmra.mrb[180].mxu0 %v14047_v54  ;;  %v11442_v54 = vld [vmem:[#allocation24 + $0x160] ss:$8 sps:$4 sm:$0xff]  }
 0xc65   :  { %6852 = vmatpush1.bf16.msra.mxu0 %v11430_v36  ;;  %6730 = vmatprep.mubr.bf16.mxu0 %v12146_v14  ;;  %v11537_v36 = vld [vmem:[#allocation25 + $0x150] ss:$8 sps:$4 sm:$0xff]  }
 0xc66   :  { %6853 = vmatprep.subr.bf16.mxu0 %v11435_v8  ;;  %v11539_v8 = vld [vmem:[#allocation25 + $0x154] ss:$8 sps:$4 sm:$0xff]  }
 0xc69   :  { %6854 = vmatpush1.bf16.msra.mxu0 %v11433_v39  ;;  %v11543_v39 = vld [vmem:[#allocation25 + $0x160] ss:$8 sps:$4 sm:$0xff]  }
 0xc6a   :  { %6855 = vmatprep.subr.bf16.mxu0 %v11438_v19  ;;  %v11545_v19 = vld [vmem:[#allocation25 + $0x164] ss:$8 sps:$4 sm:$0xff]  }
 0xc6c   :  { %6731 = vmatmul.mubr.bf16.gmra.mrb[188].mxu0 %v14062_v3 }
 0xc6d   :  { %6856 = vmatpush1.bf16.msra.mxu0 %v11436_v49  ;;  %6879 = vmatprep.mubr.bf16.mxu0 %v12146_v14  ;;  %v11549_v49 = vld [vmem:[#allocation25 + $0x170] ss:$8 sps:$4 sm:$0xff]  }
 0xc6e   :  { %6857 = vmatprep.subr.bf16.mxu0 %v11441_v58  ;;  %v11551_v58 = vld [vmem:[#allocation25 + $0x174] ss:$8 sps:$4 sm:$0xff]  }
 0xc71   :  { %6858 = vmatpush1.bf16.msra.mxu0 %v11439_v45  ;;  %v11555_v45 = vld [vmem:[#allocation25 + $0x180] ss:$8 sps:$4 sm:$0xff]  }
 0xc72   :  { %6859 = vmatprep.subr.bf16.mxu0 %v11444_v22  ;;  %v11557_v22 = vld [vmem:[#allocation25 + $0x184] ss:$8 sps:$4 sm:$0xff]  }
 0xc75   :  { %6860 = vmatpush1.bf16.msra.mxu0 %v11442_v54  ;;  %v11561_v54 = vld [vmem:[#allocation25 + $0x190] ss:$8 sps:$4 sm:$0xff]  }
 0xc76   :  { %6861 = vmatprep.subr.bf16.mxu0 %v11447_v50  ;;  %v11563_v50 = vld [vmem:[#allocation25 + $0x194] ss:$8 sps:$4 sm:$0xff]  }
 0xc79   :  { %6862 = vmatpush1.bf16.msra.mxu0 %v11445_v15  ;;  %v11567_v15 = vld [vmem:[#allocation25 + $0x1a0] ss:$8 sps:$4 sm:$0xff]  }
 0xc7a   :  { %7029 = vmatprep.subr.bf16.mxu0 %v11450_v51  ;;  %v11569_v51 = vld [vmem:[#allocation25 + $0x1a4] ss:$8 sps:$4 sm:$0xff]  }
 0xc7c   :  { %6880 = vmatmul.mubr.bf16.vlgmr.msra.gmra.mrb[176].mxu0 %v14056_v47  ;;  %v11463_v47 = vld [vmem:[#allocation24 + $0x1d0] ss:$8 sps:$4 sm:$0xff]  }
 0xc7d   :  { %7030 = vmatpush1.bf16.msra.mxu0 %v11448_v24  ;;  %6889 = vmatprep.mubr.bf16.mxu0 %v12146_v14 }
 0xc7e   :  { %7031 = vmatprep.subr.bf16.mxu0 %v11453_v0 }
 0xc81   :  { %7032 = vmatpush1.bf16.msra.mxu0 %v11451_v16 }
 0xc82   :  { %7033 = vmatprep.subr.bf16.mxu0 %v11456_v17 }
 0xc84   :  { %6890 = vmatmul.mubr.bf16.gmra.mrb[180].mxu0 %v14075_v60  ;;  %v11487_v60 = vld [vmem:[#allocation24 + $0x250] ss:$8 sps:$4 sm:$0xff]  }
 0xc85   :  { %7034 = vmatpush1.bf16.msra.mxu0 %v11454_v13  ;;  %6899 = vmatprep.mubr.bf16.mxu0 %v12146_v14 }
 0xc86   :  { %7035 = vmatprep.subr.bf16.mxu0 %v11459_v4 }
 0xc89   :  { %7036 = vmatpush1.bf16.msra.mxu0 %v11457_v35  ;;  %v11573_v35 = vld [vmem:[#allocation25 + $0x1b0] ss:$8 sps:$4 sm:$0xff]  }
 0xc8a   :  { %7037 = vmatprep.subr.bf16.mxu0 %v11462_v6  ;;  %v11575_v6 = vld [vmem:[#allocation25 + $0x1b4] ss:$8 sps:$4 sm:$0xff]  }
 0xc8c   :  { %6900 = vmatmul.mubr.bf16.gmra.mrb[192].mxu0 %v6762_v25  ;;  %v11478_v25 = vld [vmem:[#allocation24 + $0x220] ss:$8 sps:$4 sm:$0xff]  }
 0xc8d   :  { %7038 = vmatpush1.bf16.msra.mxu0 %v11460_v61  ;;  %7061 = vmatprep.mubr.bf16.mxu0 %v12146_v14 }
 0xc8e   :  { %7039 = vmatprep.subr.bf16.mxu0 %v11465_v32 }
 0xc91   :  { %7040 = vmatpush1.bf16.msra.mxu0 %v11463_v47 }
 0xc92   :  { %7041 = vmatprep.subr.bf16.mxu0 %v11468_v62  ;;  %v7278_v62 = vlaneseq }
 0xc95   :  { %7042 = vmatpush1.bf16.msra.mxu0 %v11466_v38 }
 0xc96   :  { %7043 = vmatprep.subr.bf16.mxu0 %v11471_v34 }
 0xc99   :  { %7044 = vmatpush1.bf16.msra.mxu0 %v11469_v20 }
 0xc9a   :  { %7205 = vmatprep.subr.bf16.mxu0 %v11474_v33  ;;  %v14116_v33 = vshrl.u32 %v7278_v62, 7  ;;  %v11522_v62 = vld [vmem:[#allocation25 + $0x50] ss:$8 sps:$4 sm:$0xff]  }
 0xc9c   :  { %7062 = vmatmul.mubr.bf16.vlgmr.msra.gmra.mrb[176].mxu0 %v14066_v48  ;;  %v11484_v48 = vld [vmem:[#allocation24 + $0x240] ss:$8 sps:$4 sm:$0xff]  }
 0xc9d   :  { %7206 = vmatpush1.bf16.msra.mxu0 %v11472_v43  ;;  %7071 = vmatprep.mubr.bf16.mxu0 %v12146_v14  ;;  %v7280_v43 = vsub.s32 0, %v14116_v33 }
 0xc9e   :  { %7207 = vmatprep.subr.bf16.mxu0 %v11477_v28  ;;  %v7276_v28 = vld [vmem:[%s14237_s17] sm:$0x3] }
 0xca1   :  { %7208 = vmatpush1.bf16.msra.mxu0 %v11475_v5  ;;  %v7284_v5 = vsub.s32 1, %v14116_v33 }
 0xca2   :  { %7209 = vmatprep.subr.bf16.mxu0 %v11480_v26  ;;  %v7281_v26 = vrot.slane %v7276_v28, %v7280_v43 }
 0xca4   :  { %7072 = vmatmul.mubr.bf16.gmra.mrb[180].mxu0 %v14088_v57 }
 0xca5   :  { %7210 = vmatpush1.bf16.msra.mxu0 %v11478_v25  ;;  %7081 = vmatprep.mubr.bf16.mxu0 %v12146_v14  ;;  %v7285_v25 = vrot.slane %v7276_v28, %v7284_v5  ;;  %v11534_v28 = vld [vmem:[#allocation25 + $0x70] ss:$8 sps:$4 sm:$0xff]  }
 0xca6   :  { %7211 = vmatprep.subr.bf16.mxu0 %v11483_v56 }
 0xca9   :  { %7212 = vmatpush1.bf16.msra.mxu0 %v11481_v21 }
 0xcaa   :  { %7213 = vmatprep.subr.bf16.mxu0 %v11486_v27 }
 0xcac   :  { %7082 = vmatmul.mubr.bf16.gmra.mrb[196].mxu0 %v14083_v55 }
 0xcad   :  { %7214 = vmatpush1.bf16.msra.mxu0 %v11484_v48  ;;  %7237 = vmatprep.mubr.bf16.mxu0 %v12146_v14 }
 0xcae   :  { %7215 = vmatprep.subr.bf16.mxu0 %v11489_v29 }
 0xcb1   :  { %7216 = vmatpush1.bf16.msra.mxu0 %v11487_v60 }
 0xcb2   :  { %7217 = vmatprep.subr.bf16.mxu0 %v11492_v1 }
 0xcb5   :  { %7218 = vmatpush1.bf16.msra.mxu0 %v11490_v52 }
 0xcb6   :  { %7219 = vmatprep.subr.bf16.mxu0 %v11495_v31 }
 0xcb9   :  { %7220 = vmatpush1.bf16.msra.mxu0 %v11493_v37 }
 0xcba   :  { %7644 = vmatprep.subr.bf16.mxu0 %v11509_v41 }
 0xcbc   :  { %7238 = vmatmul.mubr.bf16.vlgmr.msra.gmra.mrb[176].mxu0 %v14059_v46  ;;  %v11519_v46 = vld [vmem:[#allocation25 + $0x120] ss:$8 sps:$4 sm:$0xff]  }
 0xcbd   :  { %7247 = vmatprep.mubr.bf16.mxu0 %v12146_v14  ;;  %7645 = vmatpush1.bf16.msra.mxu0 %v11507_v40 }
 0xcbe   :  { %7646 = vmatprep.subr.bf16.mxu0 %v11515_v18 }
 0xcc1   :  { %7647 = vmatpush1.bf16.msra.mxu0 %v11513_v23 }
 0xcc2   :  { %7648 = vmatprep.subr.bf16.mxu0 %v11521_v63 }
 0xcc4   :  { %7248 = vmatmul.mubr.bf16.gmra.mrb[180].mxu0 %v14080_v42 }
 0xcc5   :  { %7257 = vmatprep.mubr.bf16.mxu0 %v12146_v14  ;;  %7649 = vmatpush1.bf16.msra.mxu0 %v11519_v46 }
 0xcc6   :  { %7650 = vmatprep.subr.bf16.mxu0 %v11527_v10 }
 0xcc9   :  { %7651 = vmatpush1.bf16.msra.mxu0 %v11525_v59 }
 0xcca   :  { %7652 = vmatprep.subr.bf16.mxu0 %v11533_v7 }
 0xccc   :  { %7258 = vmatmul.mubr.bf16.gmra.mrb[200].mxu0 %v7120_v53 }
 0xccd   :  { %7653 = vmatpush1.bf16.msra.mxu0 %v11531_v12 }
 0xcce   :  { %7654 = vmatprep.subr.bf16.mxu0 %v11539_v8 }
 0xcd1   :  { %7655 = vmatpush1.bf16.msra.mxu0 %v11537_v36 }
 0xcd2   :  { %7656 = vmatprep.subr.bf16.mxu0 %v11545_v19 }
 0xcd5   :  { %7657 = vmatpush1.bf16.msra.mxu0 %v11543_v39 }
 0xcd6   :  { %7658 = vmatprep.subr.bf16.mxu0 %v11551_v58 }
 0xcd9   :  { %7659 = vmatpush1.bf16.msra.mxu0 %v11549_v49 }
 0xcda   :  { %7660 = vmatprep.subr.bf16.mxu0 %v11557_v22 }
 0xcdd   :  { %7661 = vmatpush1.bf16.msra.mxu0 %v11555_v45 }
 0xcde   :  { %7662 = vmatprep.subr.bf16.mxu0 %v11563_v50 }
 0xce1   :  { %7663 = vmatpush1.bf16.msra.mxu0 %v11561_v54 }
 0xce2   :  { %7664 = vmatprep.subr.bf16.mxu0 %v11569_v51 }
 0xce5   :  { %7665 = vmatpush1.bf16.msra.mxu0 %v11567_v15  ;;  %v11500_v15 = vld [vmem:[#allocation25 + $0x4] ss:$8 sps:$4 sm:$0xff]  }
 0xce6   :  { %7666 = vmatprep.subr.bf16.mxu0 %v11575_v6  ;;  %v11512_v6 = vld [vmem:[#allocation25 + $0x34] ss:$8 sps:$4 sm:$0xff]  }
 0xce9   :  { %7667 = vmatpush1.bf16.msra.mxu0 %v11573_v35  ;;  %v11504_v35 = vld [vmem:[#allocation25 + $0x20] ss:$8 sps:$4 sm:$0xff]  }
 0xd1f   :  { %v6591_v55 = vpop.f32.mrb[184].mxu0 }
 0xd20   :  { %v6593_v57 = vpop.f32.mrb[185].mxu0 }
 0xd21   :  { %v6595_v30 = vpop.f32.mrb[186].mxu0 }
 0xd22   :  { %v6596_v11 = vpop.f32.mrb[187].mxu0 }
 0xd3f   :  { %v6732_v42 = vpop.f32.mrb[188].mxu0 }
 0xd40   :  { %v6733_v9 = vadd.f32 %v6732_v42, %v6591_v55  ;;  %v6734_v2 = vpop.f32.mrb[189].mxu0 }
 0xd41   :  { %v6735_v3 = vadd.f32 %v6734_v2, %v6593_v57  ;;  %v6736_v53 = vpop.f32.mrb[190].mxu0 }
 0xd42   :  { %v6737_v44 = vpop.f32.mrb[191].mxu0 }
 0xd5f   :  { %v6901_v24 = vpop.f32.mrb[192].mxu0 }
 0xd60   :  { %v6916_v0 = vadd.f32 %v6901_v24, %v6733_v9  ;;  %v6903_v16 = vpop.f32.mrb[193].mxu0  ;;  %v11496_v24 = vld [vmem:[%s14238_s18] sm:$0xff]  }
 0xd61   :  { %v6917_v17 = vadd.f32 %v6903_v16, %v6735_v3  ;;  %v6905_v13 = vpop.f32.mrb[194].mxu0  ;;  %v11503_v16 = vld [vmem:[#allocation25 + $0x14] ss:$8 sps:$4 sm:$0xff]  }
 0xd62   :  { %v6906_v4 = vpop.f32.mrb[195].mxu0  ;;  %v11506_v13 = vld [vmem:[#allocation25 + $0x24] ss:$8 sps:$4 sm:$0xff]  }
 0xd63   :  { %v11497_v4 = vld [vmem:[%s14238_s18 + $0x8] ss:$0 sps:$4 sm:$0x33]  }
 0xd7f   :  { %v7083_v61 = vpop.f32.mrb[196].mxu0 }
 0xd80   :  { %v7098_v32 = vadd.f32 %v7083_v61, %v6916_v0  ;;  %v7085_v47 = vpop.f32.mrb[197].mxu0  ;;  %v11498_v0 = vld [vmem:[#allocation25] ss:$8 sps:$4 sm:$0xff]   ;;  %v11510_v61 = vld [vmem:[#allocation25 + $0x30] ss:$8 sps:$4 sm:$0xff]  }
 0xd81   :  { %v7099_v38 = vadd.f32 %v7085_v47, %v6917_v17  ;;  %v7087_v34 = vpop.f32.mrb[198].mxu0  ;;  %v11501_v17 = vld [vmem:[#allocation25 + $0x10] ss:$8 sps:$4 sm:$0xff]   ;;  %v11516_v47 = vld [vmem:[#allocation25 + $0x40] ss:$8 sps:$4 sm:$0xff]  }
 0xd82   :  { %v7088_v20 = vpop.f32.mrb[199].mxu0  ;;  %v11528_v34 = vld [vmem:[#allocation25 + $0x60] ss:$8 sps:$4 sm:$0xff]  }
 0xd83   :  { %v11536_v20 = vld [vmem:[#allocation25 + $0x74] ss:$8 sps:$4 sm:$0xff]  }
 0xd8f   :  { %v7239_v56 = vpop.f32.mrb[176].mxu0 }
 0xd90   :  { %v7288_v21 = vadd.f32 %v7281_v26, %v7239_v56  ;;  %v7241_v27 = vpop.f32.mrb[177].mxu0  ;;  %v11548_v56 = vld [vmem:[#allocation25 + $0x94] ss:$8 sps:$4 sm:$0xff]  }
 0xd91   :  { %v7289_v48 = vadd.f32 %v7285_v25, %v7241_v27  ;;  %v7243_v29 = vpop.f32.mrb[178].mxu0  ;;  %v11554_v27 = vld [vmem:[#allocation25 + $0xa4] ss:$8 sps:$4 sm:$0xff]  }
 0xd92   :  { %v7290_v60 = vadd.f32 %v7281_v26, %v7243_v29  ;;  %v7245_v1 = vpop.f32.mrb[179].mxu0  ;;  %v7298_v31 = vmax.f32 %v7288_v21, 0.0  ;;  %v11546_v21 = vld [vmem:[#allocation25 + $0x90] ss:$8 sps:$4 sm:$0xff]   ;;  %v11560_v29 = vld [vmem:[#allocation25 + $0xb4] ss:$8 sps:$4 sm:$0xff]  }
 0xd93   :  { %v7291_v52 = vadd.f32 %v7285_v25, %v7245_v1  ;;  %v7299_v55 = vmax.f32 %v7289_v48, 0.0  ;;  %v11552_v48 = vld [vmem:[#allocation25 + $0xa0] ss:$8 sps:$4 sm:$0xff]   ;;  %v11566_v1 = vld [vmem:[#allocation25 + $0xc4] ss:$8 sps:$4 sm:$0xff]  }
 0xd94   :  { %v7300_v37 = vmax.f32 %v7290_v60, 0.0  ;;  %v11558_v60 = vld [vmem:[#allocation25 + $0xb0] ss:$8 sps:$4 sm:$0xff]  }
 0xd95   :  { %v7301_v57 = vmax.f32 %v7291_v52, 0.0  ;;  %v11564_v52 = vld [vmem:[#allocation25 + $0xc0] ss:$8 sps:$4 sm:$0xff]  }
 0xd96   :  { %v7308_v30 = vpack.c.bf16 %v7300_v37, %v7298_v31  ;;  %v11572_v31 = vld [vmem:[#allocation25 + $0xd4] ss:$8 sps:$4 sm:$0xff]   ;;  %v11570_v37 = vld [vmem:[#allocation25 + $0xd0] ss:$8 sps:$4 sm:$0xff]  }
 0xd97   :  { %v7309_v11 = vpack.c.bf16 %v7301_v57, %v7299_v55  ;;  %v7249_v40 = vpop.f32.mrb[180].mxu0  ;;  %v11578_v55 = vld [vmem:[#allocation25 + $0xe4] ss:$8 sps:$4 sm:$0xff]   ;;  %v11576_v57 = vld [vmem:[#allocation25 + $0xe0] ss:$8 sps:$4 sm:$0xff]  }
 0xd98   :  { %v7292_v41 = vadd.f32 %v7281_v26, %v7249_v40  ;;  %v7251_v23 = vpop.f32.mrb[181].mxu0  ;;  %v11582_v40 = vld [vmem:[#allocation25 + $0xf0] ss:$8 sps:$4 sm:$0xff]  }
 0xd99   :  { %v7293_v18 = vadd.f32 %v7285_v25, %v7251_v23  ;;  %v7253_v46 = vpop.f32.mrb[182].mxu0  ;;  %7338 = vmatprep.subr.bf16.mxu1 %v7309_v11  ;;  %v11581_v11 = vld [vmem:[#allocation25 + $0x1c4] ss:$8 sps:$4 sm:$0xff]   ;;  %v11587_v23 = vld [vmem:[#allocation25 + $0x1d4] ss:$8 sps:$4 sm:$0xff]  }
 0xd9a   :  { %v7294_v63 = vadd.f32 %v7281_v26, %v7253_v46  ;;  %v7255_v42 = vpop.f32.mrb[183].mxu0  ;;  %7339 = vmatpush1.bf16.msra.mxu1 %v7308_v30  ;;  %v7302_v2 = vmax.f32 %v7292_v41, 0.0  ;;  %v11579_v30 = vld [vmem:[#allocation25 + $0x1c0] ss:$8 sps:$4 sm:$0xff]   ;;  %v11584_v41 = vld [vmem:[#allocation25 + $0xf4] ss:$8 sps:$4 sm:$0xff]   ;;  %7668 = vmatprep.subr.bf16.mxu0 %v11581_v11 }
 0xd9b   :  { %v7295_v9 = vadd.f32 %v7285_v25, %v7255_v42  ;;  %v7303_v53 = vmax.f32 %v7293_v18, 0.0  ;;  %v11590_v18 = vld [vmem:[#allocation25 + $0x204] ss:$8 sps:$4 sm:$0xff]   ;;  %7669 = vmatpush1.bf16.msra.mxu0 %v11579_v30  ;;  %v11585_v46 = vld [vmem:[#allocation25 + $0x1d0] ss:$8 sps:$4 sm:$0xff]  }
 0xd9c   :  { %v7304_v3 = vmax.f32 %v7294_v63, 0.0  ;;  %7670 = vmatprep.subr.bf16.mxu0 %v11587_v23  ;;  %v11591_v63 = vld [vmem:[#allocation25 + $0x1e0] ss:$8 sps:$4 sm:$0xff]   ;;  %v11593_v42 = vld [vmem:[#allocation25 + $0x1e4] ss:$8 sps:$4 sm:$0xff]  }
 0xd9d   :  { %v7305_v44 = vmax.f32 %v7295_v9, 0.0  ;;  %v11599_v9 = vld [vmem:[#allocation25 + $0x1f4] ss:$8 sps:$4 sm:$0xff]  }
 0xd9e   :  { %v7310_v59 = vpack.c.bf16 %v7304_v3, %v7302_v2  ;;  %v11597_v2 = vld [vmem:[#allocation25 + $0x1f0] ss:$8 sps:$4 sm:$0xff]  }
 0xd9f   :  { %v7311_v10 = vpack.c.bf16 %v7305_v44, %v7303_v53  ;;  %v7259_v12 = vpop.f32.mrb[200].mxu0  ;;  %7671 = vmatpush1.bf16.msra.mxu0 %v11585_v46  ;;  %v11603_v46 = vld [vmem:[#allocation25 + $0x230] ss:$8 sps:$4 sm:$0xff]  }
 0xda0   :  { %v7274_v7 = vadd.f32 %v7259_v12, %v7098_v32  ;;  %v7261_v36 = vpop.f32.mrb[201].mxu0  ;;  %v11518_v32 = vld [vmem:[#allocation25 + $0x44] ss:$8 sps:$4 sm:$0xff]   ;;  %7672 = vmatprep.subr.bf16.mxu0 %v11593_v42 }
 0xda1   :  { %v7275_v8 = vadd.f32 %v7261_v36, %v7099_v38  ;;  %v7263_v39 = vpop.f32.mrb[202].mxu0  ;;  %7340 = vmatprep.subr.bf16.mxu1 %v7311_v10  ;;  %v11530_v38 = vld [vmem:[#allocation25 + $0x64] ss:$8 sps:$4 sm:$0xff]  }
 0xda2   :  { %v7296_v19 = vadd.f32 %v7281_v26, %v7274_v7  ;;  %v7264_v49 = vpop.f32.mrb[203].mxu0  ;;  %7341 = vmatpush1.bf16.msra.mxu1 %v7310_v59  ;;  %v11542_v26 = vld [vmem:[#allocation25 + $0x84] ss:$8 sps:$4 sm:$0xff]   ;;  %v11588_v7 = vld [vmem:[#allocation25 + $0x200] ss:$8 sps:$4 sm:$0xff]  }
 0xda3   :  { %v7297_v58 = vadd.f32 %v7285_v25, %v7275_v8  ;;  %v11540_v25 = vld [vmem:[#allocation25 + $0x80] ss:$8 sps:$4 sm:$0xff]   ;;  %7673 = vmatpush1.bf16.msra.mxu0 %v11591_v63  ;;  %v11596_v8 = vld [vmem:[#allocation25 + $0x214] ss:$8 sps:$4 sm:$0xff]  }
 0xda4   :  { %v7306_v45 = vmax.f32 %v7296_v19, 0.0  ;;  %7674 = vmatprep.subr.bf16.mxu0 %v11599_v9  ;;  %v11608_v9 = vld [vmem:[#allocation25 + $0x244] ss:$8 sps:$4 sm:$0xff]  }
 0xda5   :  { %v7307_v22 = vmax.f32 %v7297_v58, 0.0  ;;  %v11594_v58 = vld [vmem:[#allocation25 + $0x210] ss:$8 sps:$4 sm:$0xff]  }
 0xda6   :  { %v7312_v54 = vpack.c.bf16 %v7306_v45, %v7306_v45 }
 0xda7   :  { %v7313_v50 = vpack.c.bf16 %v7307_v22, %v7307_v22  ;;  %7675 = vmatpush1.bf16.msra.mxu0 %v11597_v2 }
 0xda8   :  { %v7333_v51 = vsel %vm407_vm0, %v7312_v54, 0 }
 0xda9   :  { %9372 = vmatprep.subr.msk.bf16.mxu1 %vm407_vm0, %v7313_v50 }
 0xdaa   :  { %7343 = vmatpush1.bf16.msra.mxu1 %v7333_v51 }
 0xdab   :  { %7847 = vmatprep.subr.bf16.mxu1 %v11500_v15 }
 0xdad   :  { %9373 = vmatmul.mubr.msk.bf16.vlgmr.msra.gmra.mrb[204].mxu1 %vm7325_vm9, %v11496_v24 }
 0xdae   :  { %7380 = vmatprep.mubr.bf16.mxu1 %v12146_v14  ;;  %7848 = vmatpush1.bf16.msra.mxu1 %v11498_v0  ;;  %v11524_v14 = vld [vmem:[#allocation25 + $0x54] ss:$8 sps:$4 sm:$0xff]  }
 0xdaf   :  { %7849 = vmatprep.subr.bf16.mxu1 %v11503_v16 }
 0xdb2   :  { %7850 = vmatpush1.bf16.msra.mxu1 %v11501_v17 }
 0xdb3   :  { %7851 = vmatprep.subr.bf16.mxu1 %v11506_v13  ;;  %v11602_v13 = vld [vmem:[#allocation25 + $0x224] ss:$8 sps:$4 sm:$0xff]  }
 0xdb5   :  { %9374 = vmatmul.mubr.msk.bf16.gmra.mrb[208].mxu1 %vm7325_vm9, %v11497_v4 }
 0xdb6   :  { %7852 = vmatpush1.bf16.msra.mxu1 %v11504_v35 }
 0xdb7   :  { %7853 = vmatprep.subr.bf16.mxu1 %v11512_v6 }
 0xdba   :  { %7854 = vmatpush1.bf16.msra.mxu1 %v11510_v61 }
 0xdbb   :  { %7855 = vmatprep.subr.bf16.mxu1 %v11518_v32 }
 0xdbe   :  { %7856 = vmatpush1.bf16.msra.mxu1 %v11516_v47 }
 0xdbf   :  { %7857 = vmatprep.subr.bf16.mxu1 %v11524_v14 }
 0xdc2   :  { %7858 = vmatpush1.bf16.msra.mxu1 %v11522_v62 }
 0xdc3   :  { %7859 = vmatprep.subr.bf16.mxu1 %v11530_v38 }
 0xdc6   :  { %7860 = vmatpush1.bf16.msra.mxu1 %v11528_v34 }
 0xdc7   :  { %7861 = vmatprep.subr.bf16.mxu1 %v11536_v20 }
 0xdca   :  { %7862 = vmatpush1.bf16.msra.mxu1 %v11534_v28 }
 0xdcb   :  { %7863 = vmatprep.subr.bf16.mxu1 %v11542_v26 }
 0xdce   :  { %7864 = vmatpush1.bf16.msra.mxu1 %v11540_v25 }
 0xdcf   :  { %7865 = vmatprep.subr.bf16.mxu1 %v11548_v56  ;;  %v11600_v56 = vld [vmem:[#allocation25 + $0x220] ss:$8 sps:$4 sm:$0xff]  }
 0xdd2   :  { %7866 = vmatpush1.bf16.msra.mxu1 %v11546_v21 }
 0xdd3   :  { %7867 = vmatprep.subr.bf16.mxu1 %v11554_v27 }
 0xdd6   :  { %7868 = vmatpush1.bf16.msra.mxu1 %v11552_v48 }
 0xdd7   :  { %7869 = vmatprep.subr.bf16.mxu1 %v11560_v29 }
 0xdda   :  { %7870 = vmatpush1.bf16.msra.mxu1 %v11558_v60 }
 0xddb   :  { %7871 = vmatprep.subr.bf16.mxu1 %v11566_v1  ;;  %v11605_v1 = vld [vmem:[#allocation25 + $0x234] ss:$8 sps:$4 sm:$0xff]  }
 0xdde   :  { %7872 = vmatpush1.bf16.msra.mxu1 %v11564_v52 }
 0xddf   :  { %7873 = vmatprep.subr.bf16.mxu1 %v11572_v31 }
 0xde2   :  { %7874 = vmatpush1.bf16.msra.mxu1 %v11570_v37 }
 0xde3   :  { %7875 = vmatprep.subr.bf16.mxu1 %v11578_v55 }
 0xde6   :  { %7876 = vmatpush1.bf16.msra.mxu1 %v11576_v57 }
 0xde7   :  { %7877 = vmatprep.subr.bf16.mxu1 %v11584_v41 }
 0xdea   :  { %7878 = vmatpush1.bf16.msra.mxu1 %v11582_v40 }
 0xdeb   :  { %8095 = vmatprep.subr.bf16.mxu1 %v11590_v18 }
 0xe80   :  { %v7372_v3 = vpop.f32.mrb[204].mxu1 }
 0xe81   :  { %v7374_v53 = vpop.f32.mrb[205].mxu1 }
 0xe82   :  { %v7376_v44 = vpop.f32.mrb[206].mxu1 }
 0xe83   :  { %v7389_v59 = vpack.c.bf16 %v7376_v44, %v7372_v3  ;;  %v7378_v10 = vpop.f32.mrb[207].mxu1  ;;  %v11611_v44 = vld [vmem:[#allocation25 + $0x254] ss:$8 sps:$4 sm:$0xff]  }
 0xe84   :  { %v7390_v12 = vpack.c.bf16 %v7378_v10, %v7374_v53  ;;  %v11606_v53 = vld [vmem:[#allocation25 + $0x240] ss:$8 sps:$4 sm:$0xff]   ;;  %v11614_v10 = vld [vmem:[#allocation25 + $0x264] ss:$8 sps:$4 sm:$0xff]  }
 0xe85   :  { %v7461_v36 = vshll.u32 %v7389_v59, 16  ;;  %v7459_v39 = vshrl.u32 %v7389_v59, 16  ;;  %v7927_v24 = vrot.slane %v7389_v59, 1  ;;  %v8435_v0 = vrot.slane %v7389_v59, 2 }
 0xe86   :  { %7879 = vmatprep.mubr.bf16.mxu1 %v7390_v12  ;;  %v7471_v19 = vshrl.u32 %v7390_v12, 16  ;;  %v7473_v49 = vshll.u32 %v7390_v12, 16  ;;  %v7930_v15 = vrot.slane %v7390_v12, 1  ;;  %v8438_v6 = vrot.slane %v7390_v12, 2  ;;  %v11612_v12 = vld [vmem:[#allocation25 + $0x260] ss:$8 sps:$4 sm:$0xff]  }
 0xe87   :  { %7880 = vmatmul.mubr.bf16.vlgmr.msra.gmra.mrb[212].mxu1 %v7389_v59  ;;  %v7463_v45 = vrot.slane %v7461_v36, 1  ;;  %v8175_v22 = vrot.slane %v7459_v39, 1  ;;  %v8176_v54 = vrot.slane %v7461_v36, 2  ;;  %v11609_v59 = vld [vmem:[#allocation25 + $0x250] ss:$8 sps:$4 sm:$0xff]  }
 0xe88   :  { %8096 = vmatpush1.bf16.msra.mxu1 %v11588_v7  ;;  %v7382_v50 = vpop.f32.mrb[208].mxu1  ;;  %v7475_v51 = vrot.slane %v7473_v49, 1  ;;  %v8184_v4 = vrot.slane %v7471_v19, 1  ;;  %v8185_v62 = vrot.slane %v7473_v49, 2  ;;  %v11617_v7 = vld [vmem:[#allocation25 + $0x274] ss:$8 sps:$4 sm:$0xff]  }
 0xe89   :  { %v7391_v16 = vpack.c.bf16 %v7382_v50, %v7382_v50  ;;  %v7384_v17 = vpop.f32.mrb[209].mxu1  ;;  %8097 = vmatprep.subr.bf16.mxu1 %v11596_v8  ;;  %v8177_v35 = vor.u32 %v8176_v54, %v8175_v22  ;;  %v7464_v47 = vor.u32 %v7463_v45, %v7459_v39  ;;  %v11615_v36 = vld [vmem:[#allocation25 + $0x270] ss:$8 sps:$4 sm:$0xff]   ;;  %v11620_v8 = vld [vmem:[#allocation25 + $0x284] ss:$8 sps:$4 sm:$0xff]  }
 0xe8a   :  { %v7392_v61 = vpack.c.bf16 %v7384_v17, %v7384_v17  ;;  %v7476_v32 = vor.u32 %v7475_v51, %v7471_v19  ;;  %v7386_v14 = vpop.f32.mrb[210].mxu1  ;;  %v8186_v63 = vor.u32 %v8185_v62, %v8184_v4  ;;  %v11618_v39 = vld [vmem:[#allocation25 + $0x280] ss:$8 sps:$4 sm:$0xff]   ;;  %v11623_v19 = vld [vmem:[#allocation25 + $0x294] ss:$8 sps:$4 sm:$0xff]  }
 0xe8b   :  { %v7466_v38 = vshll.u32 %v7391_v16, 16  ;;  %v8178_v34 = vshrl.u32 %v7391_v16, 16  ;;  %v7387_v20 = vpop.f32.mrb[211].mxu1  ;;  %v7928_v28 = vrot.slane %v7391_v16, 1  ;;  %v8436_v26 = vrot.slane %v7391_v16, 2 }
 0xe8c   :  { %v8187_v25 = vshrl.u32 %v7392_v61, 16  ;;  %8098 = vmatpush1.bf16.msra.mxu1 %v11594_v58  ;;  %v7931_v21 = vrot.slane %v7392_v61, 1  ;;  %v7478_v27 = vshll.u32 %v7392_v61, 16  ;;  %v8439_v48 = vrot.slane %v7392_v61, 2  ;;  %v11621_v49 = vld [vmem:[#allocation25 + $0x290] ss:$8 sps:$4 sm:$0xff]  }
 0xe8d   :  { %v8180_v29 = vrot.slane %v8178_v34, 1  ;;  %8099 = vmatprep.subr.bf16.mxu1 %v11602_v13  ;;  %v7468_v60 = vrot.slane %v7466_v38, 1  ;;  %v14137_v52 = vsel %vm645_vm3, %v7927_v24, %v7928_v28  ;;  %v8181_v31 = vrot.slane %v7466_v38, 2  ;;  %v11626_v58 = vld [vmem:[#allocation25 + $0x2a4] ss:$8 sps:$4 sm:$0xff]  }
 0xe8e   :  { %v7932_v37 = vsel %vm645_vm3, %v7930_v15, %v7931_v21  ;;  %v7480_v55 = vrot.slane %v7478_v27, 1  ;;  %v8189_v57 = vrot.slane %v8187_v25, 1  ;;  %v8190_v30 = vrot.slane %v7478_v27, 2  ;;  %v11624_v45 = vld [vmem:[#allocation25 + $0x2a0] ss:$8 sps:$4 sm:$0xff]  }
 0xe8f   :  { %8127 = vmatprep.mubr.bf16.mxu1 %v7932_v37  ;;  %v7469_v11 = vsel %vm309_vm1, %v7464_v47, %v7468_v60  ;;  %v8182_v40 = vor.u32 %v8181_v31, %v8180_v29  ;;  %v14142_v41 = vsel %vm999_vm5, %v8438_v6, %v8439_v48  ;;  %v14145_v23 = vsel %vm999_vm5, %v8435_v0, %v8436_v26  ;;  %v11629_v22 = vld [vmem:[#allocation25 + $0x2b4] ss:$8 sps:$4 sm:$0xff]   ;;  %v11627_v54 = vld [vmem:[#allocation25 + $0x2b0] ss:$8 sps:$4 sm:$0xff]   ;;  %v11632_v50 = vld [vmem:[#allocation25 + $0x2c4] ss:$8 sps:$4 sm:$0xff]  }
 0xe90   :  { %8100 = vmatpush1.bf16.msra.mxu1 %v11600_v56  ;;  %v7481_v18 = vsel %vm309_vm1, %v7476_v32, %v7480_v55  ;;  %v8191_v42 = vor.u32 %v8190_v30, %v8189_v57  ;;  %v11630_v15 = vld [vmem:[#allocation25 + $0x2c0] ss:$8 sps:$4 sm:$0xff]   ;;  %v11635_v51 = vld [vmem:[#allocation25 + $0x2d4] ss:$8 sps:$4 sm:$0xff]   ;;  %v11633_v24 = vld [vmem:[#allocation25 + $0x2d0] ss:$8 sps:$4 sm:$0xff]  }
 0xe91   :  { %7676 = vmatprep.mubr.bf16.mxu0 %v7481_v18  ;;  %8101 = vmatprep.subr.bf16.mxu1 %v11605_v1  ;;  %v14149_v2 = vsel %vm814_vm4, %v8177_v35, %v8182_v40  ;;  %v11638_v0 = vld [vmem:[#allocation25 + $0x2e4] ss:$8 sps:$4 sm:$0xff]   ;;  %v11636_v16 = vld [vmem:[#allocation25 + $0x2e0] ss:$8 sps:$4 sm:$0xff]   ;;  %v11641_v17 = vld [vmem:[#allocation25 + $0x2f4] ss:$8 sps:$4 sm:$0xff]  }
 0xe92   :  { %7677 = vmatmul.mubr.bf16.vlgmr.msra.gmra.mrb[204].mxu0 %v7469_v11  ;;  %v8192_v3 = vsel %vm814_vm4, %v8186_v63, %v8191_v42  ;;  %v11639_v13 = vld [vmem:[#allocation25 + $0x2f0] ss:$8 sps:$4 sm:$0xff]   ;;  %v11644_v4 = vld [vmem:[#allocation25 + $0x304] ss:$8 sps:$4 sm:$0xff]   ;;  %v11642_v35 = vld [vmem:[#allocation25 + $0x300] ss:$8 sps:$4 sm:$0xff]  }
 0xe93   :  { %v11647_v6 = vld [vmem:[#allocation25 + $0x314] ss:$8 sps:$4 sm:$0xff]   ;;  %v11645_v61 = vld [vmem:[#allocation25 + $0x310] ss:$8 sps:$4 sm:$0xff]   ;;  %v11650_v32 = vld [vmem:[#allocation25 + $0x324] ss:$8 sps:$4 sm:$0xff]  }
 0xe94   :  { %8102 = vmatpush1.bf16.msra.mxu1 %v11603_v46  ;;  %v11648_v47 = vld [vmem:[#allocation25 + $0x320] ss:$8 sps:$4 sm:$0xff]   ;;  %v11653_v14 = vld [vmem:[#allocation25 + $0x334] ss:$8 sps:$4 sm:$0xff]   ;;  %v11651_v62 = vld [vmem:[#allocation25 + $0x330] ss:$8 sps:$4 sm:$0xff]  }
 0xe95   :  { %8103 = vmatprep.subr.bf16.mxu1 %v11608_v9  ;;  %v11656_v38 = vld [vmem:[#allocation25 + $0x344] ss:$8 sps:$4 sm:$0xff]   ;;  %v11654_v34 = vld [vmem:[#allocation25 + $0x340] ss:$8 sps:$4 sm:$0xff]   ;;  %v11659_v20 = vld [vmem:[#allocation25 + $0x354] ss:$8 sps:$4 sm:$0xff]  }
 0xe96   :  { %v11657_v28 = vld [vmem:[#allocation25 + $0x350] ss:$8 sps:$4 sm:$0xff]   ;;  %v11662_v26 = vld [vmem:[#allocation25 + $0x364] ss:$8 sps:$4 sm:$0xff]   ;;  %v11660_v25 = vld [vmem:[#allocation25 + $0x360] ss:$8 sps:$4 sm:$0xff]  }
 0xe97   :  { %v11665_v56 = vld [vmem:[#allocation25 + $0x374] ss:$8 sps:$4 sm:$0xff]   ;;  %v11663_v21 = vld [vmem:[#allocation25 + $0x370] ss:$8 sps:$4 sm:$0xff]   ;;  %v11668_v27 = vld [vmem:[#allocation25 + $0x384] ss:$8 sps:$4 sm:$0xff]  }
 0xe98   :  { %8104 = vmatpush1.bf16.msra.mxu1 %v11606_v53  ;;  %v11666_v48 = vld [vmem:[#allocation25 + $0x380] ss:$8 sps:$4 sm:$0xff]   ;;  %v11671_v29 = vld [vmem:[#allocation25 + $0x394] ss:$8 sps:$4 sm:$0xff]   ;;  %v11669_v60 = vld [vmem:[#allocation25 + $0x390] ss:$8 sps:$4 sm:$0xff]  }
 0xe99   :  { %8105 = vmatprep.subr.bf16.mxu1 %v11611_v44  ;;  %v11738_v1 = vld [vmem:[%s14241_s21 + $0x40] sm:$0xff]   ;;  %v11740_v31 = vld [vmem:[%s14241_s21 + $0x48] sm:$0xff]   ;;  %v11742_v30 = vld [vmem:[%s14241_s21 + $0x50] sm:$0xff]  }
 0xe9a   :  { %v11674_v37 = vld [vmem:[#allocation25 + $0x3a4] ss:$8 sps:$4 sm:$0xff]   ;;  %9958 = vmatprep.subr.bf16.mxu0 %v11738_v1  ;;  %v11672_v57 = vld [vmem:[#allocation25 + $0x3a0] ss:$8 sps:$4 sm:$0xff]   ;;  %v11677_v11 = vld [vmem:[#allocation25 + $0x3b4] ss:$8 sps:$4 sm:$0xff]  }
 0xe9b   :  { %v11741_v55 = vld [vmem:[%s14241_s21 + $0x8] sm:$0xff]   ;;  %v11743_v40 = vld [vmem:[%s14241_s21 + $0x10] sm:$0xff]   ;;  %v11744_v46 = vld [vmem:[%s14241_s21 + $0x58] sm:$0xff]  }
 0xe9c   :  { %8106 = vmatpush1.bf16.msra.mxu1 %v11609_v59  ;;  %v11675_v18 = vld [vmem:[#allocation25 + $0x3b0] ss:$8 sps:$4 sm:$0xff]   ;;  %v11680_v63 = vld [vmem:[#allocation25 + $0x3c4] ss:$8 sps:$4 sm:$0xff]   ;;  %v11678_v9 = vld [vmem:[#allocation25 + $0x3c0] ss:$8 sps:$4 sm:$0xff]  }
 0xe9d   :  { %8107 = vmatprep.subr.bf16.mxu1 %v11614_v10  ;;  %v11745_v42 = vld [vmem:[%s14241_s21 + $0x18] sm:$0xff]   ;;  %v11747_v44 = vld [vmem:[%s14241_s21 + $0x20] sm:$0xff]   ;;  %v11686_v10 = vld [vmem:[#allocation25 + $0x3e4] ss:$8 sps:$4 sm:$0xff]  }
 0xe9e   :  { %v11683_v53 = vld [vmem:[#allocation25 + $0x3d4] ss:$8 sps:$4 sm:$0xff]   ;;  %v11681_v59 = vld [vmem:[#allocation25 + $0x3d0] ss:$8 sps:$4 sm:$0xff]  }
 0xe9f   :  { %v11750_v1 = vld [vmem:[%s14241_s21 + $0x70] sm:$0xff]  }
 0xea0   :  { %8108 = vmatpush1.bf16.msra.mxu1 %v11612_v12  ;;  %v11684_v12 = vld [vmem:[#allocation25 + $0x3e0] ss:$8 sps:$4 sm:$0xff]  }
 0xea1   :  { %8109 = vmatprep.subr.bf16.mxu1 %v11617_v7  ;;  %v11689_v7 = vld [vmem:[#allocation25 + $0x3f4] ss:$8 sps:$4 sm:$0xff]  }
 0xea4   :  { %8110 = vmatpush1.bf16.msra.mxu1 %v11615_v36  ;;  %v11687_v36 = vld [vmem:[#allocation25 + $0x3f0] ss:$8 sps:$4 sm:$0xff]  }
 0xea5   :  { %8111 = vmatprep.subr.bf16.mxu1 %v11620_v8  ;;  %v11692_v8 = vld [vmem:[#allocation25 + $0x404] ss:$8 sps:$4 sm:$0xff]  }
 0xea8   :  { %8112 = vmatpush1.bf16.msra.mxu1 %v11618_v39  ;;  %v11690_v39 = vld [vmem:[#allocation25 + $0x400] ss:$8 sps:$4 sm:$0xff]  }
 0xea9   :  { %8113 = vmatprep.subr.bf16.mxu1 %v11623_v19  ;;  %v11695_v19 = vld [vmem:[#allocation25 + $0x414] ss:$8 sps:$4 sm:$0xff]  }
 0xeac   :  { %8114 = vmatpush1.bf16.msra.mxu1 %v11621_v49  ;;  %v11693_v49 = vld [vmem:[#allocation25 + $0x410] ss:$8 sps:$4 sm:$0xff]  }
 0xead   :  { %8115 = vmatprep.subr.bf16.mxu1 %v11626_v58  ;;  %v11698_v58 = vld [vmem:[#allocation25 + $0x424] ss:$8 sps:$4 sm:$0xff]  }
 0xeb0   :  { %8116 = vmatpush1.bf16.msra.mxu1 %v11624_v45  ;;  %v11696_v45 = vld [vmem:[#allocation25 + $0x420] ss:$8 sps:$4 sm:$0xff]  }
 0xeb1   :  { %8117 = vmatprep.subr.bf16.mxu1 %v11629_v22  ;;  %v11701_v22 = vld [vmem:[#allocation25 + $0x434] ss:$8 sps:$4 sm:$0xff]  }
 0xeb4   :  { %8118 = vmatpush1.bf16.msra.mxu1 %v11627_v54  ;;  %v11699_v54 = vld [vmem:[#allocation25 + $0x430] ss:$8 sps:$4 sm:$0xff]  }
 0xeb5   :  { %8119 = vmatprep.subr.bf16.mxu1 %v11632_v50  ;;  %v11704_v50 = vld [vmem:[#allocation25 + $0x444] ss:$8 sps:$4 sm:$0xff]  }
 0xeb8   :  { %8120 = vmatpush1.bf16.msra.mxu1 %v11630_v15  ;;  %v11702_v15 = vld [vmem:[#allocation25 + $0x440] ss:$8 sps:$4 sm:$0xff]  }
 0xeb9   :  { %8121 = vmatprep.subr.bf16.mxu1 %v11635_v51  ;;  %v11707_v51 = vld [vmem:[#allocation25 + $0x454] ss:$8 sps:$4 sm:$0xff]  }
 0xebc   :  { %8122 = vmatpush1.bf16.msra.mxu1 %v11633_v24  ;;  %v11710_v24 = vld [vmem:[#allocation25 + $0x464] ss:$8 sps:$4 sm:$0xff]  }
 0xebd   :  { %8123 = vmatprep.subr.bf16.mxu1 %v11638_v0  ;;  %v11713_v0 = vld [vmem:[#allocation25 + $0x474] ss:$8 sps:$4 sm:$0xff]  }
 0xec0   :  { %8124 = vmatpush1.bf16.msra.mxu1 %v11636_v16  ;;  %v11711_v16 = vld [vmem:[#allocation25 + $0x470] ss:$8 sps:$4 sm:$0xff]  }
 0xec1   :  { %8125 = vmatprep.subr.bf16.mxu1 %v11641_v17  ;;  %v11716_v17 = vld [vmem:[#allocation25 + $0x484] ss:$8 sps:$4 sm:$0xff]  }
 0xec4   :  { %8126 = vmatpush1.bf16.msra.mxu1 %v11639_v13  ;;  %v11714_v13 = vld [vmem:[#allocation25 + $0x480] ss:$8 sps:$4 sm:$0xff]  }
 0xec5   :  { %8355 = vmatprep.subr.bf16.mxu1 %v11644_v4  ;;  %v11719_v4 = vld [vmem:[#allocation25 + $0x494] ss:$8 sps:$4 sm:$0xff]  }
 0xec7   :  { %8128 = vmatmul.mubr.bf16.vlgmr.msra.gmra.mrb[212].mxu1 %v14137_v52  ;;  %v11739_v52 = vld [vmem:[%s14241_s21] sm:$0xff]  }
 0xec8   :  { %8356 = vmatpush1.bf16.msra.mxu1 %v11642_v35  ;;  %8387 = vmatprep.mubr.bf16.mxu1 %v8192_v3  ;;  %v11746_v3 = vld [vmem:[%s14241_s21 + $0x60] sm:$0xff]  }
 0xec9   :  { %8357 = vmatprep.subr.bf16.mxu1 %v11647_v6  ;;  %9959 = vmatpush3.bf16.msra.mxu0 %v11739_v52  ;;  %v11717_v35 = vld [vmem:[#allocation25 + $0x490] ss:$8 sps:$4 sm:$0xff]   ;;  %v11722_v6 = vld [vmem:[#allocation25 + $0x4a4] ss:$8 sps:$4 sm:$0xff]  }
 0xeca   :  { %9960 = vmatprep.subr.bf16.mxu0 %v11740_v31  ;;  %v11752_v52 = vld [vmem:[%s14241_s21 + $0x78] sm:$0xff]  }
 0xecb   :  { %v11753_v31 = vld [vmem:[%s14241_s21 + $0x38] sm:$0xff]  }
 0xecc   :  { %8358 = vmatpush1.bf16.msra.mxu1 %v11645_v61  ;;  %v11720_v61 = vld [vmem:[#allocation25 + $0x4a0] ss:$8 sps:$4 sm:$0xff]  }
 0xecd   :  { %8359 = vmatprep.subr.bf16.mxu1 %v11650_v32  ;;  %9961 = vmatpush3.bf16.msra.mxu0 %v11741_v55  ;;  %v11725_v32 = vld [vmem:[#allocation25 + $0x4b4] ss:$8 sps:$4 sm:$0xff]  }
 0xece   :  { %9962 = vmatprep.subr.bf16.mxu0 %v11742_v30 }
 0xed0   :  { %8360 = vmatpush1.bf16.msra.mxu1 %v11648_v47  ;;  %v11723_v47 = vld [vmem:[#allocation25 + $0x4b0] ss:$8 sps:$4 sm:$0xff]  }
 0xed1   :  { %8361 = vmatprep.subr.bf16.mxu1 %v11653_v14  ;;  %9963 = vmatpush3.bf16.msra.mxu0 %v11743_v40  ;;  %v11728_v14 = vld [vmem:[#allocation25 + $0x4c4] ss:$8 sps:$4 sm:$0xff]  }
 0xed2   :  { %9964 = vmatprep.subr.bf16.mxu0 %v11744_v46 }
 0xed4   :  { %8362 = vmatpush1.bf16.msra.mxu1 %v11651_v62  ;;  %v11726_v62 = vld [vmem:[#allocation25 + $0x4c0] ss:$8 sps:$4 sm:$0xff]  }
 0xed5   :  { %8363 = vmatprep.subr.bf16.mxu1 %v11656_v38  ;;  %9965 = vmatpush3.bf16.msra.mxu0 %v11745_v42  ;;  %v11731_v38 = vld [vmem:[#allocation25 + $0x4d4] ss:$8 sps:$4 sm:$0xff]  }
 0xed6   :  { %9966 = vmatprep.subr.bf16.mxu0 %v11746_v3 }
 0xed8   :  { %8364 = vmatpush1.bf16.msra.mxu1 %v11654_v34  ;;  %v11729_v34 = vld [vmem:[#allocation25 + $0x4d0] ss:$8 sps:$4 sm:$0xff]  }
 0xed9   :  { %8365 = vmatprep.subr.bf16.mxu1 %v11659_v20  ;;  %9967 = vmatpush3.bf16.msra.mxu0 %v11747_v44  ;;  %v11734_v20 = vld [vmem:[#allocation25 + $0x4e4] ss:$8 sps:$4 sm:$0xff]  }
 0xedc   :  { %8366 = vmatpush1.bf16.msra.mxu1 %v11657_v28  ;;  %v11732_v28 = vld [vmem:[#allocation25 + $0x4e0] ss:$8 sps:$4 sm:$0xff]  }
 0xedd   :  { %8367 = vmatprep.subr.bf16.mxu1 %v11662_v26  ;;  %v11737_v26 = vld [vmem:[#allocation25 + $0x4f4] ss:$8 sps:$4 sm:$0xff]  }
 0xee0   :  { %8368 = vmatpush1.bf16.msra.mxu1 %v11660_v25  ;;  %v11735_v25 = vld [vmem:[#allocation25 + $0x4f0] ss:$8 sps:$4 sm:$0xff]  }
 0xee1   :  { %8369 = vmatprep.subr.bf16.mxu1 %v11665_v56 }
 0xee4   :  { %8370 = vmatpush1.bf16.msra.mxu1 %v11663_v21 }
 0xee5   :  { %8371 = vmatprep.subr.bf16.mxu1 %v11668_v27 }
 0xee8   :  { %8372 = vmatpush1.bf16.msra.mxu1 %v11666_v48 }
 0xee9   :  { %8373 = vmatprep.subr.bf16.mxu1 %v11671_v29  ;;  %v11748_v29 = vld [vmem:[%s14241_s21 + $0x68] sm:$0xff]  }
 0xeea   :  { %9968 = vmatprep.subr.bf16.mxu0 %v11748_v29 }
 0xeec   :  { %8374 = vmatpush1.bf16.msra.mxu1 %v11669_v60  ;;  %v11749_v60 = vld [vmem:[%s14241_s21 + $0x28] sm:$0xff]  }
 0xeed   :  { %8375 = vmatprep.subr.bf16.mxu1 %v11674_v37  ;;  %9969 = vmatpush3.bf16.msra.mxu0 %v11749_v60  ;;  %v8650_v37 = vld [vmem:[%s14240_s20] sm:$0x3] }
 0xeee   :  { %9970 = vmatprep.subr.bf16.mxu0 %v11750_v1  ;;  %v8655_v55 = vrot.slane %v8650_v37, %v7280_v43  ;;  %v8659_v30 = vrot.slane %v8650_v37, %v7284_v5  ;;  %v9535_v5 = vld [vmem:[%s14242_s22] ss:$0 sm:$0xff] }
 0xef0   :  { %8376 = vmatpush1.bf16.msra.mxu1 %v11672_v57 }
 0xef1   :  { %8377 = vmatprep.subr.bf16.mxu1 %v11677_v11 }
 0xef4   :  { %8378 = vmatpush1.bf16.msra.mxu1 %v11675_v18 }
 0xef5   :  { %8379 = vmatprep.subr.bf16.mxu1 %v11680_v63 }
 0xef8   :  { %8380 = vmatpush1.bf16.msra.mxu1 %v11678_v9 }
 0xef9   :  { %8381 = vmatprep.subr.bf16.mxu1 %v11683_v53 }
 0xefc   :  { %8382 = vmatpush1.bf16.msra.mxu1 %v11681_v59 }
 0xefd   :  { %8383 = vmatprep.subr.bf16.mxu1 %v11686_v10 }
 0xf00   :  { %8384 = vmatpush1.bf16.msra.mxu1 %v11684_v12 }
 0xf01   :  { %8385 = vmatprep.subr.bf16.mxu1 %v11689_v7 }
 0xf04   :  { %8386 = vmatpush1.bf16.msra.mxu1 %v11687_v36 }
 0xf05   :  { %8603 = vmatprep.subr.bf16.mxu1 %v11692_v8 }
 0xf07   :  { %8388 = vmatmul.mubr.bf16.vlgmr.msra.gmra.mrb[212].mxu1 %v14149_v2  ;;  %v11705_v2 = vld [vmem:[#allocation25 + $0x450] ss:$8 sps:$4 sm:$0xff]  }
 0xf08   :  { %8604 = vmatpush1.bf16.msra.mxu1 %v11690_v39  ;;  %8635 = vmatprep.mubr.bf16.mxu1 %v14142_v41  ;;  %v11708_v41 = vld [vmem:[#allocation25 + $0x460] ss:$8 sps:$4 sm:$0xff]  }
 0xf09   :  { %8605 = vmatprep.subr.bf16.mxu1 %v11695_v19 }
 0xf0c   :  { %8606 = vmatpush1.bf16.msra.mxu1 %v11693_v49 }
 0xf0d   :  { %8607 = vmatprep.subr.bf16.mxu1 %v11698_v58 }
 0xf10   :  { %8608 = vmatpush1.bf16.msra.mxu1 %v11696_v45 }
 0xf11   :  { %8609 = vmatprep.subr.bf16.mxu1 %v11701_v22 }
 0xf14   :  { %8610 = vmatpush1.bf16.msra.mxu1 %v11699_v54 }
 0xf15   :  { %8611 = vmatprep.subr.bf16.mxu1 %v11704_v50 }
 0xf18   :  { %8612 = vmatpush1.bf16.msra.mxu1 %v11702_v15 }
 0xf19   :  { %8613 = vmatprep.subr.bf16.mxu1 %v11707_v51 }
 0xf1c   :  { %8614 = vmatpush1.bf16.msra.mxu1 %v11705_v2 }
 0xf1d   :  { %8615 = vmatprep.subr.bf16.mxu1 %v11710_v24 }
 0xf20   :  { %8616 = vmatpush1.bf16.msra.mxu1 %v11708_v41 }
 0xf21   :  { %8617 = vmatprep.subr.bf16.mxu1 %v11713_v0 }
 0xf24   :  { %8618 = vmatpush1.bf16.msra.mxu1 %v11711_v16 }
 0xf25   :  { %8619 = vmatprep.subr.bf16.mxu1 %v11716_v17 }
 0xf28   :  { %8620 = vmatpush1.bf16.msra.mxu1 %v11714_v13 }
 0xf29   :  { %8621 = vmatprep.subr.bf16.mxu1 %v11719_v4 }
 0xf2c   :  { %8622 = vmatpush1.bf16.msra.mxu1 %v11717_v35 }
 0xf2d   :  { %8623 = vmatprep.subr.bf16.mxu1 %v11722_v6 }
 0xf30   :  { %8624 = vmatpush1.bf16.msra.mxu1 %v11720_v61 }
 0xf31   :  { %8625 = vmatprep.subr.bf16.mxu1 %v11725_v32 }
 0xf34   :  { %8626 = vmatpush1.bf16.msra.mxu1 %v11723_v47 }
 0xf35   :  { %8627 = vmatprep.subr.bf16.mxu1 %v11728_v14 }
 0xf38   :  { %8628 = vmatpush1.bf16.msra.mxu1 %v11726_v62 }
 0xf39   :  { %8629 = vmatprep.subr.bf16.mxu1 %v11731_v38 }
 0xf3c   :  { %8630 = vmatpush1.bf16.msra.mxu1 %v11729_v34 }
 0xf3d   :  { %8631 = vmatprep.subr.bf16.mxu1 %v11734_v20 }
 0xf40   :  { %8632 = vmatpush1.bf16.msra.mxu1 %v11732_v28 }
 0xf41   :  { %8633 = vmatprep.subr.bf16.mxu1 %v11737_v26 }
 0xf44   :  { %8634 = vmatpush1.bf16.msra.mxu1 %v11735_v25 }
 0xf47   :  { %8636 = vmatmul.mubr.bf16.vlgmr.msra.gmra.mrb[212].mxu1 %v14145_v23  ;;  %v11751_v23 = vld [vmem:[%s14241_s21 + $0x30] sm:$0xff]  }
 0xf48   :  { %9971 = vmatpush3.bf16.msra.mxu0 %v11751_v23 }
 0xf49   :  { %9972 = vmatprep.subr.bf16.mxu0 %v11752_v52 }
 0xf4c   :  { %9973 = vmatpush3.bf16.msra.mxu0 %v11753_v31 }
 0xf65   :  { %v7678_v56 = vpop.f32.mrb[204].mxu0 }
 0xf66   :  { %v7680_v21 = vpop.f32.mrb[205].mxu0 }
 0xf67   :  { %v7682_v27 = vpop.f32.mrb[206].mxu0 }
 0xf68   :  { %v7684_v48 = vpop.f32.mrb[207].mxu0 }
0x101a   :  { %v8637_v57 = vpop.f32.mrb[212].mxu1 }
0x101b   :  { %v10938_v11 = vadd.f32 %v8637_v57, %v7678_v56  ;;  %v8639_v40 = vpop.f32.mrb[213].mxu1 }
0x101c   :  { %v10939_v18 = vadd.f32 %v8639_v40, %v7680_v21  ;;  %v8641_v46 = vpop.f32.mrb[214].mxu1 }
0x101d   :  { %v8662_v63 = vadd.f32 %v10938_v11, %v8655_v55  ;;  %v10940_v42 = vadd.f32 %v8641_v46, %v7682_v27  ;;  %v8643_v9 = vpop.f32.mrb[215].mxu1 }
0x101e   :  { %v8663_v3 = vadd.f32 %v10939_v18, %v8659_v30  ;;  %v10941_v53 = vadd.f32 %v8643_v9, %v7684_v48 }
0x101f   :  { %v8664_v44 = vadd.f32 %v10940_v42, %v8655_v55  ;;  %v8666_v10 = vmax.f32 %v8662_v63, 0.0 }
0x1020   :  { %v8665_v59 = vadd.f32 %v10941_v53, %v8659_v30  ;;  %v8667_v7 = vmax.f32 %v8663_v3, 0.0 }
0x1021   :  { %v8668_v12 = vmax.f32 %v8664_v44, 0.0 }
0x1022   :  { %v8669_v36 = vmax.f32 %v8665_v59, 0.0 }
0x1023   :  { %v8670_v43 = vpack.c.bf16 %v8668_v12, %v8666_v10 }
0x1024   :  { %v8671_v8 = vpack.c.bf16 %v8669_v36, %v8667_v7 }
0x1026   :  { %8839 = vmatprep.mubr.bf16.mxu0 %v8671_v8 }
0x1027   :  { %8840 = vmatmul.mubr.bf16.vlgmr.msra.gmra.mrb[208].mxu0 %v8670_v43 }
0x10fa   :  { %v9974_v33 = vpop.f32.mrb[208].mxu0 }
0x10fb   :  { %v9975_v39 = vpop.f32.mrb[209].mxu0 }
0x10fc   :  { %v9976_v19 = vadd.f32 %v9975_v39, %v9974_v33  ;;  %v9977_v49 = vpop.f32.mrb[210].mxu0 }
0x10fd   :  { %v9978_v58 = vpop.f32.mrb[211].mxu0 }
0x10fe   :  { %v8842_v45 = vadd.f32 %v9976_v19, %v9535_v5  ;;  %v9979_v22 = vadd.f32 %v9978_v58, %v9977_v49 }
0x1100   :  { %v8848_v54 = vmax.f32 %v8842_v45, 0.0  ;;  %v8845_v50 = vadd.f32 %v9979_v22, %v9535_v5 }
0x1102   :  { %8851 = vst.msk [vmem:[%s14270_s27] sm:$0xff] %vm8850_vm10, %v8848_v54  ;;  %v8849_v15 = vmax.f32 %v8845_v50, 0.0 }
0x1104   :  { %8852 = vst.msk [vmem:[%s14270_s27 + $0x8] sm:$0xff] %vm8850_vm10, %v8849_v15 }
0x1105   :  { %8857 = vsyncpa [#allocation3], 1 }
0x1106   :  { %8858 = vsyncpa [#allocation5], 1 }
0x1107   :  { %8859 = vsyncpa [#allocation8], 1 }
0x1108   :  { %8860 = vsyncpa [#allocation11], 1 }
0x1109   :  { %8861 = vsyncpa [#allocation14], 1 }
0x110a   :  { %8862 = vsyncpa [#allocation17], 1 }
0x110b   :  { %8863 = vsyncpa [#allocation20], 1 }
0x110c   :  { %8864 = vsyncpa [#allocation23], 1 }
0x110d   :  { %8865 = vsyncpa [#allocation26], 1 }

</bundles_post_ra>
